<compile_context>
chip_gen: v5e
topology: v5e:2x2
jax: 0.10.0
libtpu: 0.0.40
codegen_flags: <defaults>
</compile_context>

<pallas_src>
import math

import jax
import jax.numpy as jnp
from jax.experimental import pallas as pl
from jax.experimental.pallas import tpu as pltpu

# ----------------------------- small BERT config -----------------------------
B, S = 2, 8            # batch, sequence length
HIDDEN = 32            # hidden size
HEADS = 4              # attention heads
DH = HIDDEN // HEADS   # head dim
INTER = 64             # FFN intermediate size
LAYERS = 2             # encoder layers
VOCAB = 50             # vocab size (= classify output dim)
MAX_POS = 16           # max position embeddings
EPS = 1e-12            # BERT layernorm eps

BS = B * S             # tokens per forward
VPAD = 128             # lane-dense padded logits width (VOCAB -> 128)
NEG_INF = -1e30        # plain Python float -> NOT a captured traced constant


# --------------------------- in-kernel building blocks ------------------------
def _layernorm(x, g, b):
    """LayerNorm over the last (hidden) axis; residual is added by the caller."""
    mean = jnp.mean(x, axis=-1, keepdims=True)
    var = jnp.mean(jnp.square(x - mean), axis=-1, keepdims=True)
    return (x - mean) * jax.lax.rsqrt(var + EPS) * g + b


def _gelu(x):
    # TODO(synk): tanh-approx GELU (EUP tanh) instead of BERT's exact erf GELU;
    # switch to jax.lax.erf once its Mosaic lowering is verified on the target.
    c = math.sqrt(2.0 / math.pi)
    return 0.5 * x * (1.0 + jnp.tanh(c * (x + 0.044715 * x * x * x)))


def _attention(q, k, v):
    """Multi-head self-attention on VMEM-resident values.

    q/k/v: [B*S, HIDDEN].  Heads/batches are tiny, so the loops are fully
    unrolled in-kernel: no grid steps, no DMAs, no layout transposes.
    """
    scale = 1.0 / math.sqrt(DH)
    batch_ctx = []
    for bi in range(B):
        r0, r1 = bi * S, (bi + 1) * S
        head_ctx = []
        for hi in range(HEADS):
            c0, c1 = hi * DH, (hi + 1) * DH
            qh = q[r0:r1, c0:c1]                       # [S, DH]
            kh = k[r0:r1, c0:c1]
            vh = v[r0:r1, c0:c1]
            # q @ k^T without materializing a transpose (contract last dims).
            sc = jax.lax.dot_general(
                qh, kh, (((1,), (1,)), ((), ())),
                preferred_element_type=jnp.float32) * scale
            sc = sc - jnp.max(sc, axis=-1, keepdims=True)
            p = jnp.exp(sc)
            p = p * pl.reciprocal(jnp.sum(p, axis=-1, keepdims=True), approx=True)
            head_ctx.append(jnp.dot(p, vh, preferred_element_type=jnp.float32))
        batch_ctx.append(jnp.concatenate(head_ctx, axis=-1))    # [S, HIDDEN]
    return jnp.concatenate(batch_ctx, axis=0)                    # [B*S, HIDDEN]


def _encoder_logits(ids_ref, we_ref, pt_ref, eg_ref, eb_ref,
                    wqkv_ref, bqkv_ref, wo_ref, bo_ref, g1_ref, b1_ref,
                    wi_ref, bi_ref, wf_ref, bf_ref, g2_ref, b2_ref,
                    wc_ref, bc_ref):
    """Full BERT encoder + classifier head -> masked padded logits [BS, VPAD]."""
    # Word-embedding gather as an exact one-hot MXU matmul (fused in-kernel).
    vocab_ids = jax.lax.broadcasted_iota(jnp.int32, (BS, VOCAB), 1)
    onehot = (vocab_ids == ids_ref[...]).astype(jnp.float32)              # [BS, V]
    h = jnp.dot(onehot, we_ref[...], preferred_element_type=jnp.float32)  # [BS, H]
    h = _layernorm(h + pt_ref[...], eg_ref[...], eb_ref[...])

    for li in range(LAYERS):                                              # unrolled
        # fused Q/K/V projection: one [H, 3H] matmul + bias
        qkv = jnp.dot(h, wqkv_ref[li],
                      preferred_element_type=jnp.float32) + bqkv_ref[li]  # [BS, 3H]
        q = qkv[:, 0 * HIDDEN:1 * HIDDEN]
        k = qkv[:, 1 * HIDDEN:2 * HIDDEN]
        v = qkv[:, 2 * HIDDEN:3 * HIDDEN]

        ctx = _attention(q, k, v)                                         # [BS, H]
        attn_out = jnp.dot(ctx, wo_ref[li],
                           preferred_element_type=jnp.float32) + bo_ref[li]
        h = _layernorm(attn_out + h, g1_ref[li], b1_ref[li])              # fused residual

        inter = jnp.dot(h, wi_ref[li],
                        preferred_element_type=jnp.float32) + bi_ref[li]
        inter = _gelu(inter)                                              # fused bias+GELU
        ffn_out = jnp.dot(inter, wf_ref[li],
                          preferred_element_type=jnp.float32) + bf_ref[li]
        h = _layernorm(ffn_out + h, g2_ref[li], b2_ref[li])

    logits = jnp.dot(h, wc_ref[...],
                     preferred_element_type=jnp.float32) + bc_ref[...]    # [BS, VPAD]
    col = jax.lax.broadcasted_iota(jnp.int32, (BS, VPAD), 1)
    return jnp.where(col < VOCAB, logits, NEG_INF)                        # mask pad cols


# --------------------------------- kernels ------------------------------------
def _sft_probs_kernel(ids_ref, *rest):
    """Inference branch: softmax(classify(bert(x))) over the real vocab."""
    w_refs, probs_ref = rest[:-1], rest[-1]
    logits = _encoder_logits(ids_ref, *w_refs)
    m = jnp.max(logits, axis=-1, keepdims=True)
    e = jnp.exp(logits - m)                          # pad columns -> exactly 0
    probs_ref[...] = e / jnp.sum(e, axis=-1, keepdims=True)


def _sft_loss_kernel(ids_ref, labels_ref, *rest):
    """Training branch: mean cross-entropy over all tokens (scalar output)."""
    w_refs, loss_ref = rest[:-1], rest[-1]
    logits = _encoder_logits(ids_ref, *w_refs)
    m = jnp.max(logits, axis=-1, keepdims=True)
    lse = jnp.log(jnp.sum(jnp.exp(logits - m), axis=-1, keepdims=True)) + m
    col = jax.lax.broadcasted_iota(jnp.int32, (BS, VPAD), 1)
    onehot = (col == labels_ref[...]).astype(jnp.float32)
    picked = jnp.sum(onehot * logits, axis=-1, keepdims=True)
    per_token = lse - picked                                              # [BS, 1]
    # 'mean' reduction fused into the kernel -> single (1,1) scalar slab.
    loss_ref[...] = jnp.sum(per_token, axis=0, keepdims=True) * (1.0 / BS)


# ------------------------------ pallas_call glue -------------------------------
def _full_specs(arrays):
    """Whole-array VMEM blocks (everything is resident; trivial index maps)."""
    return [pl.BlockSpec(a.shape, lambda i, _nd=a.ndim: (0,) * _nd) for a in arrays]


def _fused_call(kernel, inputs, out_shape):
    out_nd = len(out_shape.shape)
    return pl.pallas_call(
        kernel,
        out_shape=out_shape,
        grid=(1,),
        in_specs=_full_specs(inputs),
        out_specs=pl.BlockSpec(out_shape.shape, lambda i, _nd=out_nd: (0,) * _nd),
        compiler_params=pltpu.CompilerParams(dimension_semantics=("arbitrary",)),
    )(*inputs)


@jax.jit
def sft_probs(packed, x_ids):
    ids = x_ids.reshape(BS, 1).astype(jnp.int32)
    inputs = (ids,) + tuple(packed)
    probs_pad = _fused_call(_sft_probs_kernel, inputs,
                            jax.ShapeDtypeStruct((BS, VPAD), jnp.float32))
    return probs_pad[:, :VOCAB].reshape(B, S, VOCAB)


@jax.jit
def sft_loss(packed, x_ids, y):
    ids = x_ids.reshape(BS, 1).astype(jnp.int32)
    labels = y.reshape(BS, 1).astype(jnp.int32)
    inputs = (ids, labels) + tuple(packed)
    loss11 = _fused_call(_sft_loss_kernel, inputs,
                         jax.ShapeDtypeStruct((1, 1), jnp.float32))
    return loss11[0, 0]


def sft_forward(packed, x_ids, y=None):
    if y is None:
        return sft_probs(packed, x_ids)
    return sft_loss(packed, x_ids, y)


# ------------------------------ parameter init --------------------------------
def init_params(key):
    def nrm(k, shape):
        return 0.02 * jax.random.normal(k, shape, dtype=jnp.float32)

    keys = jax.random.split(key, 4 + LAYERS)
    p = {
        "word_emb": nrm(keys[0], (VOCAB, HIDDEN)),
        "pos_emb": nrm(keys[1], (MAX_POS, HIDDEN)),
        "type_emb": nrm(keys[2], (2, HIDDEN)),
        "emb_ln_g": jnp.ones((HIDDEN,), jnp.float32),
        "emb_ln_b": jnp.zeros((HIDDEN,), jnp.float32),
        "layers": [],
    }
    for li in range(LAYERS):
        lk = jax.random.split(keys[4 + li], 6)
        p["layers"].append({
            "wq": nrm(lk[0], (HIDDEN, HIDDEN)), "bq": jnp.zeros((HIDDEN,), jnp.float32),
            "wk": nrm(lk[1], (HIDDEN, HIDDEN)), "bk": jnp.zeros((HIDDEN,), jnp.float32),
            "wv": nrm(lk[2], (HIDDEN, HIDDEN)), "bv": jnp.zeros((HIDDEN,), jnp.float32),
            "wo": nrm(lk[3], (HIDDEN, HIDDEN)), "bo": jnp.zeros((HIDDEN,), jnp.float32),
            "ln1_g": jnp.ones((HIDDEN,), jnp.float32), "ln1_b": jnp.zeros((HIDDEN,), jnp.float32),
            "wi": nrm(lk[4], (HIDDEN, INTER)), "bi": jnp.zeros((INTER,), jnp.float32),
            "wff": nrm(lk[5], (INTER, HIDDEN)), "bff": jnp.zeros((HIDDEN,), jnp.float32),
            "ln2_g": jnp.ones((HIDDEN,), jnp.float32), "ln2_b": jnp.zeros((HIDDEN,), jnp.float32),
        })
    p["wc"] = nrm(keys[3], (HIDDEN, VOCAB))
    p["bc"] = jnp.zeros((VOCAB,), jnp.float32)
    return p


def pack_params(p):
    """Flatten params into the kernel input tuple (stacked over layers,
    QKV fused, biases as [1,N] rows, classifier padded to lane-dense 128)."""
    row = lambda v: v[None, :]
    stackw = lambda key: jnp.stack([lp[key] for lp in p["layers"]])
    stackb = lambda key: jnp.stack([row(lp[key]) for lp in p["layers"]])

    wqkv = jnp.stack([jnp.concatenate([lp["wq"], lp["wk"], lp["wv"]], axis=1)
                      for lp in p["layers"]])                               # [L,H,3H]
    bqkv = jnp.stack([row(jnp.concatenate([lp["bq"], lp["bk"], lp["bv"]]))
                      for lp in p["layers"]])                               # [L,1,3H]
    # per-token positional + token-type(0) embedding, precomputed once
    pos_type = jnp.tile(p["pos_emb"][:S] + p["type_emb"][0][None, :], (B, 1))
    wc_pad = jnp.pad(p["wc"], ((0, 0), (0, VPAD - VOCAB)))                  # zero cols
    bc_pad = row(jnp.pad(p["bc"], (0, VPAD - VOCAB)))

    return (p["word_emb"], pos_type, row(p["emb_ln_g"]), row(p["emb_ln_b"]),
            wqkv, bqkv, stackw("wo"), stackb("bo"), stackb("ln1_g"), stackb("ln1_b"),
            stackw("wi"), stackb("bi"), stackw("wff"), stackb("bff"),
            stackb("ln2_g"), stackb("ln2_b"), wc_pad, bc_pad)


# --------------------------- plain-JAX reference -------------------------------
def reference_forward(p, x_ids, y=None):
    tok = jnp.take(p["word_emb"], x_ids, axis=0)                            # [B,S,H]
    pos = p["pos_emb"][:S][None, :, :]
    typ = p["type_emb"][0][None, None, :]
    h = (tok + pos + typ).reshape(BS, HIDDEN)
    h = _layernorm(h, p["emb_ln_g"], p["emb_ln_b"])
    for lp in p["layers"]:
        q = h @ lp["wq"] + lp["bq"]
        k = h @ lp["wk"] + lp["bk"]
        v = h @ lp["wv"] + lp["bv"]
        split = lambda t: t.reshape(B, S, HEADS, DH).transpose(0, 2, 1, 3)
        qh, kh, vh = split(q), split(k), split(v)
        sc = jnp.einsum("bhqd,bhkd->bhqk", qh, kh) / math.sqrt(DH)
        pa = jax.nn.softmax(sc, axis=-1)
        ctx = jnp.einsum("bhqk,bhkd->bhqd", pa, vh).transpose(0, 2, 1, 3).reshape(BS, HIDDEN)
        h = _layernorm(ctx @ lp["wo"] + lp["bo"] + h, lp["ln1_g"], lp["ln1_b"])
        inter = _gelu(h @ lp["wi"] + lp["bi"])
        h = _layernorm(inter @ lp["wff"] + lp["bff"] + h, lp["ln2_g"], lp["ln2_b"])
    logits = h @ p["wc"] + p["bc"]
    if y is None:
        return jax.nn.softmax(logits, axis=-1).reshape(B, S, VOCAB)
    lse = jax.nn.logsumexp(logits, axis=-1)
    picked = jnp.take_along_axis(logits, y.reshape(-1, 1), axis=-1)[:, 0]
    return jnp.mean(lse - picked)


# ------------------------------------ main ------------------------------------
if __name__ == "__main__":
    root = jax.random.PRNGKey(0)
    kp, kx, ky = jax.random.split(root, 3)

    params = init_params(kp)
    packed = pack_params(params)
    x = jax.random.randint(kx, (B, S), 0, VOCAB, dtype=jnp.int32)   # token ids
    y = jax.random.randint(ky, (B, S), 0, VOCAB, dtype=jnp.int32)   # labels

    probs = sft_forward(packed, x)        # inference branch: softmax probs [B,S,V]
    loss = sft_forward(packed, x, y)      # training branch: scalar CE loss
    jax.block_until_ready(probs)
    jax.block_until_ready(loss)

    # structural checks
    assert probs.shape == (B, S, VOCAB)
    assert bool(jnp.allclose(jnp.sum(probs, axis=-1), 1.0, atol=1e-5))
    assert bool(jnp.isfinite(loss))

    # numerical check against a plain-JAX reference of the same forward
    probs_gold = reference_forward(params, x)
    loss_gold = reference_forward(params, x, y)
    assert bool(jnp.allclose(probs, probs_gold, atol=2e-3))
    assert bool(jnp.allclose(loss, loss_gold, atol=1e-2, rtol=1e-3))

    print("KERNEL_OK")
</pallas_src>

<mosaic_0001>
module attributes {stable_mosaic.version = 11 : i64} {
  func.func @_sft_probs_kernel(%arg0: i32, %arg1: memref<16x1xi32, #tpu.memory_space<vmem>>, %arg2: memref<50x32xf32, #tpu.memory_space<vmem>>, %arg3: memref<16x32xf32, #tpu.memory_space<vmem>>, %arg4: memref<1x32xf32, #tpu.memory_space<vmem>>, %arg5: memref<1x32xf32, #tpu.memory_space<vmem>>, %arg6: memref<2x32x96xf32, #tpu.memory_space<vmem>>, %arg7: memref<2x1x96xf32, #tpu.memory_space<vmem>>, %arg8: memref<2x32x32xf32, #tpu.memory_space<vmem>>, %arg9: memref<2x1x32xf32, #tpu.memory_space<vmem>>, %arg10: memref<2x1x32xf32, #tpu.memory_space<vmem>>, %arg11: memref<2x1x32xf32, #tpu.memory_space<vmem>>, %arg12: memref<2x32x64xf32, #tpu.memory_space<vmem>>, %arg13: memref<2x1x64xf32, #tpu.memory_space<vmem>>, %arg14: memref<2x64x32xf32, #tpu.memory_space<vmem>>, %arg15: memref<2x1x32xf32, #tpu.memory_space<vmem>>, %arg16: memref<2x1x32xf32, #tpu.memory_space<vmem>>, %arg17: memref<2x1x32xf32, #tpu.memory_space<vmem>>, %arg18: memref<32x128xf32, #tpu.memory_space<vmem>>, %arg19: memref<1x128xf32, #tpu.memory_space<vmem>>, %arg20: memref<16x128xf32, #tpu.memory_space<vmem>>) attributes {dimension_semantics = [#tpu.dimension_semantics<arbitrary>], iteration_bounds = array<i64: 1>, scalar_prefetch = 0 : i64, scratch_operands = 0 : i64, tpu.core_type = #tpu.core_type<tc>, window_params = [{pipeline_mode = #tpu.pipeline_mode<synchronous>, transform_indices = @transform_0, window_bounds = array<i64: 16, 1>}, {pipeline_mode = #tpu.pipeline_mode<synchronous>, transform_indices = @transform_1, window_bounds = array<i64: 50, 32>}, {pipeline_mode = #tpu.pipeline_mode<synchronous>, transform_indices = @transform_2, window_bounds = array<i64: 16, 32>}, {pipeline_mode = #tpu.pipeline_mode<synchronous>, transform_indices = @transform_3, window_bounds = array<i64: 1, 32>}, {pipeline_mode = #tpu.pipeline_mode<synchronous>, transform_indices = @transform_4, window_bounds = array<i64: 1, 32>}, {pipeline_mode = #tpu.pipeline_mode<synchronous>, transform_indices = @transform_5, window_bounds = array<i64: 2, 32, 96>}, {pipeline_mode = #tpu.pipeline_mode<synchronous>, transform_indices = @transform_6, window_bounds = array<i64: 2, 1, 96>}, {pipeline_mode = #tpu.pipeline_mode<synchronous>, transform_indices = @transform_7, window_bounds = array<i64: 2, 32, 32>}, {pipeline_mode = #tpu.pipeline_mode<synchronous>, transform_indices = @transform_8, window_bounds = array<i64: 2, 1, 32>}, {pipeline_mode = #tpu.pipeline_mode<synchronous>, transform_indices = @transform_9, window_bounds = array<i64: 2, 1, 32>}, {pipeline_mode = #tpu.pipeline_mode<synchronous>, transform_indices = @transform_10, window_bounds = array<i64: 2, 1, 32>}, {pipeline_mode = #tpu.pipeline_mode<synchronous>, transform_indices = @transform_11, window_bounds = array<i64: 2, 32, 64>}, {pipeline_mode = #tpu.pipeline_mode<synchronous>, transform_indices = @transform_12, window_bounds = array<i64: 2, 1, 64>}, {pipeline_mode = #tpu.pipeline_mode<synchronous>, transform_indices = @transform_13, window_bounds = array<i64: 2, 64, 32>}, {pipeline_mode = #tpu.pipeline_mode<synchronous>, transform_indices = @transform_14, window_bounds = array<i64: 2, 1, 32>}, {pipeline_mode = #tpu.pipeline_mode<synchronous>, transform_indices = @transform_15, window_bounds = array<i64: 2, 1, 32>}, {pipeline_mode = #tpu.pipeline_mode<synchronous>, transform_indices = @transform_16, window_bounds = array<i64: 2, 1, 32>}, {pipeline_mode = #tpu.pipeline_mode<synchronous>, transform_indices = @transform_17, window_bounds = array<i64: 32, 128>}, {pipeline_mode = #tpu.pipeline_mode<synchronous>, transform_indices = @transform_18, window_bounds = array<i64: 1, 128>}, {pipeline_mode = #tpu.pipeline_mode<synchronous>, transform_indices = @transform_19, window_bounds = array<i64: 16, 128>}]} {
    %0 = tpu.iota {dimensions = array<i32: 1>} : vector<16x50xi32>
    %c0 = arith.constant 0 : index
    %c0_0 = arith.constant 0 : index
    %1 = vector.load %arg1[%c0, %c0_0] : memref<16x1xi32, #tpu.memory_space<vmem>>, vector<16x1xi32>
    %2 = vector.broadcast %1 : vector<16x1xi32> to vector<16x50xi32>
    %3 = arith.cmpi eq, %0, %2 : vector<16x50xi32>
    %4 = arith.extui %3 : vector<16x50xi1> to vector<16x50xi32>
    %5 = arith.sitofp %4 : vector<16x50xi32> to vector<16x50xf32>
    %c0_1 = arith.constant 0 : index
    %c0_2 = arith.constant 0 : index
    %6 = vector.load %arg2[%c0_1, %c0_2] : memref<50x32xf32, #tpu.memory_space<vmem>>, vector<50x32xf32>
    %cst = arith.constant dense<0.000000e+00> : vector<16x32xf32>
    %7 = tpu.matmul %5, %6, %cst {dimension_numbers = #tpu.dot_dimension_numbers<[1], [0], [0], [1], [0, 0, 1, 1], [], []>} : vector<16x50xf32>, vector<50x32xf32>, vector<16x32xf32> -> vector<16x32xf32>
    %c0_3 = arith.constant 0 : index
    %c0_4 = arith.constant 0 : index
    %8 = vector.load %arg3[%c0_3, %c0_4] : memref<16x32xf32, #tpu.memory_space<vmem>>, vector<16x32xf32>
    %9 = arith.addf %7, %8 : vector<16x32xf32>
    %c0_5 = arith.constant 0 : index
    %c0_6 = arith.constant 0 : index
    %10 = vector.load %arg4[%c0_5, %c0_6] : memref<1x32xf32, #tpu.memory_space<vmem>>, vector<1x32xf32>
    %c0_7 = arith.constant 0 : index
    %c0_8 = arith.constant 0 : index
    %11 = vector.load %arg5[%c0_7, %c0_8] : memref<1x32xf32, #tpu.memory_space<vmem>>, vector<1x32xf32>
    %cst_9 = arith.constant dense<0.000000e+00> : vector<16xf32>
    %12 = vector.multi_reduction <add>, %9, %cst_9 [1] : vector<16x32xf32> to vector<16xf32>
    %13 = vector.shape_cast %12 : vector<16xf32> to vector<16x1xf32>
    %cst_10 = arith.constant 3.200000e+01 : f32
    %14 = vector.broadcast %cst_10 : f32 to vector<16x1xf32>
    %15 = arith.divf %13, %14 : vector<16x1xf32>
    %16 = vector.broadcast %15 : vector<16x1xf32> to vector<16x32xf32>
    %17 = arith.subf %9, %16 : vector<16x32xf32>
    %18 = arith.mulf %17, %17 : vector<16x32xf32>
    %cst_11 = arith.constant dense<0.000000e+00> : vector<16xf32>
    %19 = vector.multi_reduction <add>, %18, %cst_11 [1] : vector<16x32xf32> to vector<16xf32>
    %20 = vector.shape_cast %19 : vector<16xf32> to vector<16x1xf32>
    %cst_12 = arith.constant 3.200000e+01 : f32
    %21 = vector.broadcast %cst_12 : f32 to vector<16x1xf32>
    %22 = arith.divf %20, %21 : vector<16x1xf32>
    %23 = vector.broadcast %15 : vector<16x1xf32> to vector<16x32xf32>
    %24 = arith.subf %9, %23 : vector<16x32xf32>
    %cst_13 = arith.constant 9.99999996E-13 : f32
    %25 = vector.broadcast %cst_13 : f32 to vector<16x1xf32>
    %26 = arith.addf %22, %25 : vector<16x1xf32>
    %27 = math.rsqrt %26 : vector<16x1xf32>
    %28 = vector.broadcast %27 : vector<16x1xf32> to vector<16x32xf32>
    %29 = arith.mulf %24, %28 : vector<16x32xf32>
    %30 = vector.broadcast %10 : vector<1x32xf32> to vector<16x32xf32>
    %31 = arith.mulf %29, %30 : vector<16x32xf32>
    %32 = vector.broadcast %11 : vector<1x32xf32> to vector<16x32xf32>
    %33 = arith.addf %31, %32 : vector<16x32xf32>
    %c0_14 = arith.constant 0 : index
    %c0_15 = arith.constant 0 : index
    %c0_16 = arith.constant 0 : index
    %34 = vector.load %arg6[%c0_14, %c0_15, %c0_16] : memref<2x32x96xf32, #tpu.memory_space<vmem>>, vector<1x32x96xf32>
    %35 = vector.shape_cast %34 : vector<1x32x96xf32> to vector<32x96xf32>
    %cst_17 = arith.constant dense<0.000000e+00> : vector<16x96xf32>
    %36 = tpu.matmul %33, %35, %cst_17 {dimension_numbers = #tpu.dot_dimension_numbers<[1], [0], [0], [1], [0, 0, 1, 1], [], []>} : vector<16x32xf32>, vector<32x96xf32>, vector<16x96xf32> -> vector<16x96xf32>
    %c0_18 = arith.constant 0 : index
    %c0_19 = arith.constant 0 : index
    %c0_20 = arith.constant 0 : index
    %37 = vector.load %arg7[%c0_18, %c0_19, %c0_20] : memref<2x1x96xf32, #tpu.memory_space<vmem>>, vector<1x1x96xf32>
    %38 = vector.shape_cast %37 : vector<1x1x96xf32> to vector<1x96xf32>
    %39 = vector.broadcast %38 : vector<1x96xf32> to vector<16x96xf32>
    %40 = arith.addf %36, %39 : vector<16x96xf32>
    %41 = vector.extract_strided_slice %40 {offsets = [0, 0], sizes = [16, 32], strides = [1, 1]} : vector<16x96xf32> to vector<16x32xf32>
    %42 = vector.extract_strided_slice %40 {offsets = [0, 32], sizes = [16, 32], strides = [1, 1]} : vector<16x96xf32> to vector<16x32xf32>
    %43 = vector.extract_strided_slice %40 {offsets = [0, 64], sizes = [16, 32], strides = [1, 1]} : vector<16x96xf32> to vector<16x32xf32>
    %44 = vector.extract_strided_slice %41 {offsets = [0, 0], sizes = [8, 8], strides = [1, 1]} : vector<16x32xf32> to vector<8x8xf32>
    %45 = vector.extract_strided_slice %42 {offsets = [0, 0], sizes = [8, 8], strides = [1, 1]} : vector<16x32xf32> to vector<8x8xf32>
    %46 = vector.extract_strided_slice %43 {offsets = [0, 0], sizes = [8, 8], strides = [1, 1]} : vector<16x32xf32> to vector<8x8xf32>
    %cst_21 = arith.constant dense<0.000000e+00> : vector<8x8xf32>
    %47 = tpu.matmul %44, %45, %cst_21 {dimension_numbers = #tpu.dot_dimension_numbers<[1], [1], [0], [0], [0, 0, 1, 0], [], []>} : vector<8x8xf32>, vector<8x8xf32>, vector<8x8xf32> -> vector<8x8xf32>
    %cst_22 = arith.constant 0.353553385 : f32
    %48 = vector.broadcast %cst_22 : f32 to vector<8x8xf32>
    %49 = arith.mulf %47, %48 : vector<8x8xf32>
    %cst_23 = arith.constant dense<0xFF800000> : vector<8xf32>
    %50 = vector.multi_reduction <maximumf>, %49, %cst_23 [1] : vector<8x8xf32> to vector<8xf32>
    %51 = vector.shape_cast %50 : vector<8xf32> to vector<8x1xf32>
    %52 = vector.broadcast %51 : vector<8x1xf32> to vector<8x8xf32>
    %53 = arith.subf %49, %52 : vector<8x8xf32>
    %54 = math.exp %53 : vector<8x8xf32>
    %cst_24 = arith.constant dense<0.000000e+00> : vector<8xf32>
    %55 = vector.multi_reduction <add>, %54, %cst_24 [1] : vector<8x8xf32> to vector<8xf32>
    %56 = vector.shape_cast %55 : vector<8xf32> to vector<8x1xf32>
    %57 = tpu.reciprocal %56 {approx = true} : vector<8x1xf32> -> vector<8x1xf32>
    %58 = vector.broadcast %57 : vector<8x1xf32> to vector<8x8xf32>
    %59 = arith.mulf %54, %58 : vector<8x8xf32>
    %cst_25 = arith.constant dense<0.000000e+00> : vector<8x8xf32>
    %60 = tpu.matmul %59, %46, %cst_25 {dimension_numbers = #tpu.dot_dimension_numbers<[1], [0], [0], [1], [0, 0, 1, 1], [], []>} : vector<8x8xf32>, vector<8x8xf32>, vector<8x8xf32> -> vector<8x8xf32>
    %61 = vector.extract_strided_slice %41 {offsets = [0, 8], sizes = [8, 8], strides = [1, 1]} : vector<16x32xf32> to vector<8x8xf32>
    %62 = vector.extract_strided_slice %42 {offsets = [0, 8], sizes = [8, 8], strides = [1, 1]} : vector<16x32xf32> to vector<8x8xf32>
    %63 = vector.extract_strided_slice %43 {offsets = [0, 8], sizes = [8, 8], strides = [1, 1]} : vector<16x32xf32> to vector<8x8xf32>
    %cst_26 = arith.constant dense<0.000000e+00> : vector<8x8xf32>
    %64 = tpu.matmul %61, %62, %cst_26 {dimension_numbers = #tpu.dot_dimension_numbers<[1], [1], [0], [0], [0, 0, 1, 0], [], []>} : vector<8x8xf32>, vector<8x8xf32>, vector<8x8xf32> -> vector<8x8xf32>
    %cst_27 = arith.constant 0.353553385 : f32
    %65 = vector.broadcast %cst_27 : f32 to vector<8x8xf32>
    %66 = arith.mulf %64, %65 : vector<8x8xf32>
    %cst_28 = arith.constant dense<0xFF800000> : vector<8xf32>
    %67 = vector.multi_reduction <maximumf>, %66, %cst_28 [1] : vector<8x8xf32> to vector<8xf32>
    %68 = vector.shape_cast %67 : vector<8xf32> to vector<8x1xf32>
    %69 = vector.broadcast %68 : vector<8x1xf32> to vector<8x8xf32>
    %70 = arith.subf %66, %69 : vector<8x8xf32>
    %71 = math.exp %70 : vector<8x8xf32>
    %cst_29 = arith.constant dense<0.000000e+00> : vector<8xf32>
    %72 = vector.multi_reduction <add>, %71, %cst_29 [1] : vector<8x8xf32> to vector<8xf32>
    %73 = vector.shape_cast %72 : vector<8xf32> to vector<8x1xf32>
    %74 = tpu.reciprocal %73 {approx = true} : vector<8x1xf32> -> vector<8x1xf32>
    %75 = vector.broadcast %74 : vector<8x1xf32> to vector<8x8xf32>
    %76 = arith.mulf %71, %75 : vector<8x8xf32>
    %cst_30 = arith.constant dense<0.000000e+00> : vector<8x8xf32>
    %77 = tpu.matmul %76, %63, %cst_30 {dimension_numbers = #tpu.dot_dimension_numbers<[1], [0], [0], [1], [0, 0, 1, 1], [], []>} : vector<8x8xf32>, vector<8x8xf32>, vector<8x8xf32> -> vector<8x8xf32>
    %78 = vector.extract_strided_slice %41 {offsets = [0, 16], sizes = [8, 8], strides = [1, 1]} : vector<16x32xf32> to vector<8x8xf32>
    %79 = vector.extract_strided_slice %42 {offsets = [0, 16], sizes = [8, 8], strides = [1, 1]} : vector<16x32xf32> to vector<8x8xf32>
    %80 = vector.extract_strided_slice %43 {offsets = [0, 16], sizes = [8, 8], strides = [1, 1]} : vector<16x32xf32> to vector<8x8xf32>
    %cst_31 = arith.constant dense<0.000000e+00> : vector<8x8xf32>
    %81 = tpu.matmul %78, %79, %cst_31 {dimension_numbers = #tpu.dot_dimension_numbers<[1], [1], [0], [0], [0, 0, 1, 0], [], []>} : vector<8x8xf32>, vector<8x8xf32>, vector<8x8xf32> -> vector<8x8xf32>
    %cst_32 = arith.constant 0.353553385 : f32
    %82 = vector.broadcast %cst_32 : f32 to vector<8x8xf32>
    %83 = arith.mulf %81, %82 : vector<8x8xf32>
    %cst_33 = arith.constant dense<0xFF800000> : vector<8xf32>
    %84 = vector.multi_reduction <maximumf>, %83, %cst_33 [1] : vector<8x8xf32> to vector<8xf32>
    %85 = vector.shape_cast %84 : vector<8xf32> to vector<8x1xf32>
    %86 = vector.broadcast %85 : vector<8x1xf32> to vector<8x8xf32>
    %87 = arith.subf %83, %86 : vector<8x8xf32>
    %88 = math.exp %87 : vector<8x8xf32>
    %cst_34 = arith.constant dense<0.000000e+00> : vector<8xf32>
    %89 = vector.multi_reduction <add>, %88, %cst_34 [1] : vector<8x8xf32> to vector<8xf32>
    %90 = vector.shape_cast %89 : vector<8xf32> to vector<8x1xf32>
    %91 = tpu.reciprocal %90 {approx = true} : vector<8x1xf32> -> vector<8x1xf32>
    %92 = vector.broadcast %91 : vector<8x1xf32> to vector<8x8xf32>
    %93 = arith.mulf %88, %92 : vector<8x8xf32>
    %cst_35 = arith.constant dense<0.000000e+00> : vector<8x8xf32>
    %94 = tpu.matmul %93, %80, %cst_35 {dimension_numbers = #tpu.dot_dimension_numbers<[1], [0], [0], [1], [0, 0, 1, 1], [], []>} : vector<8x8xf32>, vector<8x8xf32>, vector<8x8xf32> -> vector<8x8xf32>
    %95 = vector.extract_strided_slice %41 {offsets = [0, 24], sizes = [8, 8], strides = [1, 1]} : vector<16x32xf32> to vector<8x8xf32>
    %96 = vector.extract_strided_slice %42 {offsets = [0, 24], sizes = [8, 8], strides = [1, 1]} : vector<16x32xf32> to vector<8x8xf32>
    %97 = vector.extract_strided_slice %43 {offsets = [0, 24], sizes = [8, 8], strides = [1, 1]} : vector<16x32xf32> to vector<8x8xf32>
    %cst_36 = arith.constant dense<0.000000e+00> : vector<8x8xf32>
    %98 = tpu.matmul %95, %96, %cst_36 {dimension_numbers = #tpu.dot_dimension_numbers<[1], [1], [0], [0], [0, 0, 1, 0], [], []>} : vector<8x8xf32>, vector<8x8xf32>, vector<8x8xf32> -> vector<8x8xf32>
    %cst_37 = arith.constant 0.353553385 : f32
    %99 = vector.broadcast %cst_37 : f32 to vector<8x8xf32>
    %100 = arith.mulf %98, %99 : vector<8x8xf32>
    %cst_38 = arith.constant dense<0xFF800000> : vector<8xf32>
    %101 = vector.multi_reduction <maximumf>, %100, %cst_38 [1] : vector<8x8xf32> to vector<8xf32>
    %102 = vector.shape_cast %101 : vector<8xf32> to vector<8x1xf32>
    %103 = vector.broadcast %102 : vector<8x1xf32> to vector<8x8xf32>
    %104 = arith.subf %100, %103 : vector<8x8xf32>
    %105 = math.exp %104 : vector<8x8xf32>
    %cst_39 = arith.constant dense<0.000000e+00> : vector<8xf32>
    %106 = vector.multi_reduction <add>, %105, %cst_39 [1] : vector<8x8xf32> to vector<8xf32>
    %107 = vector.shape_cast %106 : vector<8xf32> to vector<8x1xf32>
    %108 = tpu.reciprocal %107 {approx = true} : vector<8x1xf32> -> vector<8x1xf32>
    %109 = vector.broadcast %108 : vector<8x1xf32> to vector<8x8xf32>
    %110 = arith.mulf %105, %109 : vector<8x8xf32>
    %cst_40 = arith.constant dense<0.000000e+00> : vector<8x8xf32>
    %111 = tpu.matmul %110, %97, %cst_40 {dimension_numbers = #tpu.dot_dimension_numbers<[1], [0], [0], [1], [0, 0, 1, 1], [], []>} : vector<8x8xf32>, vector<8x8xf32>, vector<8x8xf32> -> vector<8x8xf32>
    %112 = tpu.concatenate %60, %77, %94, %111 in 1 : vector<8x8xf32>, vector<8x8xf32>, vector<8x8xf32>, vector<8x8xf32> -> vector<8x32xf32>
    %113 = vector.extract_strided_slice %41 {offsets = [8, 0], sizes = [8, 8], strides = [1, 1]} : vector<16x32xf32> to vector<8x8xf32>
    %114 = vector.extract_strided_slice %42 {offsets = [8, 0], sizes = [8, 8], strides = [1, 1]} : vector<16x32xf32> to vector<8x8xf32>
    %115 = vector.extract_strided_slice %43 {offsets = [8, 0], sizes = [8, 8], strides = [1, 1]} : vector<16x32xf32> to vector<8x8xf32>
    %cst_41 = arith.constant dense<0.000000e+00> : vector<8x8xf32>
    %116 = tpu.matmul %113, %114, %cst_41 {dimension_numbers = #tpu.dot_dimension_numbers<[1], [1], [0], [0], [0, 0, 1, 0], [], []>} : vector<8x8xf32>, vector<8x8xf32>, vector<8x8xf32> -> vector<8x8xf32>
    %cst_42 = arith.constant 0.353553385 : f32
    %117 = vector.broadcast %cst_42 : f32 to vector<8x8xf32>
    %118 = arith.mulf %116, %117 : vector<8x8xf32>
    %cst_43 = arith.constant dense<0xFF800000> : vector<8xf32>
    %119 = vector.multi_reduction <maximumf>, %118, %cst_43 [1] : vector<8x8xf32> to vector<8xf32>
    %120 = vector.shape_cast %119 : vector<8xf32> to vector<8x1xf32>
    %121 = vector.broadcast %120 : vector<8x1xf32> to vector<8x8xf32>
    %122 = arith.subf %118, %121 : vector<8x8xf32>
    %123 = math.exp %122 : vector<8x8xf32>
    %cst_44 = arith.constant dense<0.000000e+00> : vector<8xf32>
    %124 = vector.multi_reduction <add>, %123, %cst_44 [1] : vector<8x8xf32> to vector<8xf32>
    %125 = vector.shape_cast %124 : vector<8xf32> to vector<8x1xf32>
    %126 = tpu.reciprocal %125 {approx = true} : vector<8x1xf32> -> vector<8x1xf32>
    %127 = vector.broadcast %126 : vector<8x1xf32> to vector<8x8xf32>
    %128 = arith.mulf %123, %127 : vector<8x8xf32>
    %cst_45 = arith.constant dense<0.000000e+00> : vector<8x8xf32>
    %129 = tpu.matmul %128, %115, %cst_45 {dimension_numbers = #tpu.dot_dimension_numbers<[1], [0], [0], [1], [0, 0, 1, 1], [], []>} : vector<8x8xf32>, vector<8x8xf32>, vector<8x8xf32> -> vector<8x8xf32>
    %130 = vector.extract_strided_slice %41 {offsets = [8, 8], sizes = [8, 8], strides = [1, 1]} : vector<16x32xf32> to vector<8x8xf32>
    %131 = vector.extract_strided_slice %42 {offsets = [8, 8], sizes = [8, 8], strides = [1, 1]} : vector<16x32xf32> to vector<8x8xf32>
    %132 = vector.extract_strided_slice %43 {offsets = [8, 8], sizes = [8, 8], strides = [1, 1]} : vector<16x32xf32> to vector<8x8xf32>
    %cst_46 = arith.constant dense<0.000000e+00> : vector<8x8xf32>
    %133 = tpu.matmul %130, %131, %cst_46 {dimension_numbers = #tpu.dot_dimension_numbers<[1], [1], [0], [0], [0, 0, 1, 0], [], []>} : vector<8x8xf32>, vector<8x8xf32>, vector<8x8xf32> -> vector<8x8xf32>
    %cst_47 = arith.constant 0.353553385 : f32
    %134 = vector.broadcast %cst_47 : f32 to vector<8x8xf32>
    %135 = arith.mulf %133, %134 : vector<8x8xf32>
    %cst_48 = arith.constant dense<0xFF800000> : vector<8xf32>
    %136 = vector.multi_reduction <maximumf>, %135, %cst_48 [1] : vector<8x8xf32> to vector<8xf32>
    %137 = vector.shape_cast %136 : vector<8xf32> to vector<8x1xf32>
    %138 = vector.broadcast %137 : vector<8x1xf32> to vector<8x8xf32>
    %139 = arith.subf %135, %138 : vector<8x8xf32>
    %140 = math.exp %139 : vector<8x8xf32>
    %cst_49 = arith.constant dense<0.000000e+00> : vector<8xf32>
    %141 = vector.multi_reduction <add>, %140, %cst_49 [1] : vector<8x8xf32> to vector<8xf32>
    %142 = vector.shape_cast %141 : vector<8xf32> to vector<8x1xf32>
    %143 = tpu.reciprocal %142 {approx = true} : vector<8x1xf32> -> vector<8x1xf32>
    %144 = vector.broadcast %143 : vector<8x1xf32> to vector<8x8xf32>
    %145 = arith.mulf %140, %144 : vector<8x8xf32>
    %cst_50 = arith.constant dense<0.000000e+00> : vector<8x8xf32>
    %146 = tpu.matmul %145, %132, %cst_50 {dimension_numbers = #tpu.dot_dimension_numbers<[1], [0], [0], [1], [0, 0, 1, 1], [], []>} : vector<8x8xf32>, vector<8x8xf32>, vector<8x8xf32> -> vector<8x8xf32>
    %147 = vector.extract_strided_slice %41 {offsets = [8, 16], sizes = [8, 8], strides = [1, 1]} : vector<16x32xf32> to vector<8x8xf32>
    %148 = vector.extract_strided_slice %42 {offsets = [8, 16], sizes = [8, 8], strides = [1, 1]} : vector<16x32xf32> to vector<8x8xf32>
    %149 = vector.extract_strided_slice %43 {offsets = [8, 16], sizes = [8, 8], strides = [1, 1]} : vector<16x32xf32> to vector<8x8xf32>
    %cst_51 = arith.constant dense<0.000000e+00> : vector<8x8xf32>
    %150 = tpu.matmul %147, %148, %cst_51 {dimension_numbers = #tpu.dot_dimension_numbers<[1], [1], [0], [0], [0, 0, 1, 0], [], []>} : vector<8x8xf32>, vector<8x8xf32>, vector<8x8xf32> -> vector<8x8xf32>
    %cst_52 = arith.constant 0.353553385 : f32
    %151 = vector.broadcast %cst_52 : f32 to vector<8x8xf32>
    %152 = arith.mulf %150, %151 : vector<8x8xf32>
    %cst_53 = arith.constant dense<0xFF800000> : vector<8xf32>
    %153 = vector.multi_reduction <maximumf>, %152, %cst_53 [1] : vector<8x8xf32> to vector<8xf32>
    %154 = vector.shape_cast %153 : vector<8xf32> to vector<8x1xf32>
    %155 = vector.broadcast %154 : vector<8x1xf32> to vector<8x8xf32>
    %156 = arith.subf %152, %155 : vector<8x8xf32>
    %157 = math.exp %156 : vector<8x8xf32>
    %cst_54 = arith.constant dense<0.000000e+00> : vector<8xf32>
    %158 = vector.multi_reduction <add>, %157, %cst_54 [1] : vector<8x8xf32> to vector<8xf32>
    %159 = vector.shape_cast %158 : vector<8xf32> to vector<8x1xf32>
    %160 = tpu.reciprocal %159 {approx = true} : vector<8x1xf32> -> vector<8x1xf32>
    %161 = vector.broadcast %160 : vector<8x1xf32> to vector<8x8xf32>
    %162 = arith.mulf %157, %161 : vector<8x8xf32>
    %cst_55 = arith.constant dense<0.000000e+00> : vector<8x8xf32>
    %163 = tpu.matmul %162, %149, %cst_55 {dimension_numbers = #tpu.dot_dimension_numbers<[1], [0], [0], [1], [0, 0, 1, 1], [], []>} : vector<8x8xf32>, vector<8x8xf32>, vector<8x8xf32> -> vector<8x8xf32>
    %164 = vector.extract_strided_slice %41 {offsets = [8, 24], sizes = [8, 8], strides = [1, 1]} : vector<16x32xf32> to vector<8x8xf32>
    %165 = vector.extract_strided_slice %42 {offsets = [8, 24], sizes = [8, 8], strides = [1, 1]} : vector<16x32xf32> to vector<8x8xf32>
    %166 = vector.extract_strided_slice %43 {offsets = [8, 24], sizes = [8, 8], strides = [1, 1]} : vector<16x32xf32> to vector<8x8xf32>
    %cst_56 = arith.constant dense<0.000000e+00> : vector<8x8xf32>
    %167 = tpu.matmul %164, %165, %cst_56 {dimension_numbers = #tpu.dot_dimension_numbers<[1], [1], [0], [0], [0, 0, 1, 0], [], []>} : vector<8x8xf32>, vector<8x8xf32>, vector<8x8xf32> -> vector<8x8xf32>
    %cst_57 = arith.constant 0.353553385 : f32
    %168 = vector.broadcast %cst_57 : f32 to vector<8x8xf32>
    %169 = arith.mulf %167, %168 : vector<8x8xf32>
    %cst_58 = arith.constant dense<0xFF800000> : vector<8xf32>
    %170 = vector.multi_reduction <maximumf>, %169, %cst_58 [1] : vector<8x8xf32> to vector<8xf32>
    %171 = vector.shape_cast %170 : vector<8xf32> to vector<8x1xf32>
    %172 = vector.broadcast %171 : vector<8x1xf32> to vector<8x8xf32>
    %173 = arith.subf %169, %172 : vector<8x8xf32>
    %174 = math.exp %173 : vector<8x8xf32>
    %cst_59 = arith.constant dense<0.000000e+00> : vector<8xf32>
    %175 = vector.multi_reduction <add>, %174, %cst_59 [1] : vector<8x8xf32> to vector<8xf32>
    %176 = vector.shape_cast %175 : vector<8xf32> to vector<8x1xf32>
    %177 = tpu.reciprocal %176 {approx = true} : vector<8x1xf32> -> vector<8x1xf32>
    %178 = vector.broadcast %177 : vector<8x1xf32> to vector<8x8xf32>
    %179 = arith.mulf %174, %178 : vector<8x8xf32>
    %cst_60 = arith.constant dense<0.000000e+00> : vector<8x8xf32>
    %180 = tpu.matmul %179, %166, %cst_60 {dimension_numbers = #tpu.dot_dimension_numbers<[1], [0], [0], [1], [0, 0, 1, 1], [], []>} : vector<8x8xf32>, vector<8x8xf32>, vector<8x8xf32> -> vector<8x8xf32>
    %181 = tpu.concatenate %129, %146, %163, %180 in 1 : vector<8x8xf32>, vector<8x8xf32>, vector<8x8xf32>, vector<8x8xf32> -> vector<8x32xf32>
    %182 = tpu.concatenate %112, %181 in 0 : vector<8x32xf32>, vector<8x32xf32> -> vector<16x32xf32>
    %c0_61 = arith.constant 0 : index
    %c0_62 = arith.constant 0 : index
    %c0_63 = arith.constant 0 : index
    %183 = vector.load %arg8[%c0_61, %c0_62, %c0_63] : memref<2x32x32xf32, #tpu.memory_space<vmem>>, vector<1x32x32xf32>
    %184 = vector.shape_cast %183 : vector<1x32x32xf32> to vector<32x32xf32>
    %cst_64 = arith.constant dense<0.000000e+00> : vector<16x32xf32>
    %185 = tpu.matmul %182, %184, %cst_64 {dimension_numbers = #tpu.dot_dimension_numbers<[1], [0], [0], [1], [0, 0, 1, 1], [], []>} : vector<16x32xf32>, vector<32x32xf32>, vector<16x32xf32> -> vector<16x32xf32>
    %c0_65 = arith.constant 0 : index
    %c0_66 = arith.constant 0 : index
    %c0_67 = arith.constant 0 : index
    %186 = vector.load %arg9[%c0_65, %c0_66, %c0_67] : memref<2x1x32xf32, #tpu.memory_space<vmem>>, vector<1x1x32xf32>
    %187 = vector.shape_cast %186 : vector<1x1x32xf32> to vector<1x32xf32>
    %188 = vector.broadcast %187 : vector<1x32xf32> to vector<16x32xf32>
    %189 = arith.addf %185, %188 : vector<16x32xf32>
    %190 = arith.addf %189, %33 : vector<16x32xf32>
    %c0_68 = arith.constant 0 : index
    %c0_69 = arith.constant 0 : index
    %c0_70 = arith.constant 0 : index
    %191 = vector.load %arg10[%c0_68, %c0_69, %c0_70] : memref<2x1x32xf32, #tpu.memory_space<vmem>>, vector<1x1x32xf32>
    %192 = vector.shape_cast %191 : vector<1x1x32xf32> to vector<1x32xf32>
    %c0_71 = arith.constant 0 : index
    %c0_72 = arith.constant 0 : index
    %c0_73 = arith.constant 0 : index
    %193 = vector.load %arg11[%c0_71, %c0_72, %c0_73] : memref<2x1x32xf32, #tpu.memory_space<vmem>>, vector<1x1x32xf32>
    %194 = vector.shape_cast %193 : vector<1x1x32xf32> to vector<1x32xf32>
    %cst_74 = arith.constant dense<0.000000e+00> : vector<16xf32>
    %195 = vector.multi_reduction <add>, %190, %cst_74 [1] : vector<16x32xf32> to vector<16xf32>
    %196 = vector.shape_cast %195 : vector<16xf32> to vector<16x1xf32>
    %cst_75 = arith.constant 3.200000e+01 : f32
    %197 = vector.broadcast %cst_75 : f32 to vector<16x1xf32>
    %198 = arith.divf %196, %197 : vector<16x1xf32>
    %199 = vector.broadcast %198 : vector<16x1xf32> to vector<16x32xf32>
    %200 = arith.subf %190, %199 : vector<16x32xf32>
    %201 = arith.mulf %200, %200 : vector<16x32xf32>
    %cst_76 = arith.constant dense<0.000000e+00> : vector<16xf32>
    %202 = vector.multi_reduction <add>, %201, %cst_76 [1] : vector<16x32xf32> to vector<16xf32>
    %203 = vector.shape_cast %202 : vector<16xf32> to vector<16x1xf32>
    %cst_77 = arith.constant 3.200000e+01 : f32
    %204 = vector.broadcast %cst_77 : f32 to vector<16x1xf32>
    %205 = arith.divf %203, %204 : vector<16x1xf32>
    %206 = vector.broadcast %198 : vector<16x1xf32> to vector<16x32xf32>
    %207 = arith.subf %190, %206 : vector<16x32xf32>
    %cst_78 = arith.constant 9.99999996E-13 : f32
    %208 = vector.broadcast %cst_78 : f32 to vector<16x1xf32>
    %209 = arith.addf %205, %208 : vector<16x1xf32>
    %210 = math.rsqrt %209 : vector<16x1xf32>
    %211 = vector.broadcast %210 : vector<16x1xf32> to vector<16x32xf32>
    %212 = arith.mulf %207, %211 : vector<16x32xf32>
    %213 = vector.broadcast %192 : vector<1x32xf32> to vector<16x32xf32>
    %214 = arith.mulf %212, %213 : vector<16x32xf32>
    %215 = vector.broadcast %194 : vector<1x32xf32> to vector<16x32xf32>
    %216 = arith.addf %214, %215 : vector<16x32xf32>
    %c0_79 = arith.constant 0 : index
    %c0_80 = arith.constant 0 : index
    %c0_81 = arith.constant 0 : index
    %217 = vector.load %arg12[%c0_79, %c0_80, %c0_81] : memref<2x32x64xf32, #tpu.memory_space<vmem>>, vector<1x32x64xf32>
    %218 = vector.shape_cast %217 : vector<1x32x64xf32> to vector<32x64xf32>
    %cst_82 = arith.constant dense<0.000000e+00> : vector<16x64xf32>
    %219 = tpu.matmul %216, %218, %cst_82 {dimension_numbers = #tpu.dot_dimension_numbers<[1], [0], [0], [1], [0, 0, 1, 1], [], []>} : vector<16x32xf32>, vector<32x64xf32>, vector<16x64xf32> -> vector<16x64xf32>
    %c0_83 = arith.constant 0 : index
    %c0_84 = arith.constant 0 : index
    %c0_85 = arith.constant 0 : index
    %220 = vector.load %arg13[%c0_83, %c0_84, %c0_85] : memref<2x1x64xf32, #tpu.memory_space<vmem>>, vector<1x1x64xf32>
    %221 = vector.shape_cast %220 : vector<1x1x64xf32> to vector<1x64xf32>
    %222 = vector.broadcast %221 : vector<1x64xf32> to vector<16x64xf32>
    %223 = arith.addf %219, %222 : vector<16x64xf32>
    %cst_86 = arith.constant 5.000000e-01 : f32
    %224 = vector.broadcast %cst_86 : f32 to vector<16x64xf32>
    %225 = arith.mulf %224, %223 : vector<16x64xf32>
    %cst_87 = arith.constant 4.471500e-02 : f32
    %226 = vector.broadcast %cst_87 : f32 to vector<16x64xf32>
    %227 = arith.mulf %226, %223 : vector<16x64xf32>
    %228 = arith.mulf %227, %223 : vector<16x64xf32>
    %229 = arith.mulf %228, %223 : vector<16x64xf32>
    %230 = arith.addf %223, %229 : vector<16x64xf32>
    %cst_88 = arith.constant 0.797884583 : f32
    %231 = vector.broadcast %cst_88 : f32 to vector<16x64xf32>
    %232 = arith.mulf %231, %230 : vector<16x64xf32>
    %233 = math.tanh %232 : vector<16x64xf32>
    %cst_89 = arith.constant 1.000000e+00 : f32
    %234 = vector.broadcast %cst_89 : f32 to vector<16x64xf32>
    %235 = arith.addf %234, %233 : vector<16x64xf32>
    %236 = arith.mulf %225, %235 : vector<16x64xf32>
    %c0_90 = arith.constant 0 : index
    %c0_91 = arith.constant 0 : index
    %c0_92 = arith.constant 0 : index
    %237 = vector.load %arg14[%c0_90, %c0_91, %c0_92] : memref<2x64x32xf32, #tpu.memory_space<vmem>>, vector<1x64x32xf32>
    %238 = vector.shape_cast %237 : vector<1x64x32xf32> to vector<64x32xf32>
    %cst_93 = arith.constant dense<0.000000e+00> : vector<16x32xf32>
    %239 = tpu.matmul %236, %238, %cst_93 {dimension_numbers = #tpu.dot_dimension_numbers<[1], [0], [0], [1], [0, 0, 1, 1], [], []>} : vector<16x64xf32>, vector<64x32xf32>, vector<16x32xf32> -> vector<16x32xf32>
    %c0_94 = arith.constant 0 : index
    %c0_95 = arith.constant 0 : index
    %c0_96 = arith.constant 0 : index
    %240 = vector.load %arg15[%c0_94, %c0_95, %c0_96] : memref<2x1x32xf32, #tpu.memory_space<vmem>>, vector<1x1x32xf32>
    %241 = vector.shape_cast %240 : vector<1x1x32xf32> to vector<1x32xf32>
    %242 = vector.broadcast %241 : vector<1x32xf32> to vector<16x32xf32>
    %243 = arith.addf %239, %242 : vector<16x32xf32>
    %244 = arith.addf %243, %216 : vector<16x32xf32>
    %c0_97 = arith.constant 0 : index
    %c0_98 = arith.constant 0 : index
    %c0_99 = arith.constant 0 : index
    %245 = vector.load %arg16[%c0_97, %c0_98, %c0_99] : memref<2x1x32xf32, #tpu.memory_space<vmem>>, vector<1x1x32xf32>
    %246 = vector.shape_cast %245 : vector<1x1x32xf32> to vector<1x32xf32>
    %c0_100 = arith.constant 0 : index
    %c0_101 = arith.constant 0 : index
    %c0_102 = arith.constant 0 : index
    %247 = vector.load %arg17[%c0_100, %c0_101, %c0_102] : memref<2x1x32xf32, #tpu.memory_space<vmem>>, vector<1x1x32xf32>
    %248 = vector.shape_cast %247 : vector<1x1x32xf32> to vector<1x32xf32>
    %cst_103 = arith.constant dense<0.000000e+00> : vector<16xf32>
    %249 = vector.multi_reduction <add>, %244, %cst_103 [1] : vector<16x32xf32> to vector<16xf32>
    %250 = vector.shape_cast %249 : vector<16xf32> to vector<16x1xf32>
    %cst_104 = arith.constant 3.200000e+01 : f32
    %251 = vector.broadcast %cst_104 : f32 to vector<16x1xf32>
    %252 = arith.divf %250, %251 : vector<16x1xf32>
    %253 = vector.broadcast %252 : vector<16x1xf32> to vector<16x32xf32>
    %254 = arith.subf %244, %253 : vector<16x32xf32>
    %255 = arith.mulf %254, %254 : vector<16x32xf32>
    %cst_105 = arith.constant dense<0.000000e+00> : vector<16xf32>
    %256 = vector.multi_reduction <add>, %255, %cst_105 [1] : vector<16x32xf32> to vector<16xf32>
    %257 = vector.shape_cast %256 : vector<16xf32> to vector<16x1xf32>
    %cst_106 = arith.constant 3.200000e+01 : f32
    %258 = vector.broadcast %cst_106 : f32 to vector<16x1xf32>
    %259 = arith.divf %257, %258 : vector<16x1xf32>
    %260 = vector.broadcast %252 : vector<16x1xf32> to vector<16x32xf32>
    %261 = arith.subf %244, %260 : vector<16x32xf32>
    %cst_107 = arith.constant 9.99999996E-13 : f32
    %262 = vector.broadcast %cst_107 : f32 to vector<16x1xf32>
    %263 = arith.addf %259, %262 : vector<16x1xf32>
    %264 = math.rsqrt %263 : vector<16x1xf32>
    %265 = vector.broadcast %264 : vector<16x1xf32> to vector<16x32xf32>
    %266 = arith.mulf %261, %265 : vector<16x32xf32>
    %267 = vector.broadcast %246 : vector<1x32xf32> to vector<16x32xf32>
    %268 = arith.mulf %266, %267 : vector<16x32xf32>
    %269 = vector.broadcast %248 : vector<1x32xf32> to vector<16x32xf32>
    %270 = arith.addf %268, %269 : vector<16x32xf32>
    %c1 = arith.constant 1 : index
    %c0_108 = arith.constant 0 : index
    %c0_109 = arith.constant 0 : index
    %271 = vector.load %arg6[%c1, %c0_108, %c0_109] : memref<2x32x96xf32, #tpu.memory_space<vmem>>, vector<1x32x96xf32>
    %272 = vector.shape_cast %271 : vector<1x32x96xf32> to vector<32x96xf32>
    %cst_110 = arith.constant dense<0.000000e+00> : vector<16x96xf32>
    %273 = tpu.matmul %270, %272, %cst_110 {dimension_numbers = #tpu.dot_dimension_numbers<[1], [0], [0], [1], [0, 0, 1, 1], [], []>} : vector<16x32xf32>, vector<32x96xf32>, vector<16x96xf32> -> vector<16x96xf32>
    %c1_111 = arith.constant 1 : index
    %c0_112 = arith.constant 0 : index
    %c0_113 = arith.constant 0 : index
    %274 = vector.load %arg7[%c1_111, %c0_112, %c0_113] : memref<2x1x96xf32, #tpu.memory_space<vmem>>, vector<1x1x96xf32>
    %275 = vector.shape_cast %274 : vector<1x1x96xf32> to vector<1x96xf32>
    %276 = vector.broadcast %275 : vector<1x96xf32> to vector<16x96xf32>
    %277 = arith.addf %273, %276 : vector<16x96xf32>
    %278 = vector.extract_strided_slice %277 {offsets = [0, 0], sizes = [16, 32], strides = [1, 1]} : vector<16x96xf32> to vector<16x32xf32>
    %279 = vector.extract_strided_slice %277 {offsets = [0, 32], sizes = [16, 32], strides = [1, 1]} : vector<16x96xf32> to vector<16x32xf32>
    %280 = vector.extract_strided_slice %277 {offsets = [0, 64], sizes = [16, 32], strides = [1, 1]} : vector<16x96xf32> to vector<16x32xf32>
    %281 = vector.extract_strided_slice %278 {offsets = [0, 0], sizes = [8, 8], strides = [1, 1]} : vector<16x32xf32> to vector<8x8xf32>
    %282 = vector.extract_strided_slice %279 {offsets = [0, 0], sizes = [8, 8], strides = [1, 1]} : vector<16x32xf32> to vector<8x8xf32>
    %283 = vector.extract_strided_slice %280 {offsets = [0, 0], sizes = [8, 8], strides = [1, 1]} : vector<16x32xf32> to vector<8x8xf32>
    %cst_114 = arith.constant dense<0.000000e+00> : vector<8x8xf32>
    %284 = tpu.matmul %281, %282, %cst_114 {dimension_numbers = #tpu.dot_dimension_numbers<[1], [1], [0], [0], [0, 0, 1, 0], [], []>} : vector<8x8xf32>, vector<8x8xf32>, vector<8x8xf32> -> vector<8x8xf32>
    %cst_115 = arith.constant 0.353553385 : f32
    %285 = vector.broadcast %cst_115 : f32 to vector<8x8xf32>
    %286 = arith.mulf %284, %285 : vector<8x8xf32>
    %cst_116 = arith.constant dense<0xFF800000> : vector<8xf32>
    %287 = vector.multi_reduction <maximumf>, %286, %cst_116 [1] : vector<8x8xf32> to vector<8xf32>
    %288 = vector.shape_cast %287 : vector<8xf32> to vector<8x1xf32>
    %289 = vector.broadcast %288 : vector<8x1xf32> to vector<8x8xf32>
    %290 = arith.subf %286, %289 : vector<8x8xf32>
    %291 = math.exp %290 : vector<8x8xf32>
    %cst_117 = arith.constant dense<0.000000e+00> : vector<8xf32>
    %292 = vector.multi_reduction <add>, %291, %cst_117 [1] : vector<8x8xf32> to vector<8xf32>
    %293 = vector.shape_cast %292 : vector<8xf32> to vector<8x1xf32>
    %294 = tpu.reciprocal %293 {approx = true} : vector<8x1xf32> -> vector<8x1xf32>
    %295 = vector.broadcast %294 : vector<8x1xf32> to vector<8x8xf32>
    %296 = arith.mulf %291, %295 : vector<8x8xf32>
    %cst_118 = arith.constant dense<0.000000e+00> : vector<8x8xf32>
    %297 = tpu.matmul %296, %283, %cst_118 {dimension_numbers = #tpu.dot_dimension_numbers<[1], [0], [0], [1], [0, 0, 1, 1], [], []>} : vector<8x8xf32>, vector<8x8xf32>, vector<8x8xf32> -> vector<8x8xf32>
    %298 = vector.extract_strided_slice %278 {offsets = [0, 8], sizes = [8, 8], strides = [1, 1]} : vector<16x32xf32> to vector<8x8xf32>
    %299 = vector.extract_strided_slice %279 {offsets = [0, 8], sizes = [8, 8], strides = [1, 1]} : vector<16x32xf32> to vector<8x8xf32>
    %300 = vector.extract_strided_slice %280 {offsets = [0, 8], sizes = [8, 8], strides = [1, 1]} : vector<16x32xf32> to vector<8x8xf32>
    %cst_119 = arith.constant dense<0.000000e+00> : vector<8x8xf32>
    %301 = tpu.matmul %298, %299, %cst_119 {dimension_numbers = #tpu.dot_dimension_numbers<[1], [1], [0], [0], [0, 0, 1, 0], [], []>} : vector<8x8xf32>, vector<8x8xf32>, vector<8x8xf32> -> vector<8x8xf32>
    %cst_120 = arith.constant 0.353553385 : f32
    %302 = vector.broadcast %cst_120 : f32 to vector<8x8xf32>
    %303 = arith.mulf %301, %302 : vector<8x8xf32>
    %cst_121 = arith.constant dense<0xFF800000> : vector<8xf32>
    %304 = vector.multi_reduction <maximumf>, %303, %cst_121 [1] : vector<8x8xf32> to vector<8xf32>
    %305 = vector.shape_cast %304 : vector<8xf32> to vector<8x1xf32>
    %306 = vector.broadcast %305 : vector<8x1xf32> to vector<8x8xf32>
    %307 = arith.subf %303, %306 : vector<8x8xf32>
    %308 = math.exp %307 : vector<8x8xf32>
    %cst_122 = arith.constant dense<0.000000e+00> : vector<8xf32>
    %309 = vector.multi_reduction <add>, %308, %cst_122 [1] : vector<8x8xf32> to vector<8xf32>
    %310 = vector.shape_cast %309 : vector<8xf32> to vector<8x1xf32>
    %311 = tpu.reciprocal %310 {approx = true} : vector<8x1xf32> -> vector<8x1xf32>
    %312 = vector.broadcast %311 : vector<8x1xf32> to vector<8x8xf32>
    %313 = arith.mulf %308, %312 : vector<8x8xf32>
    %cst_123 = arith.constant dense<0.000000e+00> : vector<8x8xf32>
    %314 = tpu.matmul %313, %300, %cst_123 {dimension_numbers = #tpu.dot_dimension_numbers<[1], [0], [0], [1], [0, 0, 1, 1], [], []>} : vector<8x8xf32>, vector<8x8xf32>, vector<8x8xf32> -> vector<8x8xf32>
    %315 = vector.extract_strided_slice %278 {offsets = [0, 16], sizes = [8, 8], strides = [1, 1]} : vector<16x32xf32> to vector<8x8xf32>
    %316 = vector.extract_strided_slice %279 {offsets = [0, 16], sizes = [8, 8], strides = [1, 1]} : vector<16x32xf32> to vector<8x8xf32>
    %317 = vector.extract_strided_slice %280 {offsets = [0, 16], sizes = [8, 8], strides = [1, 1]} : vector<16x32xf32> to vector<8x8xf32>
    %cst_124 = arith.constant dense<0.000000e+00> : vector<8x8xf32>
    %318 = tpu.matmul %315, %316, %cst_124 {dimension_numbers = #tpu.dot_dimension_numbers<[1], [1], [0], [0], [0, 0, 1, 0], [], []>} : vector<8x8xf32>, vector<8x8xf32>, vector<8x8xf32> -> vector<8x8xf32>
    %cst_125 = arith.constant 0.353553385 : f32
    %319 = vector.broadcast %cst_125 : f32 to vector<8x8xf32>
    %320 = arith.mulf %318, %319 : vector<8x8xf32>
    %cst_126 = arith.constant dense<0xFF800000> : vector<8xf32>
    %321 = vector.multi_reduction <maximumf>, %320, %cst_126 [1] : vector<8x8xf32> to vector<8xf32>
    %322 = vector.shape_cast %321 : vector<8xf32> to vector<8x1xf32>
    %323 = vector.broadcast %322 : vector<8x1xf32> to vector<8x8xf32>
    %324 = arith.subf %320, %323 : vector<8x8xf32>
    %325 = math.exp %324 : vector<8x8xf32>
    %cst_127 = arith.constant dense<0.000000e+00> : vector<8xf32>
    %326 = vector.multi_reduction <add>, %325, %cst_127 [1] : vector<8x8xf32> to vector<8xf32>
    %327 = vector.shape_cast %326 : vector<8xf32> to vector<8x1xf32>
    %328 = tpu.reciprocal %327 {approx = true} : vector<8x1xf32> -> vector<8x1xf32>
    %329 = vector.broadcast %328 : vector<8x1xf32> to vector<8x8xf32>
    %330 = arith.mulf %325, %329 : vector<8x8xf32>
    %cst_128 = arith.constant dense<0.000000e+00> : vector<8x8xf32>
    %331 = tpu.matmul %330, %317, %cst_128 {dimension_numbers = #tpu.dot_dimension_numbers<[1], [0], [0], [1], [0, 0, 1, 1], [], []>} : vector<8x8xf32>, vector<8x8xf32>, vector<8x8xf32> -> vector<8x8xf32>
    %332 = vector.extract_strided_slice %278 {offsets = [0, 24], sizes = [8, 8], strides = [1, 1]} : vector<16x32xf32> to vector<8x8xf32>
    %333 = vector.extract_strided_slice %279 {offsets = [0, 24], sizes = [8, 8], strides = [1, 1]} : vector<16x32xf32> to vector<8x8xf32>
    %334 = vector.extract_strided_slice %280 {offsets = [0, 24], sizes = [8, 8], strides = [1, 1]} : vector<16x32xf32> to vector<8x8xf32>
    %cst_129 = arith.constant dense<0.000000e+00> : vector<8x8xf32>
    %335 = tpu.matmul %332, %333, %cst_129 {dimension_numbers = #tpu.dot_dimension_numbers<[1], [1], [0], [0], [0, 0, 1, 0], [], []>} : vector<8x8xf32>, vector<8x8xf32>, vector<8x8xf32> -> vector<8x8xf32>
    %cst_130 = arith.constant 0.353553385 : f32
    %336 = vector.broadcast %cst_130 : f32 to vector<8x8xf32>
    %337 = arith.mulf %335, %336 : vector<8x8xf32>
    %cst_131 = arith.constant dense<0xFF800000> : vector<8xf32>
    %338 = vector.multi_reduction <maximumf>, %337, %cst_131 [1] : vector<8x8xf32> to vector<8xf32>
    %339 = vector.shape_cast %338 : vector<8xf32> to vector<8x1xf32>
    %340 = vector.broadcast %339 : vector<8x1xf32> to vector<8x8xf32>
    %341 = arith.subf %337, %340 : vector<8x8xf32>
    %342 = math.exp %341 : vector<8x8xf32>
    %cst_132 = arith.constant dense<0.000000e+00> : vector<8xf32>
    %343 = vector.multi_reduction <add>, %342, %cst_132 [1] : vector<8x8xf32> to vector<8xf32>
    %344 = vector.shape_cast %343 : vector<8xf32> to vector<8x1xf32>
    %345 = tpu.reciprocal %344 {approx = true} : vector<8x1xf32> -> vector<8x1xf32>
    %346 = vector.broadcast %345 : vector<8x1xf32> to vector<8x8xf32>
    %347 = arith.mulf %342, %346 : vector<8x8xf32>
    %cst_133 = arith.constant dense<0.000000e+00> : vector<8x8xf32>
    %348 = tpu.matmul %347, %334, %cst_133 {dimension_numbers = #tpu.dot_dimension_numbers<[1], [0], [0], [1], [0, 0, 1, 1], [], []>} : vector<8x8xf32>, vector<8x8xf32>, vector<8x8xf32> -> vector<8x8xf32>
    %349 = tpu.concatenate %297, %314, %331, %348 in 1 : vector<8x8xf32>, vector<8x8xf32>, vector<8x8xf32>, vector<8x8xf32> -> vector<8x32xf32>
    %350 = vector.extract_strided_slice %278 {offsets = [8, 0], sizes = [8, 8], strides = [1, 1]} : vector<16x32xf32> to vector<8x8xf32>
    %351 = vector.extract_strided_slice %279 {offsets = [8, 0], sizes = [8, 8], strides = [1, 1]} : vector<16x32xf32> to vector<8x8xf32>
    %352 = vector.extract_strided_slice %280 {offsets = [8, 0], sizes = [8, 8], strides = [1, 1]} : vector<16x32xf32> to vector<8x8xf32>
    %cst_134 = arith.constant dense<0.000000e+00> : vector<8x8xf32>
    %353 = tpu.matmul %350, %351, %cst_134 {dimension_numbers = #tpu.dot_dimension_numbers<[1], [1], [0], [0], [0, 0, 1, 0], [], []>} : vector<8x8xf32>, vector<8x8xf32>, vector<8x8xf32> -> vector<8x8xf32>
    %cst_135 = arith.constant 0.353553385 : f32
    %354 = vector.broadcast %cst_135 : f32 to vector<8x8xf32>
    %355 = arith.mulf %353, %354 : vector<8x8xf32>
    %cst_136 = arith.constant dense<0xFF800000> : vector<8xf32>
    %356 = vector.multi_reduction <maximumf>, %355, %cst_136 [1] : vector<8x8xf32> to vector<8xf32>
    %357 = vector.shape_cast %356 : vector<8xf32> to vector<8x1xf32>
    %358 = vector.broadcast %357 : vector<8x1xf32> to vector<8x8xf32>
    %359 = arith.subf %355, %358 : vector<8x8xf32>
    %360 = math.exp %359 : vector<8x8xf32>
    %cst_137 = arith.constant dense<0.000000e+00> : vector<8xf32>
    %361 = vector.multi_reduction <add>, %360, %cst_137 [1] : vector<8x8xf32> to vector<8xf32>
    %362 = vector.shape_cast %361 : vector<8xf32> to vector<8x1xf32>
    %363 = tpu.reciprocal %362 {approx = true} : vector<8x1xf32> -> vector<8x1xf32>
    %364 = vector.broadcast %363 : vector<8x1xf32> to vector<8x8xf32>
    %365 = arith.mulf %360, %364 : vector<8x8xf32>
    %cst_138 = arith.constant dense<0.000000e+00> : vector<8x8xf32>
    %366 = tpu.matmul %365, %352, %cst_138 {dimension_numbers = #tpu.dot_dimension_numbers<[1], [0], [0], [1], [0, 0, 1, 1], [], []>} : vector<8x8xf32>, vector<8x8xf32>, vector<8x8xf32> -> vector<8x8xf32>
    %367 = vector.extract_strided_slice %278 {offsets = [8, 8], sizes = [8, 8], strides = [1, 1]} : vector<16x32xf32> to vector<8x8xf32>
    %368 = vector.extract_strided_slice %279 {offsets = [8, 8], sizes = [8, 8], strides = [1, 1]} : vector<16x32xf32> to vector<8x8xf32>
    %369 = vector.extract_strided_slice %280 {offsets = [8, 8], sizes = [8, 8], strides = [1, 1]} : vector<16x32xf32> to vector<8x8xf32>
    %cst_139 = arith.constant dense<0.000000e+00> : vector<8x8xf32>
    %370 = tpu.matmul %367, %368, %cst_139 {dimension_numbers = #tpu.dot_dimension_numbers<[1], [1], [0], [0], [0, 0, 1, 0], [], []>} : vector<8x8xf32>, vector<8x8xf32>, vector<8x8xf32> -> vector<8x8xf32>
    %cst_140 = arith.constant 0.353553385 : f32
    %371 = vector.broadcast %cst_140 : f32 to vector<8x8xf32>
    %372 = arith.mulf %370, %371 : vector<8x8xf32>
    %cst_141 = arith.constant dense<0xFF800000> : vector<8xf32>
    %373 = vector.multi_reduction <maximumf>, %372, %cst_141 [1] : vector<8x8xf32> to vector<8xf32>
    %374 = vector.shape_cast %373 : vector<8xf32> to vector<8x1xf32>
    %375 = vector.broadcast %374 : vector<8x1xf32> to vector<8x8xf32>
    %376 = arith.subf %372, %375 : vector<8x8xf32>
    %377 = math.exp %376 : vector<8x8xf32>
    %cst_142 = arith.constant dense<0.000000e+00> : vector<8xf32>
    %378 = vector.multi_reduction <add>, %377, %cst_142 [1] : vector<8x8xf32> to vector<8xf32>
    %379 = vector.shape_cast %378 : vector<8xf32> to vector<8x1xf32>
    %380 = tpu.reciprocal %379 {approx = true} : vector<8x1xf32> -> vector<8x1xf32>
    %381 = vector.broadcast %380 : vector<8x1xf32> to vector<8x8xf32>
    %382 = arith.mulf %377, %381 : vector<8x8xf32>
    %cst_143 = arith.constant dense<0.000000e+00> : vector<8x8xf32>
    %383 = tpu.matmul %382, %369, %cst_143 {dimension_numbers = #tpu.dot_dimension_numbers<[1], [0], [0], [1], [0, 0, 1, 1], [], []>} : vector<8x8xf32>, vector<8x8xf32>, vector<8x8xf32> -> vector<8x8xf32>
    %384 = vector.extract_strided_slice %278 {offsets = [8, 16], sizes = [8, 8], strides = [1, 1]} : vector<16x32xf32> to vector<8x8xf32>
    %385 = vector.extract_strided_slice %279 {offsets = [8, 16], sizes = [8, 8], strides = [1, 1]} : vector<16x32xf32> to vector<8x8xf32>
    %386 = vector.extract_strided_slice %280 {offsets = [8, 16], sizes = [8, 8], strides = [1, 1]} : vector<16x32xf32> to vector<8x8xf32>
    %cst_144 = arith.constant dense<0.000000e+00> : vector<8x8xf32>
    %387 = tpu.matmul %384, %385, %cst_144 {dimension_numbers = #tpu.dot_dimension_numbers<[1], [1], [0], [0], [0, 0, 1, 0], [], []>} : vector<8x8xf32>, vector<8x8xf32>, vector<8x8xf32> -> vector<8x8xf32>
    %cst_145 = arith.constant 0.353553385 : f32
    %388 = vector.broadcast %cst_145 : f32 to vector<8x8xf32>
    %389 = arith.mulf %387, %388 : vector<8x8xf32>
    %cst_146 = arith.constant dense<0xFF800000> : vector<8xf32>
    %390 = vector.multi_reduction <maximumf>, %389, %cst_146 [1] : vector<8x8xf32> to vector<8xf32>
    %391 = vector.shape_cast %390 : vector<8xf32> to vector<8x1xf32>
    %392 = vector.broadcast %391 : vector<8x1xf32> to vector<8x8xf32>
    %393 = arith.subf %389, %392 : vector<8x8xf32>
    %394 = math.exp %393 : vector<8x8xf32>
    %cst_147 = arith.constant dense<0.000000e+00> : vector<8xf32>
    %395 = vector.multi_reduction <add>, %394, %cst_147 [1] : vector<8x8xf32> to vector<8xf32>
    %396 = vector.shape_cast %395 : vector<8xf32> to vector<8x1xf32>
    %397 = tpu.reciprocal %396 {approx = true} : vector<8x1xf32> -> vector<8x1xf32>
    %398 = vector.broadcast %397 : vector<8x1xf32> to vector<8x8xf32>
    %399 = arith.mulf %394, %398 : vector<8x8xf32>
    %cst_148 = arith.constant dense<0.000000e+00> : vector<8x8xf32>
    %400 = tpu.matmul %399, %386, %cst_148 {dimension_numbers = #tpu.dot_dimension_numbers<[1], [0], [0], [1], [0, 0, 1, 1], [], []>} : vector<8x8xf32>, vector<8x8xf32>, vector<8x8xf32> -> vector<8x8xf32>
    %401 = vector.extract_strided_slice %278 {offsets = [8, 24], sizes = [8, 8], strides = [1, 1]} : vector<16x32xf32> to vector<8x8xf32>
    %402 = vector.extract_strided_slice %279 {offsets = [8, 24], sizes = [8, 8], strides = [1, 1]} : vector<16x32xf32> to vector<8x8xf32>
    %403 = vector.extract_strided_slice %280 {offsets = [8, 24], sizes = [8, 8], strides = [1, 1]} : vector<16x32xf32> to vector<8x8xf32>
    %cst_149 = arith.constant dense<0.000000e+00> : vector<8x8xf32>
    %404 = tpu.matmul %401, %402, %cst_149 {dimension_numbers = #tpu.dot_dimension_numbers<[1], [1], [0], [0], [0, 0, 1, 0], [], []>} : vector<8x8xf32>, vector<8x8xf32>, vector<8x8xf32> -> vector<8x8xf32>
    %cst_150 = arith.constant 0.353553385 : f32
    %405 = vector.broadcast %cst_150 : f32 to vector<8x8xf32>
    %406 = arith.mulf %404, %405 : vector<8x8xf32>
    %cst_151 = arith.constant dense<0xFF800000> : vector<8xf32>
    %407 = vector.multi_reduction <maximumf>, %406, %cst_151 [1] : vector<8x8xf32> to vector<8xf32>
    %408 = vector.shape_cast %407 : vector<8xf32> to vector<8x1xf32>
    %409 = vector.broadcast %408 : vector<8x1xf32> to vector<8x8xf32>
    %410 = arith.subf %406, %409 : vector<8x8xf32>
    %411 = math.exp %410 : vector<8x8xf32>
    %cst_152 = arith.constant dense<0.000000e+00> : vector<8xf32>
    %412 = vector.multi_reduction <add>, %411, %cst_152 [1] : vector<8x8xf32> to vector<8xf32>
    %413 = vector.shape_cast %412 : vector<8xf32> to vector<8x1xf32>
    %414 = tpu.reciprocal %413 {approx = true} : vector<8x1xf32> -> vector<8x1xf32>
    %415 = vector.broadcast %414 : vector<8x1xf32> to vector<8x8xf32>
    %416 = arith.mulf %411, %415 : vector<8x8xf32>
    %cst_153 = arith.constant dense<0.000000e+00> : vector<8x8xf32>
    %417 = tpu.matmul %416, %403, %cst_153 {dimension_numbers = #tpu.dot_dimension_numbers<[1], [0], [0], [1], [0, 0, 1, 1], [], []>} : vector<8x8xf32>, vector<8x8xf32>, vector<8x8xf32> -> vector<8x8xf32>
    %418 = tpu.concatenate %366, %383, %400, %417 in 1 : vector<8x8xf32>, vector<8x8xf32>, vector<8x8xf32>, vector<8x8xf32> -> vector<8x32xf32>
    %419 = tpu.concatenate %349, %418 in 0 : vector<8x32xf32>, vector<8x32xf32> -> vector<16x32xf32>
    %c1_154 = arith.constant 1 : index
    %c0_155 = arith.constant 0 : index
    %c0_156 = arith.constant 0 : index
    %420 = vector.load %arg8[%c1_154, %c0_155, %c0_156] : memref<2x32x32xf32, #tpu.memory_space<vmem>>, vector<1x32x32xf32>
    %421 = vector.shape_cast %420 : vector<1x32x32xf32> to vector<32x32xf32>
    %cst_157 = arith.constant dense<0.000000e+00> : vector<16x32xf32>
    %422 = tpu.matmul %419, %421, %cst_157 {dimension_numbers = #tpu.dot_dimension_numbers<[1], [0], [0], [1], [0, 0, 1, 1], [], []>} : vector<16x32xf32>, vector<32x32xf32>, vector<16x32xf32> -> vector<16x32xf32>
    %c1_158 = arith.constant 1 : index
    %c0_159 = arith.constant 0 : index
    %c0_160 = arith.constant 0 : index
    %423 = vector.load %arg9[%c1_158, %c0_159, %c0_160] : memref<2x1x32xf32, #tpu.memory_space<vmem>>, vector<1x1x32xf32>
    %424 = vector.shape_cast %423 : vector<1x1x32xf32> to vector<1x32xf32>
    %425 = vector.broadcast %424 : vector<1x32xf32> to vector<16x32xf32>
    %426 = arith.addf %422, %425 : vector<16x32xf32>
    %427 = arith.addf %426, %270 : vector<16x32xf32>
    %c1_161 = arith.constant 1 : index
    %c0_162 = arith.constant 0 : index
    %c0_163 = arith.constant 0 : index
    %428 = vector.load %arg10[%c1_161, %c0_162, %c0_163] : memref<2x1x32xf32, #tpu.memory_space<vmem>>, vector<1x1x32xf32>
    %429 = vector.shape_cast %428 : vector<1x1x32xf32> to vector<1x32xf32>
    %c1_164 = arith.constant 1 : index
    %c0_165 = arith.constant 0 : index
    %c0_166 = arith.constant 0 : index
    %430 = vector.load %arg11[%c1_164, %c0_165, %c0_166] : memref<2x1x32xf32, #tpu.memory_space<vmem>>, vector<1x1x32xf32>
    %431 = vector.shape_cast %430 : vector<1x1x32xf32> to vector<1x32xf32>
    %cst_167 = arith.constant dense<0.000000e+00> : vector<16xf32>
    %432 = vector.multi_reduction <add>, %427, %cst_167 [1] : vector<16x32xf32> to vector<16xf32>
    %433 = vector.shape_cast %432 : vector<16xf32> to vector<16x1xf32>
    %cst_168 = arith.constant 3.200000e+01 : f32
    %434 = vector.broadcast %cst_168 : f32 to vector<16x1xf32>
    %435 = arith.divf %433, %434 : vector<16x1xf32>
    %436 = vector.broadcast %435 : vector<16x1xf32> to vector<16x32xf32>
    %437 = arith.subf %427, %436 : vector<16x32xf32>
    %438 = arith.mulf %437, %437 : vector<16x32xf32>
    %cst_169 = arith.constant dense<0.000000e+00> : vector<16xf32>
    %439 = vector.multi_reduction <add>, %438, %cst_169 [1] : vector<16x32xf32> to vector<16xf32>
    %440 = vector.shape_cast %439 : vector<16xf32> to vector<16x1xf32>
    %cst_170 = arith.constant 3.200000e+01 : f32
    %441 = vector.broadcast %cst_170 : f32 to vector<16x1xf32>
    %442 = arith.divf %440, %441 : vector<16x1xf32>
    %443 = vector.broadcast %435 : vector<16x1xf32> to vector<16x32xf32>
    %444 = arith.subf %427, %443 : vector<16x32xf32>
    %cst_171 = arith.constant 9.99999996E-13 : f32
    %445 = vector.broadcast %cst_171 : f32 to vector<16x1xf32>
    %446 = arith.addf %442, %445 : vector<16x1xf32>
    %447 = math.rsqrt %446 : vector<16x1xf32>
    %448 = vector.broadcast %447 : vector<16x1xf32> to vector<16x32xf32>
    %449 = arith.mulf %444, %448 : vector<16x32xf32>
    %450 = vector.broadcast %429 : vector<1x32xf32> to vector<16x32xf32>
    %451 = arith.mulf %449, %450 : vector<16x32xf32>
    %452 = vector.broadcast %431 : vector<1x32xf32> to vector<16x32xf32>
    %453 = arith.addf %451, %452 : vector<16x32xf32>
    %c1_172 = arith.constant 1 : index
    %c0_173 = arith.constant 0 : index
    %c0_174 = arith.constant 0 : index
    %454 = vector.load %arg12[%c1_172, %c0_173, %c0_174] : memref<2x32x64xf32, #tpu.memory_space<vmem>>, vector<1x32x64xf32>
    %455 = vector.shape_cast %454 : vector<1x32x64xf32> to vector<32x64xf32>
    %cst_175 = arith.constant dense<0.000000e+00> : vector<16x64xf32>
    %456 = tpu.matmul %453, %455, %cst_175 {dimension_numbers = #tpu.dot_dimension_numbers<[1], [0], [0], [1], [0, 0, 1, 1], [], []>} : vector<16x32xf32>, vector<32x64xf32>, vector<16x64xf32> -> vector<16x64xf32>
    %c1_176 = arith.constant 1 : index
    %c0_177 = arith.constant 0 : index
    %c0_178 = arith.constant 0 : index
    %457 = vector.load %arg13[%c1_176, %c0_177, %c0_178] : memref<2x1x64xf32, #tpu.memory_space<vmem>>, vector<1x1x64xf32>
    %458 = vector.shape_cast %457 : vector<1x1x64xf32> to vector<1x64xf32>
    %459 = vector.broadcast %458 : vector<1x64xf32> to vector<16x64xf32>
    %460 = arith.addf %456, %459 : vector<16x64xf32>
    %cst_179 = arith.constant 5.000000e-01 : f32
    %461 = vector.broadcast %cst_179 : f32 to vector<16x64xf32>
    %462 = arith.mulf %461, %460 : vector<16x64xf32>
    %cst_180 = arith.constant 4.471500e-02 : f32
    %463 = vector.broadcast %cst_180 : f32 to vector<16x64xf32>
    %464 = arith.mulf %463, %460 : vector<16x64xf32>
    %465 = arith.mulf %464, %460 : vector<16x64xf32>
    %466 = arith.mulf %465, %460 : vector<16x64xf32>
    %467 = arith.addf %460, %466 : vector<16x64xf32>
    %cst_181 = arith.constant 0.797884583 : f32
    %468 = vector.broadcast %cst_181 : f32 to vector<16x64xf32>
    %469 = arith.mulf %468, %467 : vector<16x64xf32>
    %470 = math.tanh %469 : vector<16x64xf32>
    %cst_182 = arith.constant 1.000000e+00 : f32
    %471 = vector.broadcast %cst_182 : f32 to vector<16x64xf32>
    %472 = arith.addf %471, %470 : vector<16x64xf32>
    %473 = arith.mulf %462, %472 : vector<16x64xf32>
    %c1_183 = arith.constant 1 : index
    %c0_184 = arith.constant 0 : index
    %c0_185 = arith.constant 0 : index
    %474 = vector.load %arg14[%c1_183, %c0_184, %c0_185] : memref<2x64x32xf32, #tpu.memory_space<vmem>>, vector<1x64x32xf32>
    %475 = vector.shape_cast %474 : vector<1x64x32xf32> to vector<64x32xf32>
    %cst_186 = arith.constant dense<0.000000e+00> : vector<16x32xf32>
    %476 = tpu.matmul %473, %475, %cst_186 {dimension_numbers = #tpu.dot_dimension_numbers<[1], [0], [0], [1], [0, 0, 1, 1], [], []>} : vector<16x64xf32>, vector<64x32xf32>, vector<16x32xf32> -> vector<16x32xf32>
    %c1_187 = arith.constant 1 : index
    %c0_188 = arith.constant 0 : index
    %c0_189 = arith.constant 0 : index
    %477 = vector.load %arg15[%c1_187, %c0_188, %c0_189] : memref<2x1x32xf32, #tpu.memory_space<vmem>>, vector<1x1x32xf32>
    %478 = vector.shape_cast %477 : vector<1x1x32xf32> to vector<1x32xf32>
    %479 = vector.broadcast %478 : vector<1x32xf32> to vector<16x32xf32>
    %480 = arith.addf %476, %479 : vector<16x32xf32>
    %481 = arith.addf %480, %453 : vector<16x32xf32>
    %c1_190 = arith.constant 1 : index
    %c0_191 = arith.constant 0 : index
    %c0_192 = arith.constant 0 : index
    %482 = vector.load %arg16[%c1_190, %c0_191, %c0_192] : memref<2x1x32xf32, #tpu.memory_space<vmem>>, vector<1x1x32xf32>
    %483 = vector.shape_cast %482 : vector<1x1x32xf32> to vector<1x32xf32>
    %c1_193 = arith.constant 1 : index
    %c0_194 = arith.constant 0 : index
    %c0_195 = arith.constant 0 : index
    %484 = vector.load %arg17[%c1_193, %c0_194, %c0_195] : memref<2x1x32xf32, #tpu.memory_space<vmem>>, vector<1x1x32xf32>
    %485 = vector.shape_cast %484 : vector<1x1x32xf32> to vector<1x32xf32>
    %cst_196 = arith.constant dense<0.000000e+00> : vector<16xf32>
    %486 = vector.multi_reduction <add>, %481, %cst_196 [1] : vector<16x32xf32> to vector<16xf32>
    %487 = vector.shape_cast %486 : vector<16xf32> to vector<16x1xf32>
    %cst_197 = arith.constant 3.200000e+01 : f32
    %488 = vector.broadcast %cst_197 : f32 to vector<16x1xf32>
    %489 = arith.divf %487, %488 : vector<16x1xf32>
    %490 = vector.broadcast %489 : vector<16x1xf32> to vector<16x32xf32>
    %491 = arith.subf %481, %490 : vector<16x32xf32>
    %492 = arith.mulf %491, %491 : vector<16x32xf32>
    %cst_198 = arith.constant dense<0.000000e+00> : vector<16xf32>
    %493 = vector.multi_reduction <add>, %492, %cst_198 [1] : vector<16x32xf32> to vector<16xf32>
    %494 = vector.shape_cast %493 : vector<16xf32> to vector<16x1xf32>
    %cst_199 = arith.constant 3.200000e+01 : f32
    %495 = vector.broadcast %cst_199 : f32 to vector<16x1xf32>
    %496 = arith.divf %494, %495 : vector<16x1xf32>
    %497 = vector.broadcast %489 : vector<16x1xf32> to vector<16x32xf32>
    %498 = arith.subf %481, %497 : vector<16x32xf32>
    %cst_200 = arith.constant 9.99999996E-13 : f32
    %499 = vector.broadcast %cst_200 : f32 to vector<16x1xf32>
    %500 = arith.addf %496, %499 : vector<16x1xf32>
    %501 = math.rsqrt %500 : vector<16x1xf32>
    %502 = vector.broadcast %501 : vector<16x1xf32> to vector<16x32xf32>
    %503 = arith.mulf %498, %502 : vector<16x32xf32>
    %504 = vector.broadcast %483 : vector<1x32xf32> to vector<16x32xf32>
    %505 = arith.mulf %503, %504 : vector<16x32xf32>
    %506 = vector.broadcast %485 : vector<1x32xf32> to vector<16x32xf32>
    %507 = arith.addf %505, %506 : vector<16x32xf32>
    %c0_201 = arith.constant 0 : index
    %c0_202 = arith.constant 0 : index
    %508 = vector.load %arg18[%c0_201, %c0_202] : memref<32x128xf32, #tpu.memory_space<vmem>>, vector<32x128xf32>
    %cst_203 = arith.constant dense<0.000000e+00> : vector<16x128xf32>
    %509 = tpu.matmul %507, %508, %cst_203 {dimension_numbers = #tpu.dot_dimension_numbers<[1], [0], [0], [1], [0, 0, 1, 1], [], []>} : vector<16x32xf32>, vector<32x128xf32>, vector<16x128xf32> -> vector<16x128xf32>
    %c0_204 = arith.constant 0 : index
    %c0_205 = arith.constant 0 : index
    %510 = vector.load %arg19[%c0_204, %c0_205] : memref<1x128xf32, #tpu.memory_space<vmem>>, vector<1x128xf32>
    %511 = vector.broadcast %510 : vector<1x128xf32> to vector<16x128xf32>
    %512 = arith.addf %509, %511 : vector<16x128xf32>
    %513 = tpu.iota {dimensions = array<i32: 1>} : vector<16x128xi32>
    %c50_i32 = arith.constant 50 : i32
    %514 = vector.broadcast %c50_i32 : i32 to vector<16x128xi32>
    %515 = arith.cmpi slt, %513, %514 : vector<16x128xi32>
    %cst_206 = arith.constant -1.000000e+30 : f32
    %516 = vector.broadcast %cst_206 : f32 to vector<16x128xf32>
    %517 = arith.select %515, %512, %516 : vector<16x128xi1>, vector<16x128xf32>
    %cst_207 = arith.constant dense<0xFF800000> : vector<16xf32>
    %518 = vector.multi_reduction <maximumf>, %517, %cst_207 [1] : vector<16x128xf32> to vector<16xf32>
    %519 = vector.shape_cast %518 : vector<16xf32> to vector<16x1xf32>
    %520 = vector.broadcast %519 : vector<16x1xf32> to vector<16x128xf32>
    %521 = arith.subf %517, %520 : vector<16x128xf32>
    %522 = math.exp %521 : vector<16x128xf32>
    %cst_208 = arith.constant dense<0.000000e+00> : vector<16xf32>
    %523 = vector.multi_reduction <add>, %522, %cst_208 [1] : vector<16x128xf32> to vector<16xf32>
    %524 = vector.shape_cast %523 : vector<16xf32> to vector<16x1xf32>
    %525 = vector.broadcast %524 : vector<16x1xf32> to vector<16x128xf32>
    %526 = arith.divf %522, %525 : vector<16x128xf32>
    %c0_209 = arith.constant 0 : index
    %c0_210 = arith.constant 0 : index
    %527 = vector.load %arg20[%c0_209, %c0_210] : memref<16x128xf32, #tpu.memory_space<vmem>>, vector<16x128xf32>
    tpu.vector_store %arg20[%c0_209, %c0_210], %526 {strides = array<i32>} : memref<16x128xf32, #tpu.memory_space<vmem>>, vector<16x128xf32>,
    return
  }
  func.func @transform_0(%arg0: i32) -> (i32, i32) {
    %c0_i32 = arith.constant 0 : i32
    %c0_i32_0 = arith.constant 0 : i32
    %c0_i32_1 = arith.constant 0 : i32
    return %c0_i32, %c0_i32_0 : i32, i32
  }
  func.func @transform_1(%arg0: i32) -> (i32, i32) {
    %c0_i32 = arith.constant 0 : i32
    %c0_i32_0 = arith.constant 0 : i32
    %c0_i32_1 = arith.constant 0 : i32
    return %c0_i32, %c0_i32_0 : i32, i32
  }
  func.func @transform_2(%arg0: i32) -> (i32, i32) {
    %c0_i32 = arith.constant 0 : i32
    %c0_i32_0 = arith.constant 0 : i32
    %c0_i32_1 = arith.constant 0 : i32
    return %c0_i32, %c0_i32_0 : i32, i32
  }
  func.func @transform_3(%arg0: i32) -> (i32, i32) {
    %c0_i32 = arith.constant 0 : i32
    %c0_i32_0 = arith.constant 0 : i32
    %c0_i32_1 = arith.constant 0 : i32
    return %c0_i32, %c0_i32_0 : i32, i32
  }
  func.func @transform_4(%arg0: i32) -> (i32, i32) {
    %c0_i32 = arith.constant 0 : i32
    %c0_i32_0 = arith.constant 0 : i32
    %c0_i32_1 = arith.constant 0 : i32
    return %c0_i32, %c0_i32_0 : i32, i32
  }
  func.func @transform_5(%arg0: i32) -> (i32, i32, i32) {
    %c0_i32 = arith.constant 0 : i32
    %c0_i32_0 = arith.constant 0 : i32
    %c0_i32_1 = arith.constant 0 : i32
    %c0_i32_2 = arith.constant 0 : i32
    return %c0_i32, %c0_i32_0, %c0_i32_1 : i32, i32, i32
  }
  func.func @transform_6(%arg0: i32) -> (i32, i32, i32) {
    %c0_i32 = arith.constant 0 : i32
    %c0_i32_0 = arith.constant 0 : i32
    %c0_i32_1 = arith.constant 0 : i32
    %c0_i32_2 = arith.constant 0 : i32
    return %c0_i32, %c0_i32_0, %c0_i32_1 : i32, i32, i32
  }
  func.func @transform_7(%arg0: i32) -> (i32, i32, i32) {
    %c0_i32 = arith.constant 0 : i32
    %c0_i32_0 = arith.constant 0 : i32
    %c0_i32_1 = arith.constant 0 : i32
    %c0_i32_2 = arith.constant 0 : i32
    return %c0_i32, %c0_i32_0, %c0_i32_1 : i32, i32, i32
  }
  func.func @transform_8(%arg0: i32) -> (i32, i32, i32) {
    %c0_i32 = arith.constant 0 : i32
    %c0_i32_0 = arith.constant 0 : i32
    %c0_i32_1 = arith.constant 0 : i32
    %c0_i32_2 = arith.constant 0 : i32
    return %c0_i32, %c0_i32_0, %c0_i32_1 : i32, i32, i32
  }
  func.func @transform_9(%arg0: i32) -> (i32, i32, i32) {
    %c0_i32 = arith.constant 0 : i32
    %c0_i32_0 = arith.constant 0 : i32
    %c0_i32_1 = arith.constant 0 : i32
    %c0_i32_2 = arith.constant 0 : i32
    return %c0_i32, %c0_i32_0, %c0_i32_1 : i32, i32, i32
  }
  func.func @transform_10(%arg0: i32) -> (i32, i32, i32) {
    %c0_i32 = arith.constant 0 : i32
    %c0_i32_0 = arith.constant 0 : i32
    %c0_i32_1 = arith.constant 0 : i32
    %c0_i32_2 = arith.constant 0 : i32
    return %c0_i32, %c0_i32_0, %c0_i32_1 : i32, i32, i32
  }
  func.func @transform_11(%arg0: i32) -> (i32, i32, i32) {
    %c0_i32 = arith.constant 0 : i32
    %c0_i32_0 = arith.constant 0 : i32
    %c0_i32_1 = arith.constant 0 : i32
    %c0_i32_2 = arith.constant 0 : i32
    return %c0_i32, %c0_i32_0, %c0_i32_1 : i32, i32, i32
  }
  func.func @transform_12(%arg0: i32) -> (i32, i32, i32) {
    %c0_i32 = arith.constant 0 : i32
    %c0_i32_0 = arith.constant 0 : i32
    %c0_i32_1 = arith.constant 0 : i32
    %c0_i32_2 = arith.constant 0 : i32
    return %c0_i32, %c0_i32_0, %c0_i32_1 : i32, i32, i32
  }
  func.func @transform_13(%arg0: i32) -> (i32, i32, i32) {
    %c0_i32 = arith.constant 0 : i32
    %c0_i32_0 = arith.constant 0 : i32
    %c0_i32_1 = arith.constant 0 : i32
    %c0_i32_2 = arith.constant 0 : i32
    return %c0_i32, %c0_i32_0, %c0_i32_1 : i32, i32, i32
  }
  func.func @transform_14(%arg0: i32) -> (i32, i32, i32) {
    %c0_i32 = arith.constant 0 : i32
    %c0_i32_0 = arith.constant 0 : i32
    %c0_i32_1 = arith.constant 0 : i32
    %c0_i32_2 = arith.constant 0 : i32
    return %c0_i32, %c0_i32_0, %c0_i32_1 : i32, i32, i32
  }
  func.func @transform_15(%arg0: i32) -> (i32, i32, i32) {
    %c0_i32 = arith.constant 0 : i32
    %c0_i32_0 = arith.constant 0 : i32
    %c0_i32_1 = arith.constant 0 : i32
    %c0_i32_2 = arith.constant 0 : i32
    return %c0_i32, %c0_i32_0, %c0_i32_1 : i32, i32, i32
  }
  func.func @transform_16(%arg0: i32) -> (i32, i32, i32) {
    %c0_i32 = arith.constant 0 : i32
    %c0_i32_0 = arith.constant 0 : i32
    %c0_i32_1 = arith.constant 0 : i32
    %c0_i32_2 = arith.constant 0 : i32
    return %c0_i32, %c0_i32_0, %c0_i32_1 : i32, i32, i32
  }
  func.func @transform_17(%arg0: i32) -> (i32, i32) {
    %c0_i32 = arith.constant 0 : i32
    %c0_i32_0 = arith.constant 0 : i32
    %c0_i32_1 = arith.constant 0 : i32
    return %c0_i32, %c0_i32_0 : i32, i32
  }
  func.func @transform_18(%arg0: i32) -> (i32, i32) {
    %c0_i32 = arith.constant 0 : i32
    %c0_i32_0 = arith.constant 0 : i32
    %c0_i32_1 = arith.constant 0 : i32
    return %c0_i32, %c0_i32_0 : i32, i32
  }
  func.func @transform_19(%arg0: i32) -> (i32, i32) {
    %c0_i32 = arith.constant 0 : i32
    %c0_i32_0 = arith.constant 0 : i32
    %c0_i32_1 = arith.constant 0 : i32
    return %c0_i32, %c0_i32_0 : i32, i32
  }
}

</mosaic_0001>

<bundles_post_ra>
// kernel: sft_probs.1
= control target key start
LH: loop header
LB: loop body
LE: loop exit
PB: predicated region body
PF: predicated region fallthrough
CT: control target
= control target key end

     0   :  { %s3235_s0 = inlined_call_operand.vmem [shape: s32[16,1], index: 0, kind: input, shape index: {}]   ;;  %s3236_s1 = inlined_call_operand.vmem [shape: f32[50,32], index: 1, kind: input, shape index: {}]   ;;  %s3237_s2 = inlined_call_operand.vmem [shape: f32[16,32], index: 2, kind: input, shape index: {}]   ;;  %s3238_s3 = inlined_call_operand.hbm [shape: f32[1,32], index: 3, kind: input, shape index: {}]   ;;  %s3239_s4 = inlined_call_operand.hbm [shape: f32[1,32], index: 4, kind: input, shape index: {}]   ;;  %s3240_s5 = inlined_call_operand.vmem [shape: f32[2,32,96], index: 5, kind: input, shape index: {}]   ;;  %s3241_s6 = inlined_call_operand.vmem [shape: f32[2,1,96], index: 6, kind: input, shape index: {}]   ;;  %s3242_s7 = inlined_call_operand.vmem [shape: f32[2,32,32], index: 7, kind: input, shape index: {}]   ;;  %s3243_s8 = inlined_call_operand.vmem [shape: f32[2,1,32], index: 8, kind: input, shape index: {}]   ;;  %s3244_s9 = inlined_call_operand.hbm [shape: f32[2,1,32], index: 9, kind: input, shape index: {}]   ;;  %s3245_s10 = inlined_call_operand.hbm [shape: f32[2,1,32], index: 10, kind: input, shape index: {}]   ;;  %s3246_s11 = inlined_call_operand.vmem [shape: f32[2,32,64], index: 11, kind: input, shape index: {}]   ;;  %s3247_s12 = inlined_call_operand.hbm [shape: f32[2,1,64], index: 12, kind: input, shape index: {}]   ;;  %s3248_s13 = inlined_call_operand.vmem [shape: f32[2,64,32], index: 13, kind: input, shape index: {}]   ;;  %s3249_s14 = inlined_call_operand.hbm [shape: f32[2,1,32], index: 14, kind: input, shape index: {}]   ;;  %s3250_s15 = inlined_call_operand.hbm [shape: f32[2,1,32], index: 15, kind: input, shape index: {}]   ;;  %s3251_s16 = inlined_call_operand.hbm [shape: f32[2,1,32], index: 16, kind: input, shape index: {}]   ;;  %s3252_s17 = inlined_call_operand.vmem [shape: f32[32,128], index: 17, kind: input, shape index: {}]   ;;  %s3253_s18 = inlined_call_operand.vmem [shape: f32[1,128], index: 18, kind: input, shape index: {}]   ;;  %s3254_s19 = inlined_call_operand.vmem [shape: f32[16,128], index: 19, kind: output, shape index: {}]  }
   0x1   :  { %3262 = sst [smem:[#allocation20_spill]] %s3235_s0 }
   0x2   :  { %3263 = sst [smem:[#allocation21_spill]] %s3236_s1 }
   0x3   :  { %3264 = sst [smem:[#allocation22_spill]] %s3237_s2 }
   0x4   :  { %3265 = sst [smem:[#allocation23_spill]] %s3238_s3 }
   0x5   :  { %24 = vsyncpa [#allocation3], 0 }
   0x6   :  { %25 = vsyncpa [#allocation5], 0 }
   0x7   :  { %26 = vsyncpa [#allocation8], 0 }
   0x8   :  { %27 = vsyncpa [#allocation11], 0  ;;  %s51_s20 = sshll.u32 %s3239_s4, 4  ;;  %s52_s20 = int_to_ptr.hbm [resolvable:$true] %s51_s20 }
   0x9   :  { %28 = vsyncpa [#allocation14], 0  ;;  %s2550_s21 = smov [#allocation4]   ;;  %s82_s23 = sshll.u32 %s3245_s10, 4  ;;  %s83_s23 = int_to_ptr.hbm [resolvable:$true] %s82_s23 }
   0xa   :  { %s53_s1 = sshll.u32 %s2550_s21, 4  ;;  %s2551_s24 = smov [#allocation7]   ;;  %s54_s1 = int_to_ptr.vmem [resolvable:$true] %s53_s1 }
   0xb   :  { %56 = dma.hbm_to_vmem [thread:$0]  %s52_s20, 16, %s54_s1, [#allocation5]  }
   0xc   :  { %s84_s25 = sshll.u32 %s2551_s24, 4  ;;  %s112_s27 = sshll.u32 %s3249_s14, 4  ;;  %s85_s25 = int_to_ptr.vmem [resolvable:$true] %s84_s25  ;;  %s113_s27 = int_to_ptr.hbm [resolvable:$true] %s112_s27 }
   0xd   :  { %s3260_s4 = smov 16   ;;  %s2553_s28 = smov 1  }
   0xe   :  { %90 = dma.hbm_to_vmem [thread:$0]  %s83_s23, 32, %s85_s25, [#allocation8], %s3260_s4, %s3260_s4, %s2553_s28  }
   0xf   :  { %s3266_s30 = sld [smem:[#allocation23_spill]]  ;;  %s2554_s10 = smov [#allocation10]  }
  0x10   :  { %s114_s21 = sshll.u32 %s2554_s10, 4  ;;  %s2555_s14 = smov [#allocation2]   ;;  %s115_s21 = int_to_ptr.vmem [resolvable:$true] %s114_s21 }
  0x11   :  { %120 = dma.hbm_to_vmem [thread:$0]  %s113_s27, 32, %s115_s21, [#allocation11], %s3260_s4, %s3260_s4, %s2553_s28  }
  0x12   :  { %s42_s1 = sshll.u32 %s2555_s14, 4  ;;  %s69_s24 = sshll.u32 %s3244_s9, 4  ;;  %s43_s1 = int_to_ptr.vmem [resolvable:$true] %s42_s1  ;;  %s70_s24 = int_to_ptr.hbm [resolvable:$true] %s69_s24 }
  0x13   :  { %s97_s3 = sshll.u32 %s3247_s12, 4  ;;  %s2556_s26 = smov [#allocation6]   ;;  %s98_s3 = int_to_ptr.hbm [resolvable:$true] %s97_s3 }
  0x14   :  { %s71_s29 = sshll.u32 %s2556_s26, 4  ;;  %s2557_s27 = smov [#allocation9]   ;;  %s72_s29 = int_to_ptr.vmem [resolvable:$true] %s71_s29 }
  0x15   :  { %s40_s20 = sshll.u32 %s3266_s30, 4  ;;  %s99_s0 = sshll.u32 %s2557_s27, 4  ;;  %s41_s20 = int_to_ptr.hbm [resolvable:$true] %s40_s20  ;;  %s100_s0 = int_to_ptr.vmem [resolvable:$true] %s99_s0 }
  0x16   :  { %45 = dma.hbm_to_vmem [thread:$0]  %s41_s20, 16, %s43_s1, [#allocation3]  }
  0x17   :  { %77 = dma.hbm_to_vmem [thread:$0]  %s70_s24, 32, %s72_s29, [#allocation5], %s3260_s4, %s3260_s4, %s2553_s28  }
  0x18   :  { %s125_s9 = sshll.u32 %s3250_s15, 4  ;;  %s138_s21 = sshll.u32 %s3251_s16, 4  ;;  %s126_s9 = int_to_ptr.hbm [resolvable:$true] %s125_s9  ;;  %s139_s21 = int_to_ptr.hbm [resolvable:$true] %s138_s21 }
  0x19   :  { %105 = dma.hbm_to_vmem [thread:$0]  %s98_s3, 32, %s100_s0, [#allocation8], %s3260_s4, %s3260_s4, %s2553_s28  }
  0x1a   :  { %s2558_s14 = smov [#allocation12]   ;;  %s2559_s22 = smov [#allocation13]  }
  0x1b   :  { %s127_s1 = sshll.u32 %s2558_s14, 4  ;;  %s140_s15 = sshll.u32 %s2559_s22, 4  ;;  %s128_s1 = int_to_ptr.vmem [resolvable:$true] %s127_s1  ;;  %s141_s15 = int_to_ptr.vmem [resolvable:$true] %s140_s15 }
  0x1c   :  { %133 = dma.hbm_to_vmem [thread:$0]  %s126_s9, 32, %s128_s1, [#allocation11], %s3260_s4, %s3260_s4, %s2553_s28  }
  0x1d   :  { %146 = dma.hbm_to_vmem [thread:$0]  %s139_s21, 32, %s141_s15, [#allocation14], %s3260_s4, %s3260_s4, %s2553_s28  }
  0x1e   :  { %2540 = dma.done.wait [#allocation3], 16  }
  0x1f   :  { %2541 = vsyncadd [#allocation3], 4294967280 }
  0x20   :  { %2542 = dma.done.wait [#allocation5], 48  }
  0x21   :  { %2543 = vsyncadd [#allocation5], 4294967248 }
  0x22   :  { %2544 = dma.done.wait [#allocation8], 64  }
  0x23   :  { %2545 = vsyncadd [#allocation8], 4294967232 }
  0x24   :  { %2546 = dma.done.wait [#allocation11], 64  }
  0x25   :  { %2547 = vsyncadd [#allocation11], 4294967232 }
  0x26   :  { %2548 = dma.done.wait [#allocation14], 32  }
  0x27   :  { %2549 = vsyncadd [#allocation14], 4294967264  ;;  %v2560_v0 = vmov 0   ;;  %vm215_vm0 = vcmask 1041408   ;;  %s3267_s24 = sld [smem:[#allocation20_spill]]  ;;  %v183_v10 = vlaneseq  ;;  %vm208_vm1 = vcmask 408576  }
  0x28   :  { %2220 = vset.pattern.permute.xlu0 %v2560_v0  ;;  %2221 = vset.pattern.permute.xlu1 %v2560_v0  ;;  %s3268_s26 = sld [smem:[#allocation21_spill]]  ;;  %v2561_v13 = vmov 0.0   ;;  %vm244_vm4 = vcmask 261120   ;;  %v2562_v25 = vmov 32.0   ;;  %v309_v42 = vld [vmem:[%s3240_s5 + $0x18] sm:$0xff]  ;;  %v308_v43 = vld [vmem:[%s3240_s5 + $0x10] sm:$0xff] }
  0x29   :  { %v2745_v11 = vand.u32 127, %v183_v10  ;;  %s3269_s2 = sld [smem:[#allocation22_spill]]  ;;  %2246 = vrcp.f32 %v2562_v25  ;;  %332 = vmatpush.msra.mxu1 %v309_v42  ;;  %v307_v44 = vld [vmem:[%s3240_s5 + $0x8] sm:$0xff]  ;;  %v306_v45 = vld [vmem:[%s3240_s5] sm:$0xff]  ;;  %s2563_s12 = smov 72   ;;  %vm346_vm12 = vcmask 64512  }
  0x2a   :  { %v2227_v60 = vld [vmem:[#allocation2] ss:$0 sm:$0xff]  ;;  %v2228_v0 = vld [vmem:[#allocation4] ss:$0 sm:$0xff]  ;;  %s2564_s20 = smov 112   ;;  %s2565_s21 = smov 88  }
  0x2b   :  { %333 = vmatpush.msra.mxu1 %v308_v43  ;;  %v2229_v10 = vld [vmem:[%s3241_s6] ss:$0 sm:$0xff]  ;;  %s2566_s14 = smov 48   ;;  %s2567_s1 = smov 56   ;;  %vm620_vm13 = vcmask 130048   ;;  %vm622_vm14 = vcmask 195584  }
  0x2c   :  { %s2568_s22 = smov 120   ;;  %s2569_s15 = smov 96  }
  0x2d   :  { %v185_v1 = vld [vmem:[%s3267_s24] sm:$0xff]  ;;  %v186_v2 = vld [vmem:[%s3267_s24 + $0x8] sm:$0xff]  ;;  %334 = vmatpush.msra.mxu1 %v307_v44  ;;  %s2570_s16 = smov 80   ;;  %s2572_s24 = smov 40  }
  0x2e   :  { %v205_v3 = vld [vmem:[%s3268_s26 + $0x30] sm:$0x3]  ;;  %188 = vperm.xlu0 %2220, %v185_v1   ;;  %191 = vperm.xlu1 %2221, %v186_v2   ;;  %v204_v4 = vld [vmem:[%s3268_s26 + $0x28] sm:$0xff]  ;;  %v203_v5 = vld [vmem:[%s3268_s26 + $0x20] sm:$0xff]  ;;  %s2573_s23 = smov 64   ;;  %s3258_s28 = smov 24  }
  0x2f   :  { %2103 = vmatpush.msk.msra.mxu0 %vm215_vm0, %v205_v3  ;;  %v202_v6 = vld [vmem:[%s3268_s26 + $0x18] sm:$0xff]  ;;  %v201_v7 = vld [vmem:[%s3268_s26 + $0x10] sm:$0xff]  ;;  %v200_v8 = vld [vmem:[%s3268_s26 + $0x8] sm:$0xff]  ;;  %v2247_v26 = vpop.eup %2246  ;;  %335 = vmatpush.msra.mxu1 %v306_v45  ;;  %s2575_s25 = smov 8  }
  0x30   :  { %v199_v9 = vld [vmem:[%s3268_s26] sm:$0xff]  ;;  %v207_v21 = vld [vmem:[%s3269_s2 + $0x8] sm:$0xff]  ;;  %v252_v27 = vmul.f32 32.0, %v2247_v26  ;;  %vm256_vm5 = vweird.f32 %v2247_v26 }
  0x31   :  { %229 = vmatpush.msra.mxu0 %v204_v4  ;;  %v206_v17 = vld [vmem:[%s3269_s2] sm:$0xff]  ;;  %s2571_s2 = smov 104  }
  0x32   :  { %v253_v28 = vsub.f32 1.0, %v252_v27 }
  0x33   :  { %230 = vmatpush.msra.mxu0 %v203_v5 }
  0x34   :  { %v254_v29 = vmul.f32 %v2247_v26, %v253_v28 }
  0x35   :  { %231 = vmatpush.msra.mxu0 %v202_v6 }
  0x36   :  { %v255_v30 = vadd.f32 %v2247_v26, %v254_v29 }
  0x37   :  { %232 = vmatpush.msra.mxu0 %v201_v7 }
  0x38   :  { %v2757_v31 = vsel %vm256_vm5, %v2247_v26, %v255_v30 }
  0x39   :  { %233 = vmatpush.msra.mxu0 %v200_v8 }
  0x3b   :  { %234 = vmatpush.msra.mxu0 %v199_v9 }
  0xa0   :  { %v189_v12 = vpop.permute.xlu0 %188  ;;  %v192_v15 = vpop.permute.xlu1 %191 }
  0xa1   :  { %vm193_vm2 = vcmp.eq.s32.totalorder %v2745_v11, %v189_v12  ;;  %vm194_vm3 = vcmp.eq.s32.totalorder %v2745_v11, %v192_v15 }
  0xa2   :  { %v2101_v14 = vsel %vm193_vm2, 1.0, %v2561_v13  ;;  %v2102_v16 = vsel %vm194_vm3, 1.0, %v2561_v13  ;;  %vm1064_vm2 = vcmask 523264  }
  0xa3   :  { %2104 = vmatmul.msk.f32.vlgmr.msra.gmra.mxu0 %vm208_vm1, %v2101_v14 }
  0xab   :  { %2105 = vmatmul.msk.f32.gmra.mxu0 %vm208_vm1, %v2102_v16 }
 0x120   :  { %v236_v18 = vpop.f32.mrf.mxu0 }
 0x121   :  { %v237_v19 = vadd.f32 %v236_v18, %v206_v17 }
 0x123   :  { %v245_v20 = vsel %vm244_vm4, %v237_v19, 0.0 }
 0x124   :  { %246 = vadd.xlane.f32.xlu0 %v245_v20 }
 0x128   :  { %v239_v22 = vpop.f32.mrf.mxu0 }
 0x129   :  { %v240_v23 = vadd.f32 %v239_v22, %v207_v21 }
 0x12b   :  { %v248_v24 = vsel %vm244_vm4, %v240_v23, 0.0 }
 0x12c   :  { %249 = vadd.xlane.f32.xlu2 %v248_v24 }
 0x197   :  { %v247_v32 = vpop.xlane.xlu0 %246 }
 0x198   :  { %v258_v33 = vmul.f32 %v2757_v31, %v247_v32 }
 0x19a   :  { %v260_v34 = vsub.f32 %v237_v19, %v258_v33 }
 0x19c   :  { %v262_v35 = vmul.f32 %v260_v34, %v260_v34 }
 0x19e   :  { %v264_v36 = vsel %vm244_vm4, %v262_v35, 0.0 }
 0x19f   :  { %v250_v37 = vpop.xlane.xlu2 %249  ;;  %265 = vadd.xlane.f32.xlu1 %v264_v36 }
 0x1a0   :  { %v259_v38 = vmul.f32 %v2757_v31, %v250_v37 }
 0x1a2   :  { %v261_v39 = vsub.f32 %v240_v23, %v259_v38 }
 0x1a4   :  { %v263_v40 = vmul.f32 %v261_v39, %v261_v39 }
 0x1a6   :  { %v267_v41 = vsel %vm244_vm4, %v263_v40, 0.0 }
 0x1a7   :  { %268 = vadd.xlane.f32.xlu2 %v267_v41 }
 0x212   :  { %v266_v46 = vpop.xlane.xlu1 %265 }
 0x213   :  { %v270_v47 = vmul.f32 %v266_v46, %v2757_v31 }
 0x215   :  { %v272_v48 = vadd.f32 1e-12, %v270_v47 }
 0x217   :  { %2248 = vrsqrt.f32 %v272_v48  ;;  %vm280_vm7 = vweird.f32 %v272_v48 }
 0x21a   :  { %v269_v49 = vpop.xlane.xlu2 %268 }
 0x21b   :  { %v271_v50 = vmul.f32 %v269_v49, %v2757_v31 }
 0x21d   :  { %v2249_v51 = vpop.eup %2248  ;;  %v273_v52 = vadd.f32 1e-12, %v271_v50 }
 0x21e   :  { %v275_v53 = vmul.f32 %v2249_v51, %v272_v48  ;;  %vm281_vm6 = vweird.f32 %v2249_v51 }
 0x21f   :  { %2250 = vrsqrt.f32 %v273_v52  ;;  %vm282_vm8 = vmor %vm280_vm7, %vm281_vm6  ;;  %vm290_vm9 = vweird.f32 %v273_v52 }
 0x220   :  { %v276_v54 = vmul.f32 %v2249_v51, %v275_v53 }
 0x222   :  { %v277_v55 = vmul.f32 0.5, %v276_v54 }
 0x224   :  { %v278_v56 = vsub.f32 1.5, %v277_v55 }
 0x225   :  { %v2251_v57 = vpop.eup %2250 }
 0x226   :  { %v279_v58 = vmul.f32 %v2249_v51, %v278_v56  ;;  %v285_v59 = vmul.f32 %v2251_v57, %v273_v52  ;;  %vm291_vm10 = vweird.f32 %v2251_v57 }
 0x227   :  { %vm292_vm11 = vmor %vm290_vm9, %vm291_vm10 }
 0x228   :  { %v283_v61 = vsel %vm282_vm8, %v2249_v51, %v279_v58  ;;  %v286_v62 = vmul.f32 %v2251_v57, %v285_v59 }
 0x229   :  { %v294_v63 = vmul.f32 %v283_v61, %v260_v34 }
 0x22a   :  { %v287_v1 = vmul.f32 0.5, %v286_v62 }
 0x22b   :  { %v299_v2 = vmul.f32 %v2227_v60, %v294_v63 }
 0x22c   :  { %v288_v3 = vsub.f32 1.5, %v287_v1 }
 0x22d   :  { %v2777_v4 = vadd.f32 %v2228_v0, %v299_v2 }
 0x22e   :  { %v289_v5 = vmul.f32 %v2251_v57, %v288_v3 }
 0x22f   :  { %2106 = vmatmul.msk.f32.vlgmr.msra.gmra.mxu1 %vm244_vm4, %v2777_v4 }
 0x230   :  { %v293_v6 = vsel %vm292_vm11, %v2251_v57, %v289_v5 }
 0x231   :  { %v295_v7 = vmul.f32 %v293_v6, %v261_v39 }
 0x233   :  { %v300_v8 = vmul.f32 %v2227_v60, %v295_v7 }
 0x235   :  { %v2781_v9 = vadd.f32 %v2228_v0, %v300_v8 }
 0x237   :  { %2107 = vmatmul.msk.f32.gmra.mxu1 %vm244_vm4, %v2781_v9 }
 0x2ac   :  { %v337_v12 = vpop.f32.mrf.mxu1 }
 0x2ad   :  { %v2788_v13 = vadd.f32 %v2229_v10, %v337_v12 }
 0x2af   :  { %543 = vrot.lane.b32.xlu1 %v2788_v13, %s2563_s12  ;;  %475 = vrot.lane.b32.xlu0 %v2788_v13, %s2564_s20 }
 0x2b0   :  { %411 = vrot.lane.b32.xlu2 %v2788_v13, %s2565_s21 }
 0x2b4   :  { %v340_v14 = vpop.f32.mrf.mxu1 }
 0x2b5   :  { %v2802_v15 = vadd.f32 %v2229_v10, %v340_v14 }
 0x2b7   :  { %515 = vrot.lane.b32.xlu1 %v2788_v13, %s2566_s14  ;;  %449 = vrot.lane.b32.xlu0 %v2788_v13, %s2567_s1 }
 0x2b8   :  { %409 = vrot.lane.b32.xlu2 %v2788_v13, %s2568_s22 }
 0x2bf   :  { %625 = vrot.lane.b32.xlu0 %v2802_v15, %s2569_s15 }
 0x2c0   :  { %477 = vrot.lane.b32.xlu2 %v2788_v13, %s2570_s16 }
 0x2c8   :  { %541 = vrot.lane.b32.xlu2 %v2788_v13, %s2571_s2 }
 0x2d0   :  { %344 = vrot.lane.b32.xlu2 %v2788_v13, %s2569_s15 }
 0x2d8   :  { %581 = vrot.lane.b32.xlu2 %v2788_v13, %s2572_s24 }
 0x30a   :  { %v412_v16 = vpop.permute.xlu2 %411 }
 0x30b   :  { %2111 = vmatpush.xpose.msk.msra.mxu3 %vm346_vm12, %v412_v16 }
 0x312   :  { %v410_v17 = vpop.permute.xlu2 %409 }
 0x313   :  { %2112 = vmatmul.msk.f32.vlgmr.msra.gmra.mxu3 %vm346_vm12, %v410_v17 }
 0x31a   :  { %v478_v18 = vpop.permute.xlu2 %477 }
 0x31b   :  { %2114 = vmatpush.xpose.msk.msrb.mxu3 %vm346_vm12, %v478_v18 }
 0x321   :  { %v544_v19 = vpop.permute.xlu1 %543  ;;  %v476_v20 = vpop.permute.xlu0 %475 }
 0x322   :  { %v542_v21 = vpop.permute.xlu2 %541  ;;  %2115 = vmatmul.msk.f32.vlgmr.msrb.gmra.mxu3 %vm346_vm12, %v476_v20  ;;  %2117 = vmatpush.xpose.msk.msrb.mxu1 %vm346_vm12, %v544_v19 }
 0x325   :  { %2118 = vmatmul.msk.f32.vlgmr.msrb.gmra.mxu1 %vm346_vm12, %v542_v21 }
 0x329   :  { %v450_v22 = vpop.permute.xlu0 %449  ;;  %v516_v24 = vpop.permute.xlu1 %515 }
 0x32a   :  { %v345_v23 = vpop.permute.xlu2 %344 }
 0x32b   :  { %2108 = vmatpush.xpose.msk.msra.mxu2 %vm346_vm12, %v345_v23 }
 0x32e   :  { %2109 = vmatmul.msk.f32.vlgmr.msra.gmra.mxu2 %vm346_vm12, %v2788_v13 }
 0x32f   :  { %470 = vmatpush.msrb.mxu2 %v450_v22 }
 0x331   :  { %536 = vmatpush.msra.mxu2 %v516_v24  ;;  %v626_v39 = vpop.permute.xlu0 %625 }
 0x332   :  { %v582_v25 = vpop.permute.xlu2 %581 }
 0x333   :  { %602 = vmatpush.msra.mxu3 %v582_v25 }
 0x396   :  { %v434_v26 = vpop.f32.mrf.mxu3 }
 0x397   :  { %v437_v27 = vmul.f32 0.35355338, %v434_v26 }
 0x399   :  { %v438_v28 = vsel %vm346_vm12, %v437_v27, -inf }
 0x39a   :  { %439 = vmax.xlane.f32.xlu0 %v438_v28 }
 0x3a2   :  { %v566_v29 = vpop.f32.mrf.mxu1 }
 0x3a3   :  { %v569_v30 = vmul.f32 0.35355338, %v566_v29 }
 0x3a5   :  { %v570_v32 = vsel %vm346_vm12, %v569_v30, -inf  ;;  %v500_v36 = vpop.f32.mrf.mxu3 }
 0x3a6   :  { %571 = vmax.xlane.f32.xlu1 %v570_v32  ;;  %v503_v37 = vmul.f32 0.35355338, %v500_v36 }
 0x3a8   :  { %v504_v38 = vsel %vm346_vm12, %v503_v37, -inf }
 0x3ae   :  { %691 = vrot.lane.b32.xlu0 %v2802_v15, %s2565_s21 }
 0x3b1   :  { %v368_v33 = vpop.f32.mrf.mxu2 }
 0x3b2   :  { %v371_v34 = vmul.f32 0.35355338, %v368_v33 }
 0x3b4   :  { %v372_v35 = vsel %vm346_vm12, %v371_v34, -inf }
 0x3b5   :  { %373 = vmax.xlane.f32.xlu2 %v372_v35 }
 0x3bd   :  { %505 = vmax.xlane.f32.xlu2 %v504_v38 }
 0x3bf   :  { %689 = vrot.lane.b32.xlu1 %v2802_v15, %s2568_s22 }
 0x3d5   :  { %757 = vrot.lane.b32.xlu2 %v2802_v15, %s2570_s16 }
 0x40d   :  { %v440_v40 = vpop.xlane.xlu0 %439 }
 0x40e   :  { %v441_v41 = vsub.f32 %v437_v27, %v440_v40  ;;  %v905_v40 = vld [vmem:[%s3242_s7 + $0x18] sm:$0xff] }
 0x410   :  { %v442_v42 = vmul.f32 1.442695, %v441_v41  ;;  %v904_v41 = vld [vmem:[%s3242_s7 + $0x10] sm:$0xff] }
 0x412   :  { %2252 = vpow2.f32 %v442_v42  ;;  %v903_v42 = vld [vmem:[%s3242_s7 + $0x8] sm:$0xff] }
 0x418   :  { %v2253_v43 = vpop.eup %2252 }
 0x419   :  { %v444_v44 = vsel %vm346_vm12, %v2253_v43, 0.0  ;;  %v572_v45 = vpop.xlane.xlu1 %571 }
 0x41a   :  { %445 = vadd.xlane.f32.xlu0 %v444_v44  ;;  %v573_v46 = vsub.f32 %v569_v30, %v572_v45 }
 0x41c   :  { %v574_v47 = vmul.f32 1.442695, %v573_v46 }
 0x41e   :  { %2254 = vpow2.f32 %v574_v47 }
 0x420   :  { %v692_v48 = vpop.permute.xlu0 %691 }
 0x421   :  { %2123 = vmatpush.xpose.msk.msra.mxu1 %vm346_vm12, %v692_v48 }
 0x424   :  { %v2255_v49 = vpop.eup %2254 }
 0x425   :  { %v576_v50 = vsel %vm346_vm12, %v2255_v49, 0.0 }
 0x426   :  { %577 = vadd.xlane.f32.xlu2 %v576_v50 }
 0x428   :  { %v374_v51 = vpop.xlane.xlu2 %373 }
 0x429   :  { %v375_v58 = vsub.f32 %v371_v34, %v374_v51 }
 0x42b   :  { %v376_v59 = vmul.f32 1.442695, %v375_v58 }
 0x42e   :  { %823 = vrot.lane.b32.xlu0 %v2802_v15, %s2563_s12 }
 0x430   :  { %v506_v52 = vpop.xlane.xlu2 %505 }
 0x431   :  { %v507_v53 = vsub.f32 %v503_v37, %v506_v52  ;;  %v690_v54 = vpop.permute.xlu1 %689 }
 0x432   :  { %2124 = vmatmul.msk.f32.vlgmr.msra.gmra.mxu1 %vm346_vm12, %v690_v54 }
 0x433   :  { %v508_v55 = vmul.f32 1.442695, %v507_v53 }
 0x435   :  { %2256 = vpow2.f32 %v508_v55 }
 0x436   :  { %2258 = vpow2.f32 %v376_v59 }
 0x438   :  { %v758_v63 = vpop.permute.xlu2 %757 }
 0x43b   :  { %v2257_v56 = vpop.eup %2256 }
 0x43c   :  { %v510_v57 = vsel %vm346_vm12, %v2257_v56, 0.0  ;;  %v2259_v60 = vpop.eup %2258 }
 0x43d   :  { %511 = vadd.xlane.f32.xlu1 %v510_v57  ;;  %v378_v61 = vsel %vm346_vm12, %v2259_v60, 0.0 }
 0x43e   :  { %821 = vrot.lane.b32.xlu2 %v2802_v15, %s2571_s2 }
 0x456   :  { %755 = vrot.lane.b32.xlu1 %v2802_v15, %s2564_s20 }
 0x458   :  { %379 = vadd.xlane.f32.xlu0 %v378_v61 }
 0x45e   :  { %383 = vrot.lane.b32.xlu1 %v2788_v13, %s2573_s23 }
 0x48d   :  { %v446_v62 = vpop.xlane.xlu0 %445 }
 0x48e   :  { %2260 = vrcp.f32 %v446_v62 }
 0x494   :  { %v2261_v0 = vpop.eup %2260 }
 0x495   :  { %v448_v1 = vmul.f32 %v2261_v0, %v2253_v43  ;;  %v902_v43 = vld [vmem:[%s3242_s7] sm:$0xff] }
 0x497   :  { %2113 = vmatmul.msk.f32.vlgmr.msrb.gmra.mxu2 %vm346_vm12, %v448_v1 }
 0x498   :  { %2120 = vmatpush.xpose.msk.msrb.mxu2 %vm346_vm12, %v626_v39 }
 0x499   :  { %v578_v2 = vpop.xlane.xlu2 %577 }
 0x49a   :  { %2262 = vrcp.f32 %v578_v2 }
 0x4a0   :  { %v2263_v3 = vpop.eup %2262  ;;  %v824_v5 = vpop.permute.xlu0 %823 }
 0x4a1   :  { %v580_v6 = vmul.f32 %v2263_v3, %v2255_v49  ;;  %2129 = vmatpush.xpose.msk.msrb.mxu1 %vm346_vm12, %v824_v5  ;;  %v822_v7 = vpop.permute.xlu2 %821 }
 0x4a3   :  { %2119 = vmatmul.msk.f32.vlgmr.msra.gmra.mxu3 %vm346_vm12, %v580_v6 }
 0x4a4   :  { %2130 = vmatmul.msk.f32.vlgmr.msrb.gmra.mxu1 %vm346_vm12, %v822_v7 }
 0x4af   :  { %v714_v8 = vpop.f32.mrf.mxu1 }
 0x4b0   :  { %v717_v10 = vmul.f32 0.35355338, %v714_v8  ;;  %v512_v12 = vpop.xlane.xlu1 %511 }
 0x4b1   :  { %2264 = vrcp.f32 %v512_v12  ;;  %v2897_v12 = vld [vmem:[%s3243_s8] ss:$0 sm:$0xff] }
 0x4b2   :  { %v718_v13 = vsel %vm346_vm12, %v717_v10, -inf }
 0x4b3   :  { %719 = vmax.xlane.f32.xlu1 %v718_v13 }
 0x4b7   :  { %v2265_v14 = vpop.eup %2264 }
 0x4b8   :  { %v514_v16 = vmul.f32 %v2265_v14, %v2257_v56 }
 0x4ba   :  { %2116 = vmatmul.msk.f32.vlgmr.msra.gmra.mxu2 %vm346_vm12, %v514_v16 }
 0x4bb   :  { %2126 = vmatpush.xpose.msk.msra.mxu2 %vm346_vm12, %v758_v63 }
 0x4c2   :  { %2121 = vmatmul.msk.f32.vlgmr.msrb.gmra.mxu2 %vm346_vm12, %v2802_v15 }
 0x4c3   :  { %928 = vmatpush.msrb.mxu2 %v905_v40 }
 0x4c5   :  { %929 = vmatpush.msrb.mxu2 %v904_v41 }
 0x4c7   :  { %930 = vmatpush.msrb.mxu2 %v903_v42 }
 0x4c8   :  { %v756_v17 = vpop.permute.xlu1 %755 }
 0x4c9   :  { %931 = vmatpush.msrb.mxu2 %v902_v43 }
 0x4ca   :  { %2127 = vmatmul.msk.f32.vlgmr.msra.gmra.mxu2 %vm346_vm12, %v756_v17 }
 0x4cb   :  { %v380_v18 = vpop.xlane.xlu0 %379 }
 0x4cc   :  { %2266 = vrcp.f32 %v380_v18 }
 0x4d0   :  { %v384_v19 = vpop.permute.xlu1 %383 }
 0x4d1   :  { %404 = vmatpush.msrb.mxu0 %v384_v19 }
 0x4d2   :  { %v2267_v20 = vpop.eup %2266 }
 0x4d3   :  { %v382_v21 = vmul.f32 %v2267_v20, %v2259_v60 }
 0x4d5   :  { %2110 = vmatmul.msk.f32.vlgmr.msrb.gmra.mxu0 %vm346_vm12, %v382_v21 }
 0x51a   :  { %v472_v26 = vpop.f32.mrf.mxu2 }
 0x521   :  { %v846_v22 = vpop.f32.mrf.mxu1 }
 0x522   :  { %v849_v23 = vmul.f32 0.35355338, %v846_v22 }
 0x524   :  { %v850_v24 = vsel %vm346_vm12, %v849_v23, -inf }
 0x525   :  { %851 = vmax.xlane.f32.xlu0 %v850_v24 }
 0x526   :  { %v604_v25 = vpop.f32.mrf.mxu3  ;;  %v720_v28 = vpop.xlane.xlu1 %719 }
 0x527   :  { %616 = vrot.lane.b32.xlu2 %v604_v25, %s3258_s28  ;;  %v721_v30 = vsub.f32 %v717_v10, %v720_v28 }
 0x529   :  { %v722_v32 = vmul.f32 1.442695, %v721_v30 }
 0x52b   :  { %2268 = vpow2.f32 %v722_v32 }
 0x52f   :  { %608 = vrot.lane.b32.xlu2 %v472_v26, %s2575_s25 }
 0x531   :  { %v2269_v37 = vpop.eup %2268 }
 0x532   :  { %v724_v39 = vsel %vm346_vm12, %v2269_v37, 0.0 }
 0x53d   :  { %v538_v27 = vpop.f32.mrf.mxu2 }
 0x53e   :  { %612 = vrot.lane.b32.xlu1 %v538_v27, %s3260_s4 }
 0x545   :  { %v648_v29 = vpop.f32.mrf.mxu2 }
 0x546   :  { %v651_v36 = vmul.f32 0.35355338, %v648_v29 }
 0x548   :  { %v652_v38 = vsel %vm346_vm12, %v651_v36, -inf }
 0x54d   :  { %v780_v33 = vpop.f32.mrf.mxu2 }
 0x54e   :  { %v783_v34 = vmul.f32 0.35355338, %v780_v33 }
 0x550   :  { %v784_v35 = vsel %vm346_vm12, %v783_v34, -inf }
 0x551   :  { %785 = vmax.xlane.f32.xlu0 %v784_v35  ;;  %v1000_v35 = vld [vmem:[%s3246_s11 + $0x18] sm:$0xff] }
 0x552   :  { %v406_v51 = vpop.f32.mrf.mxu0 }
 0x558   :  { %653 = vmax.xlane.f32.xlu2 %v652_v38  ;;  %v997_v38 = vld [vmem:[%s3246_s11] sm:$0xff] }
 0x559   :  { %725 = vadd.xlane.f32.xlu0 %v724_v39 }
 0x56d   :  { %729 = vrot.lane.b32.xlu0 %v2802_v15, %s2567_s1 }
 0x575   :  { %795 = vrot.lane.b32.xlu0 %v2802_v15, %s2566_s14 }
 0x581   :  { %v617_v48 = vpop.permute.xlu2 %616 }
 0x589   :  { %v609_v50 = vpop.permute.xlu2 %608 }
 0x58a   :  { %v619_v52 = vsel %vm346_vm12, %v406_v51, %v609_v50  ;;  %v2925_v51 = vld [vmem:[#allocation7] ss:$0 sm:$0xff] }
 0x598   :  { %v852_v44 = vpop.xlane.xlu0 %851 }
 0x599   :  { %v853_v45 = vsub.f32 %v849_v23, %v852_v44 }
 0x59b   :  { %v854_v46 = vmul.f32 1.442695, %v853_v45 }
 0x59d   :  { %2270 = vpow2.f32 %v854_v46 }
 0x5a3   :  { %v2271_v47 = vpop.eup %2270 }
 0x5a4   :  { %v856_v49 = vsel %vm346_vm12, %v2271_v47, 0.0 }
 0x5a5   :  { %857 = vadd.xlane.f32.xlu2 %v856_v49 }
 0x5b0   :  { %v613_v53 = vpop.permute.xlu1 %612 }
 0x5b1   :  { %v621_v54 = vsel %vm620_vm13, %v619_v52, %v613_v53 }
 0x5b2   :  { %v623_v55 = vsel %vm622_vm14, %v621_v54, %v617_v48  ;;  %v2923_v48 = vld [vmem:[#allocation6] ss:$0 sm:$0xff] }
 0x5b3   :  { %2132 = vmatmul.msk.f32.vlgmr.msrb.gmra.mxu2 %vm244_vm4, %v623_v55 }
 0x5bd   :  { %663 = vrot.lane.b32.xlu2 %v2802_v15, %s2573_s23 }
 0x5c4   :  { %v786_v56 = vpop.xlane.xlu0 %785 }
 0x5c5   :  { %v787_v59 = vsub.f32 %v783_v34, %v786_v56 }
 0x5c7   :  { %v788_v61 = vmul.f32 1.442695, %v787_v59 }
 0x5cb   :  { %v654_v57 = vpop.xlane.xlu2 %653 }
 0x5cc   :  { %v655_v58 = vsub.f32 %v651_v36, %v654_v57  ;;  %v726_v62 = vpop.xlane.xlu0 %725  ;;  %v999_v36 = vld [vmem:[%s3246_s11 + $0x10] sm:$0xff] }
 0x5ce   :  { %v656_v60 = vmul.f32 1.442695, %v655_v58 }
 0x5d0   :  { %2272 = vpow2.f32 %v656_v60  ;;  %v1059_v60 = vld [vmem:[%s3248_s13 + $0x38] sm:$0xff] }
 0x5d1   :  { %2274 = vpow2.f32 %v788_v61  ;;  %1079 = vmatpush.msra.mxu1 %v1059_v60  ;;  %v1058_v61 = vld [vmem:[%s3248_s13 + $0x30] sm:$0xff] }
 0x5d2   :  { %2276 = vrcp.f32 %v726_v62  ;;  %v1057_v62 = vld [vmem:[%s3248_s13 + $0x28] sm:$0xff] }
 0x5d3   :  { %1080 = vmatpush.msra.mxu1 %v1058_v61 }
 0x5d5   :  { %1081 = vmatpush.msra.mxu1 %v1057_v62 }
 0x5d6   :  { %v2273_v63 = vpop.eup %2272 }
 0x5d7   :  { %v658_v0 = vsel %vm346_vm12, %v2273_v63, 0.0  ;;  %v2275_v1 = vpop.eup %2274 }
 0x5d8   :  { %659 = vadd.xlane.f32.xlu1 %v658_v0  ;;  %v2277_v2 = vpop.eup %2276  ;;  %v790_v6 = vsel %vm346_vm12, %v2275_v1, 0.0  ;;  %v1055_v0 = vld [vmem:[%s3248_s13 + $0x18] sm:$0xff] }
 0x5d9   :  { %v728_v3 = vmul.f32 %v2277_v2, %v2269_v37  ;;  %v998_v37 = vld [vmem:[%s3246_s11 + $0x8] sm:$0xff] }
 0x5da   :  { %v1053_v2 = vld [vmem:[%s3248_s13 + $0x8] sm:$0xff] }
 0x5df   :  { %v730_v5 = vpop.permute.xlu0 %729 }
 0x5e0   :  { %750 = vmatpush.msrb.mxu3 %v730_v5  ;;  %791 = vadd.xlane.f32.xlu1 %v790_v6  ;;  %v2958_v5 = vld [vmem:[#allocation9] ss:$0 sm:$0xff] }
 0x5e1   :  { %2125 = vmatmul.msk.f32.vlgmr.msrb.gmra.mxu3 %vm346_vm12, %v728_v3  ;;  %v1052_v3 = vld [vmem:[%s3248_s13] sm:$0xff] }
 0x5e7   :  { %v796_v10 = vpop.permute.xlu0 %795 }
 0x5f9   :  { %861 = vrot.lane.b32.xlu1 %v2802_v15, %s2572_s24 }
 0x618   :  { %v858_v7 = vpop.xlane.xlu2 %857 }
 0x620   :  { %v664_v8 = vpop.permute.xlu2 %663 }
 0x621   :  { %684 = vmatpush.msra.mxu0 %v664_v8 }
 0x623   :  { %816 = vmatpush.msrb.mxu0 %v796_v10 }
 0x636   :  { %v933_v13 = vpop.f32.mrf.mxu2 }
 0x637   :  { %v934_v14 = vadd.f32 %v2897_v12, %v933_v13 }
 0x639   :  { %v939_v16 = vadd.f32 %v934_v14, %v2777_v4 }
 0x63b   :  { %v943_v17 = vsel %vm244_vm4, %v939_v16, 0.0 }
 0x63c   :  { %944 = vadd.xlane.f32.xlu0 %v943_v17 }
 0x64b   :  { %v660_v18 = vpop.xlane.xlu1 %659 }
 0x64c   :  { %2278 = vrcp.f32 %v660_v18 }
 0x652   :  { %v2279_v15 = vpop.eup %2278 }
 0x653   :  { %v662_v19 = vmul.f32 %v2279_v15, %v2273_v63  ;;  %v792_v20 = vpop.xlane.xlu1 %791  ;;  %v1056_v63 = vld [vmem:[%s3248_s13 + $0x20] sm:$0xff] }
 0x654   :  { %2280 = vrcp.f32 %v792_v20  ;;  %1082 = vmatpush.msra.mxu1 %v1056_v63  ;;  %v2990_v63 = vld [vmem:[#allocation12] ss:$0 sm:$0xff] }
 0x655   :  { %2122 = vmatmul.msk.f32.vlgmr.msra.gmra.mxu0 %vm346_vm12, %v662_v19  ;;  %2282 = vrcp.f32 %v858_v7 }
 0x656   :  { %1023 = vmatpush.msra.mxu0 %v1000_v35  ;;  %1083 = vmatpush.msra.mxu1 %v1055_v0 }
 0x658   :  { %1024 = vmatpush.msra.mxu0 %v999_v36 }
 0x65a   :  { %v2281_v21 = vpop.eup %2280  ;;  %1025 = vmatpush.msra.mxu0 %v998_v37 }
 0x65b   :  { %v794_v22 = vmul.f32 %v2281_v21, %v2275_v1  ;;  %v2283_v4 = vpop.eup %2282  ;;  %v1054_v1 = vld [vmem:[%s3248_s13 + $0x10] sm:$0xff] }
 0x65c   :  { %v860_v24 = vmul.f32 %v2283_v4, %v2271_v47  ;;  %1026 = vmatpush.msra.mxu0 %v997_v38  ;;  %1084 = vmatpush.msra.mxu1 %v1054_v1  ;;  %v2965_v4 = vld [vmem:[#allocation10] ss:$0 sm:$0xff] }
 0x65d   :  { %2128 = vmatmul.msk.f32.vlgmr.msrb.gmra.mxu0 %vm346_vm12, %v794_v22 }
 0x65e   :  { %1085 = vmatpush.msra.mxu1 %v1053_v2  ;;  %v2992_v2 = vld [vmem:[#allocation13] ss:$0 sm:$0xff] }
 0x660   :  { %1086 = vmatpush.msra.mxu1 %v1052_v3 }
 0x664   :  { %v752_v23 = vpop.f32.mrf.mxu3 }
 0x665   :  { %888 = vrot.lane.b32.xlu1 %v752_v23, %s2575_s25 }
 0x66b   :  { %v862_v25 = vpop.permute.xlu1 %861 }
 0x66c   :  { %882 = vmatpush.msra.mxu3 %v862_v25 }
 0x66d   :  { %2131 = vmatmul.msk.f32.vlgmr.msra.gmra.mxu3 %vm346_vm12, %v860_v24 }
 0x6af   :  { %v945_v26 = vpop.xlane.xlu0 %944 }
 0x6b0   :  { %v949_v27 = vmul.f32 %v945_v26, %v2757_v31 }
 0x6b2   :  { %v951_v28 = vsub.f32 %v939_v16, %v949_v27 }
 0x6b4   :  { %v953_v29 = vmul.f32 %v951_v28, %v951_v28 }
 0x6b6   :  { %v955_v30 = vsel %vm244_vm4, %v953_v29, 0.0 }
 0x6b7   :  { %956 = vadd.xlane.f32.xlu2 %v955_v30 }
 0x6d2   :  { %v686_v32 = vpop.f32.mrf.mxu0 }
 0x6d7   :  { %v889_v54 = vpop.permute.xlu1 %888 }
 0x6d8   :  { %v899_v56 = vsel %vm346_vm12, %v686_v32, %v889_v54  ;;  %v2139_v54 = vld [vmem:[%s3240_s5 + $0x28] sm:$0xff] }
 0x6da   :  { %v818_v33 = vpop.f32.mrf.mxu0 }
 0x6db   :  { %892 = vrot.lane.b32.xlu1 %v818_v33, %s3260_s4 }
 0x6f0   :  { %v884_v34 = vpop.f32.mrf.mxu3 }
 0x6f1   :  { %896 = vrot.lane.b32.xlu1 %v884_v34, %s3258_s28 }
 0x72a   :  { %v957_v39 = vpop.xlane.xlu2 %956 }
 0x72b   :  { %v961_v40 = vmul.f32 %v957_v39, %v2757_v31 }
 0x72d   :  { %v963_v41 = vadd.f32 1e-12, %v961_v40 }
 0x72f   :  { %2284 = vrsqrt.f32 %v963_v41  ;;  %vm971_vm0 = vweird.f32 %v963_v41 }
 0x735   :  { %v2285_v42 = vpop.eup %2284 }
 0x736   :  { %v966_v43 = vmul.f32 %v2285_v42, %v963_v41  ;;  %vm972_vm15 = vweird.f32 %v2285_v42 }
 0x737   :  { %vm973_vm1 = vmor %vm971_vm0, %vm972_vm15 }
 0x738   :  { %v967_v44 = vmul.f32 %v2285_v42, %v966_v43 }
 0x73a   :  { %v968_v45 = vmul.f32 0.5, %v967_v44 }
 0x73c   :  { %v969_v46 = vsub.f32 1.5, %v968_v45 }
 0x73e   :  { %v970_v47 = vmul.f32 %v2285_v42, %v969_v46 }
 0x740   :  { %v974_v49 = vsel %vm973_vm1, %v2285_v42, %v970_v47 }
 0x741   :  { %v985_v50 = vmul.f32 %v974_v49, %v951_v28 }
 0x743   :  { %v990_v52 = vmul.f32 %v2923_v48, %v985_v50 }
 0x745   :  { %v995_v53 = vadd.f32 %v2925_v51, %v990_v52  ;;  %v2141_v52 = vld [vmem:[%s3240_s5 + $0x38] sm:$0xff] }
 0x746   :  { %1180 = vmatpush.msrb.mxu3 %v2141_v52 }
 0x747   :  { %2134 = vmatmul.msk.f32.vlgmr.msra.gmra.mxu0 %vm244_vm4, %v995_v53 }
 0x74d   :  { %v893_v55 = vpop.permute.xlu1 %892 }
 0x74e   :  { %v900_v57 = vsel %vm620_vm13, %v899_v56, %v893_v55 }
 0x763   :  { %v897_v58 = vpop.permute.xlu1 %896 }
 0x764   :  { %v901_v59 = vsel %vm622_vm14, %v900_v57, %v897_v58 }
 0x765   :  { %2133 = vmatmul.msk.f32.gmra.mxu2 %vm244_vm4, %v901_v59 }
 0x7c4   :  { %v1028_v6 = vpop.f32.mrf.mxu0 }
 0x7c5   :  { %v1029_v7 = vadd.f32 %v2958_v5, %v1028_v6 }
 0x7c7   :  { %v1036_v8 = vmul.f32 0.044715, %v1029_v7  ;;  %v1034_v18 = vmul.f32 0.5, %v1029_v7 }
 0x7c9   :  { %v1038_v10 = vmul.f32 %v1036_v8, %v1029_v7 }
 0x7cb   :  { %v1040_v13 = vmul.f32 %v1038_v10, %v1029_v7 }
 0x7cd   :  { %v1042_v14 = vadd.f32 %v1040_v13, %v1029_v7 }
 0x7cf   :  { %v1044_v16 = vmul.f32 0.7978846, %v1042_v14 }
 0x7d1   :  { %2286 = vtanh.f32 %v1044_v16 }
 0x7d7   :  { %v2287_v17 = vpop.eup %2286 }
 0x7d8   :  { %v1048_v15 = vadd.f32 1.0, %v2287_v17 }
 0x7da   :  { %v1050_v19 = vmul.f32 %v1048_v15, %v1034_v18 }
 0x7dc   :  { %2136 = vmatmul.msk.f32.vlgmr.msra.gmra.mxu1 %vm1064_vm2, %v1050_v19 }
 0x7e8   :  { %v936_v20 = vpop.f32.mrf.mxu2 }
 0x7e9   :  { %v937_v21 = vadd.f32 %v2897_v12, %v936_v20 }
 0x7eb   :  { %v940_v22 = vadd.f32 %v937_v21, %v2781_v9  ;;  %v3005_v21 = vld [vmem:[%s3241_s6 + $0x1] ss:$0 sm:$0xff]  ;;  %s3270_s6 = smov 16  }
 0x7ed   :  { %v946_v23 = vsel %vm244_vm4, %v940_v22, 0.0 }
 0x7ee   :  { %947 = vadd.xlane.f32.xlu1 %v946_v23 }
 0x859   :  { %v1088_v24 = vpop.f32.mrf.mxu1 }
 0x85a   :  { %v1089_v25 = vadd.f32 %v2965_v4, %v1088_v24 }
 0x85c   :  { %v1094_v26 = vadd.f32 %v1089_v25, %v995_v53  ;;  %v2140_v53 = vld [vmem:[%s3240_s5 + $0x30] sm:$0xff] }
 0x85d   :  { %1181 = vmatpush.msrb.mxu3 %v2140_v53 }
 0x85e   :  { %v1098_v27 = vsel %vm244_vm4, %v1094_v26, 0.0 }
 0x85f   :  { %1099 = vadd.xlane.f32.xlu0 %v1098_v27  ;;  %1182 = vmatpush.msrb.mxu3 %v2139_v54 }
 0x861   :  { %v948_v28 = vpop.xlane.xlu1 %947 }
 0x862   :  { %v950_v29 = vmul.f32 %v948_v28, %v2757_v31 }
 0x864   :  { %v952_v30 = vsub.f32 %v940_v22, %v950_v29 }
 0x866   :  { %v954_v32 = vmul.f32 %v952_v30, %v952_v30 }
 0x868   :  { %v958_v12 = vsel %vm244_vm4, %v954_v32, 0.0 }
 0x869   :  { %959 = vadd.xlane.f32.xlu2 %v958_v12 }
 0x8d2   :  { %v1100_v9 = vpop.xlane.xlu0 %1099 }
 0x8d3   :  { %v1104_v33 = vmul.f32 %v1100_v9, %v2757_v31 }
 0x8d5   :  { %v1106_v34 = vsub.f32 %v1094_v26, %v1104_v33 }
 0x8d7   :  { %v1108_v35 = vmul.f32 %v1106_v34, %v1106_v34 }
 0x8d9   :  { %v1110_v36 = vsel %vm244_vm4, %v1108_v35, 0.0 }
 0x8da   :  { %1111 = vadd.xlane.f32.xlu2 %v1110_v36 }
 0x8dc   :  { %v960_v37 = vpop.xlane.xlu2 %959 }
 0x8dd   :  { %v962_v38 = vmul.f32 %v960_v37, %v2757_v31 }
 0x8df   :  { %v964_v39 = vadd.f32 1e-12, %v962_v38 }
 0x8e1   :  { %2288 = vrsqrt.f32 %v964_v39  ;;  %vm981_vm5 = vweird.f32 %v964_v39 }
 0x8e7   :  { %v2289_v40 = vpop.eup %2288 }
 0x8e8   :  { %v976_v41 = vmul.f32 %v2289_v40, %v964_v39  ;;  %vm982_vm3 = vweird.f32 %v2289_v40 }
 0x8e9   :  { %vm983_vm6 = vmor %vm981_vm5, %vm982_vm3 }
 0x8ea   :  { %v977_v42 = vmul.f32 %v2289_v40, %v976_v41 }
 0x8ec   :  { %v978_v43 = vmul.f32 0.5, %v977_v42 }
 0x8ee   :  { %v979_v44 = vsub.f32 1.5, %v978_v43 }
 0x8f0   :  { %v980_v45 = vmul.f32 %v2289_v40, %v979_v44 }
 0x8f2   :  { %v984_v46 = vsel %vm983_vm6, %v2289_v40, %v980_v45 }
 0x8f3   :  { %v986_v47 = vmul.f32 %v984_v46, %v952_v30 }
 0x8f5   :  { %v991_v49 = vmul.f32 %v2923_v48, %v986_v47  ;;  %v2138_v48 = vld [vmem:[%s3240_s5 + $0x20] sm:$0xff] }
 0x8f6   :  { %1183 = vmatpush.msrb.mxu3 %v2138_v48 }
 0x8f7   :  { %v996_v50 = vadd.f32 %v2925_v51, %v991_v49 }
 0x8f9   :  { %2135 = vmatmul.msk.f32.gmra.mxu0 %vm244_vm4, %v996_v50 }
 0x94d   :  { %v1112_v51 = vpop.xlane.xlu2 %1111 }
 0x94e   :  { %v1116_v55 = vmul.f32 %v1112_v51, %v2757_v31 }
 0x950   :  { %v1118_v56 = vadd.f32 1e-12, %v1116_v55 }
 0x952   :  { %2290 = vrsqrt.f32 %v1118_v56  ;;  %vm1126_vm8 = vweird.f32 %v1118_v56 }
 0x958   :  { %v2291_v57 = vpop.eup %2290 }
 0x959   :  { %v1121_v58 = vmul.f32 %v2291_v57, %v1118_v56  ;;  %vm1127_vm7 = vweird.f32 %v2291_v57 }
 0x95a   :  { %vm1128_vm9 = vmor %vm1126_vm8, %vm1127_vm7 }
 0x95b   :  { %v1122_v59 = vmul.f32 %v2291_v57, %v1121_v58 }
 0x95d   :  { %v1123_v60 = vmul.f32 0.5, %v1122_v59 }
 0x95f   :  { %v1124_v61 = vsub.f32 1.5, %v1123_v60 }
 0x961   :  { %v1125_v62 = vmul.f32 %v2291_v57, %v1124_v61 }
 0x963   :  { %v1129_v0 = vsel %vm1128_vm9, %v2291_v57, %v1125_v62 }
 0x964   :  { %v1140_v1 = vmul.f32 %v1129_v0, %v1106_v34 }
 0x966   :  { %v1145_v3 = vmul.f32 %v2990_v63, %v1140_v1 }
 0x968   :  { %v2996_v6 = vadd.f32 %v2992_v2, %v1145_v3 }
 0x96a   :  { %2143 = vmatmul.msk.f32.vlgmr.msrb.gmra.mxu3 %vm244_vm4, %v2996_v6 }
 0x976   :  { %v1031_v7 = vpop.f32.mrf.mxu0 }
 0x977   :  { %v1032_v8 = vadd.f32 %v2958_v5, %v1031_v7 }
 0x979   :  { %v1037_v10 = vmul.f32 0.044715, %v1032_v8  ;;  %v1035_v15 = vmul.f32 0.5, %v1032_v8 }
 0x97b   :  { %v1039_v13 = vmul.f32 %v1037_v10, %v1032_v8 }
 0x97d   :  { %v1041_v14 = vmul.f32 %v1039_v13, %v1032_v8 }
 0x97f   :  { %v1043_v16 = vadd.f32 %v1041_v14, %v1032_v8 }
 0x981   :  { %v1045_v17 = vmul.f32 0.7978846, %v1043_v16 }
 0x983   :  { %2292 = vtanh.f32 %v1045_v17 }
 0x989   :  { %v2293_v18 = vpop.eup %2292 }
 0x98a   :  { %v1049_v19 = vadd.f32 1.0, %v2293_v18 }
 0x98c   :  { %v1051_v20 = vmul.f32 %v1049_v19, %v1035_v15 }
 0x98e   :  { %2137 = vmatmul.msk.f32.gmra.mxu1 %vm1064_vm2, %v1051_v20 }
 0x9ed   :  { %v1185_v22 = vpop.f32.mrf.mxu3 }
 0x9ee   :  { %v3008_v5 = vadd.f32 %v3005_v21, %v1185_v22 }
 0x9f0   :  { %1258 = vrot.lane.b32.xlu1 %v3008_v5, %s2565_s21  ;;  %1192 = vrot.lane.b32.xlu2 %v3008_v5, %s2569_s15 }
 0x9f8   :  { %1388 = vrot.lane.b32.xlu1 %v3008_v5, %s2571_s2 }
 0xa0b   :  { %v1091_v23 = vpop.f32.mrf.mxu1 }
 0xa0c   :  { %v1092_v24 = vadd.f32 %v2965_v4, %v1091_v23 }
 0xa0e   :  { %v1095_v25 = vadd.f32 %v1092_v24, %v996_v50 }
 0xa10   :  { %v1101_v26 = vsel %vm244_vm4, %v1095_v25, 0.0 }
 0xa11   :  { %1102 = vadd.xlane.f32.xlu0 %v1101_v26 }
 0xa4a   :  { %v1193_v27 = vpop.permute.xlu2 %1192 }
 0xa4b   :  { %2145 = vmatpush.xpose.msk.msra.mxu2 %vm346_vm12, %v1193_v27 }
 0xa4e   :  { %2146 = vmatmul.msk.f32.vlgmr.msra.gmra.mxu2 %vm346_vm12, %v3008_v5 }
 0xa62   :  { %v1259_v28 = vpop.permute.xlu1 %1258 }
 0xa63   :  { %2148 = vmatpush.xpose.msk.msra.mxu3 %vm346_vm12, %v1259_v28 }
 0xa6a   :  { %v1389_v55 = vpop.permute.xlu1 %1388 }
 0xa84   :  { %v1103_v29 = vpop.xlane.xlu0 %1102 }
 0xa85   :  { %v1105_v30 = vmul.f32 %v1103_v29, %v2757_v31 }
 0xa87   :  { %v1107_v32 = vsub.f32 %v1095_v25, %v1105_v30 }
 0xa89   :  { %v1109_v12 = vmul.f32 %v1107_v32, %v1107_v32 }
 0xa8b   :  { %v1113_v4 = vsel %vm244_vm4, %v1109_v12, 0.0 }
 0xa8c   :  { %1114 = vadd.xlane.f32.xlu0 %v1113_v4 }
 0xad1   :  { %v1215_v9 = vpop.f32.mrf.mxu2 }
 0xad2   :  { %v1218_v33 = vmul.f32 0.35355338, %v1215_v9 }
 0xad4   :  { %v1219_v34 = vsel %vm346_vm12, %v1218_v33, -inf }
 0xad5   :  { %1220 = vmax.xlane.f32.xlu0 %v1219_v34 }
 0xae9   :  { %1256 = vrot.lane.b32.xlu0 %v3008_v5, %s2568_s22 }
 0xaf1   :  { %1390 = vrot.lane.b32.xlu0 %v3008_v5, %s2563_s12 }
 0xaf9   :  { %1230 = vrot.lane.b32.xlu0 %v3008_v5, %s2573_s23 }
 0xaff   :  { %v1115_v35 = vpop.xlane.xlu0 %1114 }
 0xb00   :  { %v1117_v36 = vmul.f32 %v1115_v35, %v2757_v31 }
 0xb01   :  { %1324 = vrot.lane.b32.xlu0 %v3008_v5, %s2570_s16 }
 0xb02   :  { %v1119_v37 = vadd.f32 1e-12, %v1117_v36 }
 0xb04   :  { %2294 = vrsqrt.f32 %v1119_v37  ;;  %vm1136_vm11 = vweird.f32 %v1119_v37 }
 0xb09   :  { %1322 = vrot.lane.b32.xlu0 %v3008_v5, %s2564_s20 }
 0xb0a   :  { %v2295_v38 = vpop.eup %2294 }
 0xb0b   :  { %v1131_v39 = vmul.f32 %v2295_v38, %v1119_v37  ;;  %vm1137_vm10 = vweird.f32 %v2295_v38 }
 0xb0c   :  { %vm1138_vm15 = vmor %vm1136_vm11, %vm1137_vm10  ;;  %vm2043_vm10 = vcmp.lt.s32.totalorder %v2745_v11, 50 }
 0xb0d   :  { %v1132_v40 = vmul.f32 %v2295_v38, %v1131_v39 }
 0xb0f   :  { %v1133_v41 = vmul.f32 0.5, %v1132_v40 }
 0xb11   :  { %v1134_v42 = vsub.f32 1.5, %v1133_v41 }
 0xb13   :  { %v1135_v43 = vmul.f32 %v2295_v38, %v1134_v42 }
 0xb15   :  { %v1139_v44 = vsel %vm1138_vm15, %v2295_v38, %v1135_v43 }
 0xb16   :  { %v1141_v45 = vmul.f32 %v1139_v44, %v1107_v32 }
 0xb18   :  { %v1146_v46 = vmul.f32 %v2990_v63, %v1141_v45 }
 0xb1a   :  { %v3038_v47 = vadd.f32 %v2992_v2, %v1146_v46 }
 0xb1c   :  { %2144 = vmatmul.msk.f32.gmra.mxu3 %vm244_vm4, %v3038_v47 }
 0xb48   :  { %v1221_v49 = vpop.xlane.xlu0 %1220 }
 0xb49   :  { %v1222_v50 = vsub.f32 %v1218_v33, %v1221_v49 }
 0xb4b   :  { %v1223_v52 = vmul.f32 1.442695, %v1222_v50 }
 0xb4d   :  { %2296 = vpow2.f32 %v1223_v52 }
 0xb53   :  { %v2297_v53 = vpop.eup %2296 }
 0xb54   :  { %v1225_v54 = vsel %vm346_vm12, %v2297_v53, 0.0 }
 0xb55   :  { %1226 = vadd.xlane.f32.xlu2 %v1225_v54 }
 0xb5b   :  { %v1257_v48 = vpop.permute.xlu0 %1256 }
 0xb5c   :  { %2149 = vmatmul.msk.f32.vlgmr.msra.gmra.mxu3 %vm346_vm12, %v1257_v48 }
 0xb63   :  { %v1391_v51 = vpop.permute.xlu0 %1390 }
 0xb64   :  { %2154 = vmatpush.xpose.msk.msrb.mxu3 %vm346_vm12, %v1391_v51 }
 0xb67   :  { %2155 = vmatmul.msk.f32.vlgmr.msrb.gmra.mxu3 %vm346_vm12, %v1389_v55 }
 0xb6b   :  { %v1231_v56 = vpop.permute.xlu0 %1230 }
 0xb6c   :  { %1251 = vmatpush.msrb.mxu0 %v1231_v56 }
 0xb73   :  { %v1325_v57 = vpop.permute.xlu0 %1324 }
 0xb74   :  { %2151 = vmatpush.xpose.msk.msra.mxu0 %vm346_vm12, %v1325_v57 }
 0xb7b   :  { %v1323_v63 = vpop.permute.xlu0 %1322 }
 0xb9f   :  { %v1188_v58 = vpop.f32.mrf.mxu3 }
 0xba0   :  { %v3048_v59 = vadd.f32 %v3005_v21, %v1188_v58 }
 0xba2   :  { %1536 = vrot.lane.b32.xlu1 %v3048_v59, %s2565_s21  ;;  %1666 = vrot.lane.b32.xlu0 %v3048_v59, %s2571_s2  ;;  %v2222_v43 = vpack.i.bf16 %v3048_v59, %v3008_v5 }
 0xba3   :  { %1470 = vrot.lane.b32.xlu2 %v3048_v59, %s2569_s15 }
 0xbaa   :  { %1534 = vrot.lane.b32.xlu1 %v3048_v59, %s2568_s22  ;;  %1600 = vrot.lane.b32.xlu0 %v3048_v59, %s2564_s20 }
 0xbb2   :  { %1668 = vrot.lane.b32.xlu1 %v3048_v59, %s2563_s12  ;;  %s3271_s12 = smov 24  }
 0xbba   :  { %1602 = vrot.lane.b32.xlu1 %v3048_v59, %s2570_s16 }
 0xbc8   :  { %v1227_v60 = vpop.xlane.xlu2 %1226 }
 0xbc9   :  { %2298 = vrcp.f32 %v1227_v60 }
 0xbcf   :  { %v2299_v61 = vpop.eup %2298 }
 0xbd0   :  { %v1229_v62 = vmul.f32 %v2299_v61, %v2297_v53 }
 0xbd2   :  { %2147 = vmatmul.msk.f32.vlgmr.msrb.gmra.mxu0 %vm346_vm12, %v1229_v62 }
 0xbda   :  { %2152 = vmatmul.msk.f32.vlgmr.msra.gmra.mxu0 %vm346_vm12, %v1323_v63 }
 0xbdf   :  { %v1281_v0 = vpop.f32.mrf.mxu3 }
 0xbe0   :  { %v1284_v1 = vmul.f32 0.35355338, %v1281_v0 }
 0xbe2   :  { %v1285_v2 = vsel %vm346_vm12, %v1284_v1, -inf }
 0xbe4   :  { %1286 = vmax.xlane.f32.xlu1 %v1285_v2 }
 0xbea   :  { %v1413_v3 = vpop.f32.mrf.mxu3 }
 0xbeb   :  { %v1416_v7 = vmul.f32 0.35355338, %v1413_v3 }
 0xbed   :  { %v1417_v8 = vsel %vm346_vm12, %v1416_v7, -inf }
 0xbee   :  { %1418 = vmax.xlane.f32.xlu0 %v1417_v8 }
 0xbfd   :  { %v1471_v10 = vpop.permute.xlu2 %1470 }
 0xbfe   :  { %2157 = vmatpush.xpose.msk.msrb.mxu0 %vm346_vm12, %v1471_v10 }
 0xc01   :  { %2158 = vmatmul.msk.f32.vlgmr.msrb.gmra.mxu0 %vm346_vm12, %v3048_v59 }
 0xc14   :  { %v1537_v13 = vpop.permute.xlu1 %1536  ;;  %v1667_v17 = vpop.permute.xlu0 %1666 }
 0xc15   :  { %2160 = vmatpush.xpose.msk.msra.mxu3 %vm346_vm12, %v1537_v13 }
 0xc1c   :  { %v1535_v14 = vpop.permute.xlu1 %1534  ;;  %v1601_v15 = vpop.permute.xlu0 %1600 }
 0xc1d   :  { %2161 = vmatmul.msk.f32.vlgmr.msra.gmra.mxu3 %vm346_vm12, %v1535_v14 }
 0xc24   :  { %v1669_v16 = vpop.permute.xlu1 %1668 }
 0xc25   :  { %2166 = vmatpush.xpose.msk.msrb.mxu3 %vm346_vm12, %v1669_v16 }
 0xc28   :  { %2167 = vmatmul.msk.f32.vlgmr.msrb.gmra.mxu3 %vm346_vm12, %v1667_v17 }
 0xc2c   :  { %v1603_v18 = vpop.permute.xlu1 %1602 }
 0xc2d   :  { %2163 = vmatpush.xpose.msk.msra.mxu0 %vm346_vm12, %v1603_v18 }
 0xc30   :  { %2164 = vmatmul.msk.f32.vlgmr.msra.gmra.mxu0 %vm346_vm12, %v1601_v15 }
 0xc4f   :  { %v3081_v26 = vpop.f32.mrf.mxu0 }
 0xc57   :  { %v1287_v19 = vpop.xlane.xlu1 %1286  ;;  %v1347_v30 = vpop.f32.mrf.mxu0 }
 0xc58   :  { %v1288_v20 = vsub.f32 %v1284_v1, %v1287_v19  ;;  %v1350_v32 = vmul.f32 0.35355338, %v1347_v30 }
 0xc5a   :  { %v1289_v21 = vmul.f32 1.442695, %v1288_v20  ;;  %v1351_v12 = vsel %vm346_vm12, %v1350_v32, -inf }
 0xc5c   :  { %2300 = vpow2.f32 %v1289_v21 }
 0xc61   :  { %v1419_v22 = vpop.xlane.xlu0 %1418 }
 0xc62   :  { %v3077_v23 = vpop.eup %2300  ;;  %v1420_v24 = vsub.f32 %v1416_v7, %v1419_v22 }
 0xc63   :  { %v1291_v25 = vsel %vm346_vm12, %v3077_v23, 0.0 }
 0xc64   :  { %v1421_v27 = vmul.f32 1.442695, %v1420_v24  ;;  %1292 = vadd.xlane.f32.xlu0 %v1291_v25 }
 0xc66   :  { %2302 = vpow2.f32 %v1421_v27 }
 0xc6c   :  { %v3083_v28 = vpop.eup %2302 }
 0xc6d   :  { %v1423_v29 = vsel %vm346_vm12, %v3083_v28, 0.0 }
 0xc6e   :  { %1424 = vadd.xlane.f32.xlu2 %v1423_v29 }
 0xc76   :  { %1352 = vmax.xlane.f32.xlu2 %v1351_v12 }
 0xc7e   :  { %v1493_v4 = vpop.f32.mrf.mxu0 }
 0xc7f   :  { %v1496_v9 = vmul.f32 0.35355338, %v1493_v4 }
 0xc81   :  { %v1497_v33 = vsel %vm346_vm12, %v1496_v9, -inf }
 0xc82   :  { %1498 = vmax.xlane.f32.xlu0 %v1497_v33 }
 0xca0   :  { %v1559_v34 = vpop.f32.mrf.mxu3 }
 0xca1   :  { %v1562_v35 = vmul.f32 0.35355338, %v1559_v34 }
 0xca3   :  { %v1563_v36 = vsel %vm346_vm12, %v1562_v35, -inf }
 0xca4   :  { %1564 = vmax.xlane.f32.xlu1 %v1563_v36 }
 0xcab   :  { %v1691_v37 = vpop.f32.mrf.mxu3 }
 0xcac   :  { %v1694_v38 = vmul.f32 0.35355338, %v1691_v37 }
 0xcad   :  { %v1625_v39 = vpop.f32.mrf.mxu0 }
 0xcae   :  { %v1628_v40 = vmul.f32 0.35355338, %v1625_v39  ;;  %v1695_v41 = vsel %vm346_vm12, %v1694_v38, -inf }
 0xcaf   :  { %1696 = vmax.xlane.f32.xlu2 %v1695_v41 }
 0xcb0   :  { %v1629_v42 = vsel %vm346_vm12, %v1628_v40, -inf }
 0xcb1   :  { %1630 = vmax.xlane.f32.xlu1 %v1629_v42 }
 0xcc7   :  { %1362 = vrot.lane.b32.xlu2 %v3008_v5, %s2566_s14 }
 0xcca   :  { %2223 = vrot.lane.b32.xlu1 %v2222_v43, %s2567_s1  ;;  %v2172_v43 = vld [vmem:[%s3242_s7 + $0x38] sm:$0xff] }
 0xccb   :  { %1775 = vmatpush.msrb.mxu0 %v2172_v43 }
 0xcd7   :  { %v1293_v53 = vpop.xlane.xlu0 %1292 }
 0xce1   :  { %v1425_v44 = vpop.xlane.xlu2 %1424 }
 0xce9   :  { %v1353_v45 = vpop.xlane.xlu2 %1352 }
 0xcea   :  { %v1354_v46 = vsub.f32 %v1350_v32, %v1353_v45 }
 0xcec   :  { %v1355_v49 = vmul.f32 1.442695, %v1354_v46  ;;  %v2170_v46 = vld [vmem:[%s3242_s7 + $0x28] sm:$0xff] }
 0xcee   :  { %2304 = vpow2.f32 %v1355_v49 }
 0xcf4   :  { %v2305_v50 = vpop.eup %2304 }
 0xcf5   :  { %v1357_v52 = vsel %vm346_vm12, %v2305_v50, 0.0  ;;  %v1499_v54 = vpop.xlane.xlu0 %1498 }
 0xcf6   :  { %1358 = vadd.xlane.f32.xlu0 %v1357_v52  ;;  %v1500_v55 = vsub.f32 %v1496_v9, %v1499_v54  ;;  %v2169_v52 = vld [vmem:[%s3242_s7 + $0x20] sm:$0xff] }
 0xcf8   :  { %v1501_v57 = vmul.f32 1.442695, %v1500_v55 }
 0xd0a   :  { %1428 = vrot.lane.b32.xlu0 %v3008_v5, %s2572_s24 }
 0xd17   :  { %v1565_v48 = vpop.xlane.xlu1 %1564 }
 0xd18   :  { %v1566_v51 = vsub.f32 %v1562_v35, %v1565_v48 }
 0xd1a   :  { %v1567_v56 = vmul.f32 1.442695, %v1566_v51 }
 0xd1c   :  { %2306 = vpow2.f32 %v1567_v56 }
 0xd1d   :  { %2308 = vpow2.f32 %v1501_v57 }
 0xd22   :  { %v2307_v58 = vpop.eup %2306  ;;  %v1697_v60 = vpop.xlane.xlu2 %1696 }
 0xd23   :  { %v1698_v61 = vsub.f32 %v1694_v38, %v1697_v60  ;;  %v1569_v62 = vsel %vm346_vm12, %v2307_v58, 0.0  ;;  %v2309_v2 = vpop.eup %2308 }
 0xd24   :  { %v1631_v63 = vpop.xlane.xlu1 %1630  ;;  %1570 = vadd.xlane.f32.xlu2 %v1569_v62  ;;  %v1503_v7 = vsel %vm346_vm12, %v2309_v2, 0.0 }
 0xd25   :  { %v1699_v0 = vmul.f32 1.442695, %v1698_v61  ;;  %v1632_v1 = vsub.f32 %v1628_v40, %v1631_v63 }
 0xd27   :  { %2310 = vpow2.f32 %v1699_v0  ;;  %v1633_v5 = vmul.f32 1.442695, %v1632_v1 }
 0xd29   :  { %2312 = vpow2.f32 %v1633_v5 }
 0xd2a   :  { %v1363_v3 = vpop.permute.xlu2 %1362  ;;  %2314 = vrcp.f32 %v1293_v53 }
 0xd2b   :  { %1383 = vmatpush.msrb.mxu1 %v1363_v3 }
 0xd2c   :  { %1504 = vadd.xlane.f32.xlu2 %v1503_v7 }
 0xd2d   :  { %v2311_v8 = vpop.eup %2310 }
 0xd2e   :  { %v1701_v10 = vsel %vm346_vm12, %v2311_v8, 0.0 }
 0xd2f   :  { %1702 = vadd.xlane.f32.xlu1 %v1701_v10  ;;  %v2313_v13 = vpop.eup %2312 }
 0xd30   :  { %v1635_v14 = vsel %vm346_vm12, %v2313_v13, 0.0  ;;  %v2315_v16 = vpop.eup %2314 }
 0xd31   :  { %v1295_v15 = vmul.f32 %v2315_v16, %v3077_v23 }
 0xd34   :  { %1636 = vadd.xlane.f32.xlu0 %v1635_v14 }
 0xd3c   :  { %v2224_v17 = vpop.permute.xlu1 %2223 }
 0xd3d   :  { %v2225_v18 = vunpack.i.l.bf16 %v2224_v17  ;;  %v2226_v25 = vunpack.i.h.bf16 %v2224_v17 }
 0xd3f   :  { %1317 = vmatpush.msrb.mxu2 %v2225_v18 }
 0xd40   :  { %2150 = vmatmul.msk.f32.vlgmr.msrb.gmra.mxu2 %vm346_vm12, %v1295_v15 }
 0xd44   :  { %1508 = vrot.lane.b32.xlu2 %v3048_v59, %s2573_s23 }
 0xd4c   :  { %1706 = vrot.lane.b32.xlu2 %v3048_v59, %s2572_s24 }
 0xd54   :  { %1640 = vrot.lane.b32.xlu2 %v3048_v59, %s2566_s14 }
 0xd69   :  { %v1359_v19 = vpop.xlane.xlu0 %1358 }
 0xd6a   :  { %2316 = vrcp.f32 %v1359_v19 }
 0xd6b   :  { %2318 = vrcp.f32 %v1425_v44  ;;  %v2171_v44 = vld [vmem:[%s3242_s7 + $0x30] sm:$0xff] }
 0xd6c   :  { %1776 = vmatpush.msrb.mxu0 %v2171_v44 }
 0xd6e   :  { %1777 = vmatpush.msrb.mxu0 %v2170_v46 }
 0xd70   :  { %v2317_v20 = vpop.eup %2316  ;;  %1778 = vmatpush.msrb.mxu0 %v2169_v52 }
 0xd71   :  { %v1361_v21 = vmul.f32 %v2317_v20, %v2305_v50  ;;  %v2319_v22 = vpop.eup %2318 }
 0xd72   :  { %v1427_v23 = vmul.f32 %v2319_v22, %v3083_v28  ;;  %v2178_v22 = vld [vmem:[%s3246_s11 + $0x30] sm:$0xff] }
 0xd73   :  { %2153 = vmatmul.msk.f32.vlgmr.msrb.gmra.mxu1 %vm346_vm12, %v1361_v21 }
 0xd7c   :  { %v1429_v24 = vpop.permute.xlu0 %1428 }
 0xd7d   :  { %1449 = vmatpush.msra.mxu2 %v1429_v24  ;;  %v2176_v24 = vld [vmem:[%s3246_s11 + $0x20] sm:$0xff] }
 0xd7e   :  { %2156 = vmatmul.msk.f32.vlgmr.msra.gmra.mxu2 %vm346_vm12, %v1427_v23  ;;  %v2177_v23 = vld [vmem:[%s3246_s11 + $0x28] sm:$0xff] }
 0xd7f   :  { %1595 = vmatpush.msrb.mxu2 %v2226_v25 }
 0xd97   :  { %v1571_v27 = vpop.xlane.xlu2 %1570 }
 0xd98   :  { %2320 = vrcp.f32 %v1571_v27 }
 0xd9e   :  { %v2321_v29 = vpop.eup %2320 }
 0xd9f   :  { %v1573_v59 = vmul.f32 %v2321_v29, %v2307_v58  ;;  %v1505_v30 = vpop.xlane.xlu2 %1504 }
 0xda0   :  { %2322 = vrcp.f32 %v1505_v30 }
 0xda1   :  { %2162 = vmatmul.msk.f32.vlgmr.msrb.gmra.mxu2 %vm346_vm12, %v1573_v59 }
 0xda2   :  { %v1703_v32 = vpop.xlane.xlu1 %1702 }
 0xda3   :  { %2324 = vrcp.f32 %v1703_v32 }
 0xda6   :  { %v2323_v12 = vpop.eup %2322 }
 0xda7   :  { %v1507_v4 = vmul.f32 %v2323_v12, %v2309_v2  ;;  %v1509_v9 = vpop.permute.xlu2 %1508  ;;  %v1637_v28 = vpop.xlane.xlu0 %1636 }
 0xda8   :  { %1529 = vmatpush.msra.mxu1 %v1509_v9  ;;  %2326 = vrcp.f32 %v1637_v28  ;;  %v2239_v28 = vld [vmem:[#allocation6 + $0x1] ss:$0 sm:$0xff] }
 0xda9   :  { %2159 = vmatmul.msk.f32.vlgmr.msra.gmra.mxu1 %vm346_vm12, %v1507_v4  ;;  %v2325_v33 = vpop.eup %2324 }
 0xdaa   :  { %v1705_v34 = vmul.f32 %v2325_v33, %v2311_v8 }
 0xdae   :  { %v2327_v36 = vpop.eup %2326 }
 0xdaf   :  { %v1707_v35 = vpop.permute.xlu2 %1706  ;;  %v1639_v37 = vmul.f32 %v2327_v36, %v2313_v13 }
 0xdb0   :  { %1727 = vmatpush.msra.mxu2 %v1707_v35  ;;  %v2240_v35 = vld [vmem:[#allocation7 + $0x1] ss:$0 sm:$0xff] }
 0xdb1   :  { %2168 = vmatmul.msk.f32.vlgmr.msra.gmra.mxu2 %vm346_vm12, %v1705_v34 }
 0xdb7   :  { %v1641_v38 = vpop.permute.xlu2 %1640 }
 0xdb8   :  { %1661 = vmatpush.msrb.mxu1 %v1641_v38 }
 0xdb9   :  { %2165 = vmatmul.msk.f32.vlgmr.msrb.gmra.mxu1 %vm346_vm12, %v1639_v37 }
 0xdc3   :  { %v1319_v39 = vpop.f32.mrf.mxu2 }
 0xdc4   :  { %1455 = vrot.lane.b32.xlu1 %v1319_v39, %s2575_s25 }
 0xdf0   :  { %v1385_v40 = vpop.f32.mrf.mxu1 }
 0xdf1   :  { %1459 = vrot.lane.b32.xlu2 %v1385_v40, %s3270_s6 }
 0xe01   :  { %v1451_v41 = vpop.f32.mrf.mxu2 }
 0xe02   :  { %1463 = vrot.lane.b32.xlu0 %v1451_v41, %s3271_s12 }
 0xe24   :  { %v1597_v42 = vpop.f32.mrf.mxu2 }
 0xe25   :  { %1733 = vrot.lane.b32.xlu2 %v1597_v42, %s2575_s25 }
 0xe26   :  { %v1531_v45 = vpop.f32.mrf.mxu1 }
 0xe34   :  { %v1729_v49 = vpop.f32.mrf.mxu2 }
 0xe35   :  { %1741 = vrot.lane.b32.xlu1 %v1729_v49, %s3271_s12 }
 0xe36   :  { %v1663_v50 = vpop.f32.mrf.mxu1  ;;  %v1456_v53 = vpop.permute.xlu1 %1455 }
 0xe37   :  { %1737 = vrot.lane.b32.xlu2 %v1663_v50, %s3270_s6  ;;  %v1466_v48 = vsel %vm346_vm12, %v3081_v26, %v1456_v53  ;;  %v2238_v26 = vld [vmem:[%s3243_s8 + $0x1] ss:$0 sm:$0xff] }
 0xe4b   :  { %v1460_v54 = vpop.permute.xlu2 %1459 }
 0xe4c   :  { %v1467_v51 = vsel %vm620_vm13, %v1466_v48, %v1460_v54  ;;  %v2189_v54 = vld [vmem:[%s3248_s13 + $0x78] sm:$0xff]  ;;  %v2188_v48 = vld [vmem:[%s3248_s13 + $0x70] sm:$0xff] }
 0xe4d   :  { %1931 = vmatpush.msra.mxu3 %v2189_v54 }
 0xe4f   :  { %1932 = vmatpush.msra.mxu3 %v2188_v48  ;;  %v2243_v48 = vld [vmem:[#allocation12 + $0x1] ss:$0 sm:$0xff] }
 0xe74   :  { %v1464_v55 = vpop.permute.xlu0 %1463 }
 0xe75   :  { %v1468_v56 = vsel %vm622_vm14, %v1467_v51, %v1464_v55  ;;  %v2187_v51 = vld [vmem:[%s3248_s13 + $0x68] sm:$0xff]  ;;  %v2186_v55 = vld [vmem:[%s3248_s13 + $0x60] sm:$0xff] }
 0xe76   :  { %2174 = vmatmul.msk.f32.vlgmr.msrb.gmra.mxu0 %vm244_vm4, %v1468_v56  ;;  %1933 = vmatpush.msra.mxu3 %v2187_v51  ;;  %v2185_v56 = vld [vmem:[%s3248_s13 + $0x58] sm:$0xff] }
 0xe78   :  { %1934 = vmatpush.msra.mxu3 %v2186_v55 }
 0xe7a   :  { %1935 = vmatpush.msra.mxu3 %v2185_v56  ;;  %v2244_v56 = vld [vmem:[#allocation13 + $0x1] ss:$0 sm:$0xff] }
 0xe7f   :  { %v1734_v57 = vpop.permute.xlu2 %1733 }
 0xe80   :  { %v1744_v60 = vsel %vm346_vm12, %v1531_v45, %v1734_v57  ;;  %v2184_v57 = vld [vmem:[%s3248_s13 + $0x50] sm:$0xff] }
 0xe81   :  { %1936 = vmatpush.msra.mxu3 %v2184_v57 }
 0xe91   :  { %v1738_v58 = vpop.permute.xlu2 %1737 }
 0xe92   :  { %v1745_v61 = vsel %vm620_vm13, %v1744_v60, %v1738_v58  ;;  %v2183_v58 = vld [vmem:[%s3248_s13 + $0x48] sm:$0xff]  ;;  %v2182_v60 = vld [vmem:[%s3248_s13 + $0x40] sm:$0xff] }
 0xe93   :  { %1937 = vmatpush.msra.mxu3 %v2183_v58 }
 0xe95   :  { %1938 = vmatpush.msra.mxu3 %v2182_v60 }
 0xea7   :  { %v1742_v62 = vpop.permute.xlu1 %1741 }
 0xea8   :  { %v1746_v63 = vsel %vm622_vm14, %v1745_v61, %v1742_v62  ;;  %v2241_v61 = vld [vmem:[#allocation9 + $0x1] ss:$0 sm:$0xff] }
 0xea9   :  { %2175 = vmatmul.msk.f32.gmra.mxu0 %vm244_vm4, %v1746_v63 }
 0xef3   :  { %v1780_v0 = vpop.f32.mrf.mxu0 }
 0xef4   :  { %v1781_v1 = vadd.f32 %v2238_v26, %v1780_v0 }
 0xef6   :  { %v1786_v5 = vadd.f32 %v1781_v1, %v2996_v6 }
 0xef8   :  { %v1792_v2 = vsel %vm244_vm4, %v1786_v5, 0.0 }
 0xef9   :  { %1793 = vadd.xlane.f32.xlu0 %v1792_v2 }
 0xf26   :  { %v1783_v3 = vpop.f32.mrf.mxu0 }
 0xf27   :  { %v1784_v7 = vadd.f32 %v2238_v26, %v1783_v3 }
 0xf29   :  { %v1787_v8 = vadd.f32 %v1784_v7, %v3038_v47  ;;  %v2179_v47 = vld [vmem:[%s3246_s11 + $0x38] sm:$0xff] }
 0xf2a   :  { %1874 = vmatpush.msra.mxu1 %v2179_v47 }
 0xf2b   :  { %v1795_v10 = vsel %vm244_vm4, %v1787_v8, 0.0 }
 0xf2c   :  { %1796 = vadd.xlane.f32.xlu2 %v1795_v10  ;;  %1875 = vmatpush.msra.mxu1 %v2178_v22  ;;  %v2242_v22 = vld [vmem:[#allocation10 + $0x1] ss:$0 sm:$0xff] }
 0xf2e   :  { %1876 = vmatpush.msra.mxu1 %v2177_v23 }
 0xf30   :  { %1877 = vmatpush.msra.mxu1 %v2176_v24 }
 0xf6c   :  { %v1794_v13 = vpop.xlane.xlu0 %1793 }
 0xf6d   :  { %v1798_v14 = vmul.f32 %v1794_v13, %v2757_v31 }
 0xf6f   :  { %v1800_v16 = vsub.f32 %v1786_v5, %v1798_v14 }
 0xf71   :  { %v1802_v17 = vmul.f32 %v1800_v16, %v1800_v16 }
 0xf73   :  { %v1804_v18 = vsel %vm244_vm4, %v1802_v17, 0.0 }
 0xf74   :  { %1805 = vadd.xlane.f32.xlu1 %v1804_v18 }
 0xf9f   :  { %v1797_v15 = vpop.xlane.xlu2 %1796 }
 0xfa0   :  { %v1799_v6 = vmul.f32 %v1797_v15, %v2757_v31 }
 0xfa2   :  { %v1801_v19 = vsub.f32 %v1787_v8, %v1799_v6 }
 0xfa4   :  { %v1803_v20 = vmul.f32 %v1801_v19, %v1801_v19 }
 0xfa6   :  { %v1807_v21 = vsel %vm244_vm4, %v1803_v20, 0.0 }
 0xfa7   :  { %1808 = vadd.xlane.f32.xlu0 %v1807_v21 }
 0xfe7   :  { %v1806_v25 = vpop.xlane.xlu1 %1805 }
 0xfe8   :  { %v1810_v27 = vmul.f32 %v1806_v25, %v2757_v31 }
 0xfea   :  { %v1812_v29 = vadd.f32 1e-12, %v1810_v27 }
 0xfec   :  { %2328 = vrsqrt.f32 %v1812_v29  ;;  %vm1820_vm13 = vweird.f32 %v1812_v29 }
 0xff2   :  { %v2329_v59 = vpop.eup %2328 }
 0xff3   :  { %v1815_v30 = vmul.f32 %v2329_v59, %v1812_v29  ;;  %vm1821_vm12 = vweird.f32 %v2329_v59 }
 0xff4   :  { %vm1822_vm14 = vmor %vm1820_vm13, %vm1821_vm12 }
 0xff5   :  { %v1816_v32 = vmul.f32 %v2329_v59, %v1815_v30 }
 0xff7   :  { %v1817_v12 = vmul.f32 0.5, %v1816_v32 }
 0xff9   :  { %v1818_v4 = vsub.f32 1.5, %v1817_v12 }
 0xffb   :  { %v1819_v9 = vmul.f32 %v2329_v59, %v1818_v4 }
 0xffd   :  { %v1823_v33 = vsel %vm1822_vm14, %v2329_v59, %v1819_v9 }
 0xffe   :  { %v1834_v34 = vmul.f32 %v1823_v33, %v1800_v16 }
0x1000   :  { %v1839_v36 = vmul.f32 %v2239_v28, %v1834_v34 }
0x1002   :  { %v3170_v37 = vadd.f32 %v2240_v35, %v1839_v36 }
0x1004   :  { %2180 = vmatmul.msk.f32.vlgmr.msra.gmra.mxu1 %vm244_vm4, %v3170_v37 }
0x101a   :  { %v1809_v38 = vpop.xlane.xlu0 %1808 }
0x101b   :  { %v1811_v39 = vmul.f32 %v1809_v38, %v2757_v31 }
0x101d   :  { %v1813_v40 = vadd.f32 1e-12, %v1811_v39  ;;  %v2009_v39 = vld [vmem:[%s3252_s17 + $0x18] sm:$0xff] }
0x101e   :  { %2032 = vmatpush.msrb.mxu2 %v2009_v39 }
0x101f   :  { %2330 = vrsqrt.f32 %v1813_v40  ;;  %vm1830_vm1 = vweird.f32 %v1813_v40 }
0x1025   :  { %v2331_v41 = vpop.eup %2330 }
0x1026   :  { %v1825_v42 = vmul.f32 %v2331_v41, %v1813_v40  ;;  %vm1831_vm0 = vweird.f32 %v2331_v41  ;;  %v2008_v40 = vld [vmem:[%s3252_s17 + $0x10] sm:$0xff] }
0x1027   :  { %vm1832_vm3 = vmor %vm1830_vm1, %vm1831_vm0  ;;  %2033 = vmatpush.msrb.mxu2 %v2008_v40 }
0x1028   :  { %v1826_v43 = vmul.f32 %v2331_v41, %v1825_v42  ;;  %v2006_v42 = vld [vmem:[%s3252_s17] sm:$0xff] }
0x102a   :  { %v1827_v44 = vmul.f32 0.5, %v1826_v43 }
0x102c   :  { %v1828_v45 = vsub.f32 1.5, %v1827_v44 }
0x102e   :  { %v1829_v46 = vmul.f32 %v2331_v41, %v1828_v45 }
0x1030   :  { %v1833_v49 = vsel %vm1832_vm3, %v2331_v41, %v1829_v46  ;;  %v2007_v41 = vld [vmem:[%s3252_s17 + $0x8] sm:$0xff] }
0x1031   :  { %v1835_v50 = vmul.f32 %v1833_v49, %v1801_v19  ;;  %2034 = vmatpush.msrb.mxu2 %v2007_v41 }
0x1033   :  { %v1840_v52 = vmul.f32 %v2239_v28, %v1835_v50  ;;  %2035 = vmatpush.msrb.mxu2 %v2006_v42 }
0x1035   :  { %v1845_v53 = vadd.f32 %v2240_v35, %v1840_v52 }
0x1037   :  { %2181 = vmatmul.msk.f32.gmra.mxu1 %vm244_vm4, %v1845_v53 }
0x1081   :  { %v1879_v62 = vpop.f32.mrf.mxu1 }
0x1082   :  { %v1880_v63 = vadd.f32 %v2241_v61, %v1879_v62 }
0x1084   :  { %v1887_v26 = vmul.f32 0.044715, %v1880_v63  ;;  %v1885_v7 = vmul.f32 0.5, %v1880_v63 }
0x1086   :  { %v1889_v0 = vmul.f32 %v1887_v26, %v1880_v63 }
0x1088   :  { %v1891_v1 = vmul.f32 %v1889_v0, %v1880_v63 }
0x108a   :  { %v1893_v5 = vadd.f32 %v1891_v1, %v1880_v63 }
0x108c   :  { %v1895_v2 = vmul.f32 0.7978846, %v1893_v5 }
0x108e   :  { %2332 = vtanh.f32 %v1895_v2 }
0x1094   :  { %v2333_v3 = vpop.eup %2332 }
0x1095   :  { %v1899_v8 = vadd.f32 1.0, %v2333_v3 }
0x1097   :  { %v1901_v10 = vmul.f32 %v1899_v8, %v1885_v7 }
0x1099   :  { %2190 = vmatmul.msk.f32.vlgmr.msra.gmra.mxu3 %vm1064_vm2, %v1901_v10 }
0x10b4   :  { %v1882_v13 = vpop.f32.mrf.mxu1 }
0x10b5   :  { %v1883_v14 = vadd.f32 %v2241_v61, %v1882_v13 }
0x10b7   :  { %v1888_v16 = vmul.f32 0.044715, %v1883_v14  ;;  %v1886_v20 = vmul.f32 0.5, %v1883_v14 }
0x10b9   :  { %v1890_v17 = vmul.f32 %v1888_v16, %v1883_v14 }
0x10bb   :  { %v1892_v18 = vmul.f32 %v1890_v17, %v1883_v14 }
0x10bd   :  { %v1894_v15 = vadd.f32 %v1892_v18, %v1883_v14 }
0x10bf   :  { %v1896_v6 = vmul.f32 0.7978846, %v1894_v15 }
0x10c1   :  { %2334 = vtanh.f32 %v1896_v6 }
0x10c7   :  { %v2335_v19 = vpop.eup %2334 }
0x10c8   :  { %v1900_v21 = vadd.f32 1.0, %v2335_v19 }
0x10ca   :  { %v1902_v47 = vmul.f32 %v1900_v21, %v1886_v20 }
0x10cc   :  { %2191 = vmatmul.msk.f32.gmra.mxu3 %vm1064_vm2, %v1902_v47 }
0x111c   :  { %v1940_v23 = vpop.f32.mrf.mxu3 }
0x111d   :  { %v1941_v24 = vadd.f32 %v2242_v22, %v1940_v23 }
0x111f   :  { %v1946_v25 = vadd.f32 %v1941_v24, %v3170_v37 }
0x1121   :  { %v1952_v27 = vsel %vm244_vm4, %v1946_v25, 0.0 }
0x1122   :  { %1953 = vadd.xlane.f32.xlu2 %v1952_v27 }
0x114f   :  { %v1943_v29 = vpop.f32.mrf.mxu3 }
0x1150   :  { %v1944_v59 = vadd.f32 %v2242_v22, %v1943_v29 }
0x1152   :  { %v1947_v30 = vadd.f32 %v1944_v59, %v1845_v53 }
0x1154   :  { %v1955_v32 = vsel %vm244_vm4, %v1947_v30, 0.0 }
0x1155   :  { %1956 = vadd.xlane.f32.xlu1 %v1955_v32 }
0x1195   :  { %v1954_v12 = vpop.xlane.xlu2 %1953 }
0x1196   :  { %v1958_v4 = vmul.f32 %v1954_v12, %v2757_v31 }
0x1198   :  { %v1960_v9 = vsub.f32 %v1946_v25, %v1958_v4 }
0x119a   :  { %v1962_v28 = vmul.f32 %v1960_v9, %v1960_v9 }
0x119c   :  { %v1964_v33 = vsel %vm244_vm4, %v1962_v28, 0.0 }
0x119d   :  { %1965 = vadd.xlane.f32.xlu0 %v1964_v33 }
0x11c8   :  { %v1957_v34 = vpop.xlane.xlu1 %1956 }
0x11c9   :  { %v1959_v35 = vmul.f32 %v1957_v34, %v2757_v31 }
0x11cb   :  { %v1961_v36 = vsub.f32 %v1947_v30, %v1959_v35 }
0x11cd   :  { %v1963_v37 = vmul.f32 %v1961_v36, %v1961_v36 }
0x11cf   :  { %v1967_v38 = vsel %vm244_vm4, %v1963_v37, 0.0 }
0x11d0   :  { %1968 = vadd.xlane.f32.xlu2 %v1967_v38 }
0x1210   :  { %v1966_v43 = vpop.xlane.xlu0 %1965 }
0x1211   :  { %v1970_v44 = vmul.f32 %v1966_v43, %v2757_v31 }
0x1213   :  { %v1972_v45 = vadd.f32 1e-12, %v1970_v44 }
0x1215   :  { %2336 = vrsqrt.f32 %v1972_v45  ;;  %vm1980_vm5 = vweird.f32 %v1972_v45 }
0x121b   :  { %v2337_v46 = vpop.eup %2336 }
0x121c   :  { %v1975_v49 = vmul.f32 %v2337_v46, %v1972_v45  ;;  %vm1981_vm2 = vweird.f32 %v2337_v46 }
0x121d   :  { %vm1982_vm6 = vmor %vm1980_vm5, %vm1981_vm2 }
0x121e   :  { %v1976_v50 = vmul.f32 %v2337_v46, %v1975_v49 }
0x1220   :  { %v1977_v52 = vmul.f32 0.5, %v1976_v50 }
0x1222   :  { %v1978_v53 = vsub.f32 1.5, %v1977_v52 }
0x1224   :  { %v1979_v54 = vmul.f32 %v2337_v46, %v1978_v53 }
0x1226   :  { %v1983_v51 = vsel %vm1982_vm6, %v2337_v46, %v1979_v54 }
0x1227   :  { %v1994_v55 = vmul.f32 %v1983_v51, %v1960_v9 }
0x1229   :  { %v1999_v57 = vmul.f32 %v2243_v48, %v1994_v55 }
0x122b   :  { %v2004_v58 = vadd.f32 %v2244_v56, %v1999_v57 }
0x122d   :  { %2192 = vmatmul.msk.f32.vlgmr.msrb.gmra.mxu2 %vm244_vm4, %v2004_v58 }
0x1243   :  { %v1969_v60 = vpop.xlane.xlu2 %1968 }
0x1244   :  { %v1971_v61 = vmul.f32 %v1969_v60, %v2757_v31  ;;  %v2245_v31 = vld [vmem:[%s3253_s18] ss:$0 sm:$0xff] }
0x1246   :  { %v1973_v62 = vadd.f32 1e-12, %v1971_v61 }
0x1248   :  { %2338 = vrsqrt.f32 %v1973_v62  ;;  %vm1990_vm8 = vweird.f32 %v1973_v62 }
0x124e   :  { %v2339_v63 = vpop.eup %2338 }
0x124f   :  { %v1985_v26 = vmul.f32 %v2339_v63, %v1973_v62  ;;  %vm1991_vm7 = vweird.f32 %v2339_v63 }
0x1250   :  { %vm1992_vm9 = vmor %vm1990_vm8, %vm1991_vm7 }
0x1251   :  { %v1986_v0 = vmul.f32 %v2339_v63, %v1985_v26 }
0x1253   :  { %v1987_v1 = vmul.f32 0.5, %v1986_v0 }
0x1255   :  { %v1988_v5 = vsub.f32 1.5, %v1987_v1 }
0x1257   :  { %v1989_v2 = vmul.f32 %v2339_v63, %v1988_v5 }
0x1259   :  { %v1993_v3 = vsel %vm1992_vm9, %v2339_v63, %v1989_v2 }
0x125a   :  { %v1995_v7 = vmul.f32 %v1993_v3, %v1961_v36 }
0x125c   :  { %v2000_v8 = vmul.f32 %v2243_v48, %v1995_v7 }
0x125e   :  { %v2005_v10 = vadd.f32 %v2244_v56, %v2000_v8 }
0x1260   :  { %2193 = vmatmul.msk.f32.gmra.mxu2 %vm244_vm4, %v2005_v10 }
0x12b0   :  { %v2037_v13 = vpop.f32.mrf.mxu2 }
0x12b1   :  { %v2038_v14 = vadd.f32 %v2245_v31, %v2037_v13 }
0x12b3   :  { %v2044_v16 = vsel %vm2043_vm10, %v2038_v14, -1e+30 }
0x12b4   :  { %2046 = vmax.xlane.f32.xlu1 %v2044_v16 }
0x12e3   :  { %v2040_v17 = vpop.f32.mrf.mxu2 }
0x12e4   :  { %v2041_v18 = vadd.f32 %v2245_v31, %v2040_v17 }
0x12e6   :  { %v2045_v15 = vsel %vm2043_vm10, %v2041_v18, -1e+30 }
0x12e7   :  { %2048 = vmax.xlane.f32.xlu0 %v2045_v15 }
0x1327   :  { %v2047_v6 = vpop.xlane.xlu1 %2046 }
0x1328   :  { %v2050_v19 = vsub.f32 %v2044_v16, %v2047_v6 }
0x132a   :  { %v2052_v20 = vmul.f32 1.442695, %v2050_v19 }
0x132c   :  { %2340 = vpow2.f32 %v2052_v20 }
0x1332   :  { %v2341_v21 = vpop.eup %2340 }
0x1333   :  { %2056 = vadd.xlane.f32.xlu2 %v2341_v21 }
0x135a   :  { %v2049_v47 = vpop.xlane.xlu0 %2048 }
0x135b   :  { %v2051_v22 = vsub.f32 %v2045_v15, %v2049_v47 }
0x135d   :  { %v2054_v23 = vmul.f32 1.442695, %v2051_v22 }
0x135f   :  { %2342 = vpow2.f32 %v2054_v23 }
0x1365   :  { %v2343_v24 = vpop.eup %2342 }
0x1366   :  { %2058 = vadd.xlane.f32.xlu1 %v2343_v24 }
0x13a6   :  { %v2057_v11 = vpop.xlane.xlu2 %2056 }
0x13a7   :  { %2344 = vrcp.f32 %v2057_v11  ;;  %v2071_v59 = vand.u32 2147483648, %v2057_v11  ;;  %v2069_v32 = vand.u32 2147483647, %v2057_v11  ;;  %vm2065_vm11 = vweird.f32 %v2057_v11 }
0x13a9   :  { %v2072_v4 = vor.u32 1.1754944e-38, %v2071_v59  ;;  %vm2070_vm12 = vcmp.eq.f32.partialorder %v2069_v32, 8.507059e+37 }
0x13ad   :  { %v2345_v25 = vpop.eup %2344 }
0x13ae   :  { %v2061_v27 = vmul.f32 %v2345_v25, %v2057_v11  ;;  %vm2066_vm4 = vweird.f32 %v2345_v25 }
0x13af   :  { %vm2067_vm15 = vmor %vm2065_vm11, %vm2066_vm4 }
0x13b0   :  { %v2062_v29 = vsub.f32 1.0, %v2061_v27 }
0x13b2   :  { %v2063_v30 = vmul.f32 %v2345_v25, %v2062_v29 }
0x13b4   :  { %v2064_v12 = vadd.f32 %v2345_v25, %v2063_v30 }
0x13b6   :  { %v2068_v9 = vsel %vm2067_vm15, %v2345_v25, %v2064_v12 }
0x13b7   :  { %v2073_v28 = vsel %vm2070_vm12, %v2072_v4, %v2068_v9 }
0x13b8   :  { %v2074_v33 = vmul.f32 %v2341_v21, %v2073_v28 }
0x13ba   :  { %2090 = vst [vmem:[%s3254_s19] sm:$0xff] %v2074_v33 }
0x13d9   :  { %v2059_v34 = vpop.xlane.xlu1 %2058 }
0x13da   :  { %2346 = vrcp.f32 %v2059_v34  ;;  %v2086_v38 = vand.u32 2147483648, %v2059_v34  ;;  %v2084_v40 = vand.u32 2147483647, %v2059_v34  ;;  %vm2080_vm14 = vweird.f32 %v2059_v34 }
0x13dc   :  { %v2087_v42 = vor.u32 1.1754944e-38, %v2086_v38  ;;  %vm2085_vm1 = vcmp.eq.f32.partialorder %v2084_v40, 8.507059e+37 }
0x13e0   :  { %v2347_v35 = vpop.eup %2346 }
0x13e1   :  { %v2076_v36 = vmul.f32 %v2347_v35, %v2059_v34  ;;  %vm2081_vm13 = vweird.f32 %v2347_v35 }
0x13e2   :  { %vm2082_vm0 = vmor %vm2080_vm14, %vm2081_vm13 }
0x13e3   :  { %v2077_v37 = vsub.f32 1.0, %v2076_v36 }
0x13e5   :  { %v2078_v39 = vmul.f32 %v2347_v35, %v2077_v37 }
0x13e7   :  { %v2079_v41 = vadd.f32 %v2347_v35, %v2078_v39 }
0x13e9   :  { %v2083_v43 = vsel %vm2082_vm0, %v2347_v35, %v2079_v41 }
0x13ea   :  { %v2088_v44 = vsel %vm2085_vm1, %v2087_v42, %v2083_v43 }
0x13eb   :  { %v2089_v45 = vmul.f32 %v2343_v24, %v2088_v44 }
0x13ed   :  { %2091 = vst [vmem:[%s3254_s19 + $0x8] sm:$0xff] %v2089_v45 }
0x13ee   :  { %2096 = vsyncpa [#allocation3], 1 }
0x13ef   :  { %2097 = vsyncpa [#allocation5], 1 }
0x13f0   :  { %2098 = vsyncpa [#allocation8], 1 }
0x13f1   :  { %2099 = vsyncpa [#allocation11], 1 }
0x13f2   :  { %2100 = vsyncpa [#allocation14], 1 }

</bundles_post_ra>
